<compile_context>
chip_gen: v6e
topology: v6e:2x2x1
jax: 0.10.0
libtpu: 0.0.40
codegen_flags: <defaults>
</compile_context>

<pallas_src>
import functools

import jax
import jax.numpy as jnp
from jax.experimental import pallas as pl
from jax.experimental.pallas import tpu as pltpu

_LANES = 128
_SUBLANES = 8
_MEAN_TILE_ROWS = 8192       # 8192 x 128 x 4 B = 4 MiB per buffer (1 input)
_WEIGHTED_TILE_ROWS = 4096   # 2 MiB per buffer x 2 inputs (v5e VMEM friendly)
_MIN_SPLIT_ROWS = 512        # minimum per-TensorCore rows before splitting
_SMALL_N = 65536             # below this, fused XLA beats kernel launch cost
_VMEM_LIMIT_BYTES = 32 * 1024 * 1024

# Flipped off once if CORE_PARALLEL lowering is unavailable on this chip/build.
_core_parallel_ok = True


def _cdiv(a, b):
    return -(-a // b)


def _round_up(a, b):
    return _cdiv(a, b) * b


def _num_parallel_cores():
    """2 on TPU v7x (2 TensorCores per chip/device), else 1. Safe fallback 1."""
    try:
        kind = jax.devices()[0].device_kind.lower()
    except Exception:
        return 1
    return 2 if "v7" in kind else 1


# ---------------------------------------------------------------------------
# In-kernel helpers (static Python, traced once per compile)
# ---------------------------------------------------------------------------
def _transform(p, margin, small_better, big_better, sub, add):
    # Same sequential if-chain as the PyTorch forward (flags compose in order).
    if small_better:
        p = margin - p
    if big_better:
        p = p - margin
    if sub:
        p = margin - p
    if add:
        p = margin + p
    return p


def _logsigmoid(x):
    # Numerically stable: min(x, 0) - log1p(exp(-|x|)); exactly 2 EUP ops/elem.
    return jnp.minimum(x, 0.0) - jnp.log1p(jnp.exp(-jnp.abs(x)))


def _fold(x):
    # (tile_rows, 128) -> (8, 128) partial sums; layout-preserving reshape,
    # pure VPU adds (no cross-lane work per tile).
    return x.reshape(-1, _SUBLANES, _LANES).sum(axis=0)


# ---------------------------------------------------------------------------
# Kernels
# ---------------------------------------------------------------------------
def _mean_kernel(sim_ref, acc_ref, *, margin, inner_steps, total_blocks,
                 valid_rows_last, small_better, big_better, sub, add):
    """mean path: streaming sum of logsigmoid into a resident (8,128) block."""
    c = pl.program_id(0)   # split axis (core-parallel on v7x)
    i = pl.program_id(1)   # reduction axis ("arbitrary")

    @pl.when(i == 0)
    def _():
        acc_ref[...] = jnp.zeros_like(acc_ref)

    tile_rows = sim_ref.shape[0]
    logsig = _logsigmoid(
        _transform(sim_ref[...], margin, small_better, big_better, sub, add))

    if valid_rows_last < tile_rows:
        # Only the globally-last block extends past the slab; its trailing rows
        # hold unspecified data.  The mask runs only for that one block.
        bidx = c * inner_steps + i
        is_last = bidx == total_blocks - 1

        @pl.when(jnp.logical_not(is_last))
        def _():
            acc_ref[...] += _fold(logsig)

        @pl.when(is_last)
        def _():
            row = jax.lax.broadcasted_iota(jnp.int32, logsig.shape, 0)
            acc_ref[...] += _fold(jnp.where(row < valid_rows_last, logsig, 0.0))
    else:
        acc_ref[...] += _fold(logsig)


def _weighted_kernel(sim_ref, w_ref, num_ref, den_ref, *, margin, inner_steps,
                     total_blocks, valid_rows_last, small_better, big_better,
                     sub, add):
    """weighted path: num = sum(w*logsig), den = sum(w)."""
    c = pl.program_id(0)
    i = pl.program_id(1)

    @pl.when(i == 0)
    def _():
        num_ref[...] = jnp.zeros_like(num_ref)
        den_ref[...] = jnp.zeros_like(den_ref)

    tile_rows = sim_ref.shape[0]
    logsig = _logsigmoid(
        _transform(sim_ref[...], margin, small_better, big_better, sub, add))
    w = w_ref[...]

    if valid_rows_last < tile_rows:
        bidx = c * inner_steps + i
        is_last = bidx == total_blocks - 1

        @pl.when(jnp.logical_not(is_last))
        def _():
            num_ref[...] += _fold(w * logsig)
            den_ref[...] += _fold(w)

        @pl.when(is_last)
        def _():
            row = jax.lax.broadcasted_iota(jnp.int32, logsig.shape, 0)
            valid = row < valid_rows_last
            num_ref[...] += _fold(jnp.where(valid, w * logsig, 0.0))
            den_ref[...] += _fold(jnp.where(valid, w, 0.0))
    else:
        num_ref[...] += _fold(w * logsig)
        den_ref[...] += _fold(w)


# ---------------------------------------------------------------------------
# Planning / launch helpers
# ---------------------------------------------------------------------------
def _plan(rows, max_tile_rows, want_splits):
    """Return (tile_rows, inner_steps, splits, valid_rows_last).

    The grid is (splits, inner_steps) with blocks of (tile_rows, 128),
    tile_rows % 8 == 0, covering splits*inner_steps*tile_rows >= rows with
    only the globally-last block partially out of bounds (never fully).
    """
    if want_splits > 1 and rows >= want_splits * _MIN_SPLIT_ROWS:
        nblocks = max(want_splits, _cdiv(rows, max_tile_rows))
        nblocks = _round_up(nblocks, want_splits)
        tile_rows = _round_up(_cdiv(rows, nblocks), _SUBLANES)
        if (nblocks - 1) * tile_rows < rows:     # no fully-OOB block
            inner_steps = nblocks // want_splits
            valid_last = rows - (nblocks - 1) * tile_rows
            return tile_rows, inner_steps, want_splits, valid_last
    # single-core plan
    if rows <= max_tile_rows:
        tile_rows = _round_up(rows, _SUBLANES)
        return tile_rows, 1, 1, rows
    tile_rows = max_tile_rows
    inner_steps = _cdiv(rows, tile_rows)
    valid_last = rows - (inner_steps - 1) * tile_rows
    return tile_rows, inner_steps, 1, valid_last


def _run_reduction(kernel, inputs, n_out, splits, inner_steps, tile_rows,
                   use_core_parallel):
    global _core_parallel_ok

    in_spec = pl.BlockSpec((tile_rows, _LANES),
                           lambda c, i: (c * inner_steps + i, 0))
    # Lane-dense (8,128) accumulator block(s), resident across the reduction
    # axis; one block per split so each core owns a disjoint output block.
    out_spec = pl.BlockSpec((_SUBLANES, _LANES), lambda c, i: (c, 0))
    acc_shape = jax.ShapeDtypeStruct((splits * _SUBLANES, _LANES), jnp.float32)

    def build(dim_sems):
        return pl.pallas_call(
            kernel,
            out_shape=tuple([acc_shape] * n_out),
            grid=(splits, inner_steps),
            in_specs=[in_spec] * len(inputs),
            out_specs=tuple([out_spec] * n_out),
            compiler_params=pltpu.CompilerParams(
                dimension_semantics=dim_sems,
                vmem_limit_bytes=_VMEM_LIMIT_BYTES))

    if use_core_parallel and _core_parallel_ok:
        # v7x: shard the split axis across the 2 TensorCores.  If this build
        # of Mosaic rejects CORE_PARALLEL we fall back once (note: the
        # fallback only triggers eagerly; under an outer jit, compile errors
        # surface at jit-compile time).
        try:
            return build((pltpu.CORE_PARALLEL, pltpu.ARBITRARY))(*inputs)
        except Exception:
            _core_parallel_ok = False
    return build(("parallel", "arbitrary"))(*inputs)


def _plain_jax_loss(sim_flat, w_flat, margin, subsampling,
                    small_better, big_better, sub, add):
    logsig = _logsigmoid(
        _transform(sim_flat, margin, small_better, big_better, sub, add))
    if not subsampling:
        return -jnp.mean(logsig)
    return -(jnp.sum(w_flat * logsig) / jnp.sum(w_flat))


# ---------------------------------------------------------------------------
# Public wrapper
# ---------------------------------------------------------------------------
def sigmoid_loss_knowledge_injection(
    similarity,
    pos_margin,
    subsampling_weight=None,
    *,
    subsampling=False,
    small_better=False,
    big_better=False,
    sub=False,
    add=False,
):
    """Pallas-backed forward of SigmoidLoss_KnowledgeInjection.

    Returns (loss, loss_record) matching the PyTorch module.
    Notes:
      * pos_margin is a frozen parameter and is baked statically; pass a
        concrete value (a traced value raises ConcretizationError).
      * den == 0 (empty input / all-zero weights) yields NaN/inf, matching
        the torch behavior.
    """
    sim_flat = jnp.asarray(similarity, jnp.float32).reshape(-1)
    n = int(sim_flat.shape[0])
    margin = float(pos_margin)

    w_flat = None
    if subsampling:
        if subsampling_weight is None:
            raise ValueError("subsampling=True requires subsampling_weight")
        w_flat = jnp.asarray(subsampling_weight, jnp.float32).reshape(-1)
        if int(w_flat.shape[0]) != n:
            raise ValueError("subsampling_weight must match similarity size")

    # Small-input fast path: one fused XLA pass beats pallas_call launch
    # overhead for tiny batches.
    if n < _SMALL_N:
        loss = _plain_jax_loss(sim_flat, w_flat, margin, subsampling,
                               small_better, big_better, sub, add)
        return loss, {"knowledge_injection_loss": loss}

    rows = n // _LANES
    tail = n - rows * _LANES

    tail_sums = None
    if tail == 0:
        # Contiguous reshape -> free bitcast; zero extra HBM traffic.
        sim_2d = sim_flat.reshape(rows, _LANES)
        w_2d = w_flat.reshape(rows, _LANES) if subsampling else None
    else:
        # Ragged inputs: the <128-element remainder is reduced in plain JAX;
        # the 128-aligned bulk goes through the kernel.  (XLA may materialize
        # the prefix slice; pass 128-aligned sizes for the fully zero-copy
        # path.)
        bulk = rows * _LANES
        sim_2d = jax.lax.slice(sim_flat, (0,), (bulk,)).reshape(rows, _LANES)
        sim_tail = jax.lax.slice(sim_flat, (bulk,), (n,))
        logsig_tail = _logsigmoid(
            _transform(sim_tail, margin, small_better, big_better, sub, add))
        if subsampling:
            w_2d = jax.lax.slice(w_flat, (0,), (bulk,)).reshape(rows, _LANES)
            w_tail = jax.lax.slice(w_flat, (bulk,), (n,))
            tail_sums = (jnp.sum(w_tail * logsig_tail), jnp.sum(w_tail))
        else:
            w_2d = None
            tail_sums = (jnp.sum(logsig_tail),)

    max_tile = _WEIGHTED_TILE_ROWS if subsampling else _MEAN_TILE_ROWS
    want_splits = _num_parallel_cores()
    tile_rows, inner_steps, splits, valid_last = _plan(rows, max_tile,
                                                       want_splits)
    total_blocks = splits * inner_steps

    common = dict(margin=margin, inner_steps=inner_steps,
                  total_blocks=total_blocks, valid_rows_last=valid_last,
                  small_better=small_better, big_better=big_better,
                  sub=sub, add=add)

    if not subsampling:
        kernel = functools.partial(_mean_kernel, **common)
        (acc,) = _run_reduction(kernel, (sim_2d,), 1, splits, inner_steps,
                                tile_rows, use_core_parallel=(splits > 1))
        total = jnp.sum(acc)
        if tail_sums is not None:
            total = total + tail_sums[0]
        loss = -(total / jnp.float32(n))
    else:
        kernel = functools.partial(_weighted_kernel, **common)
        num, den = _run_reduction(kernel, (sim_2d, w_2d), 2, splits,
                                  inner_steps, tile_rows,
                                  use_core_parallel=(splits > 1))
        num_t = jnp.sum(num)
        den_t = jnp.sum(den)
        if tail_sums is not None:
            num_t = num_t + tail_sums[0]
            den_t = den_t + tail_sums[1]
        loss = -(num_t / den_t)

    # PyTorch stores .item(); we keep the device scalar (caller may float()).
    return loss, {"knowledge_injection_loss": loss}


# ---------------------------------------------------------------------------
# Pure-JAX reference mirroring the PyTorch forward, for verification
# ---------------------------------------------------------------------------
def _reference(similarity, pos_margin, subsampling_weight, *, subsampling,
               small_better, big_better, sub, add):
    p = jnp.asarray(similarity, jnp.float32)
    m = jnp.float32(pos_margin)
    if small_better:
        p = m - p
    if big_better:
        p = p - m
    if sub:
        p = m - p
    if add:
        p = m + p
    positive_score = jax.nn.log_sigmoid(p)
    if not subsampling:
        return -jnp.mean(positive_score)
    w = jnp.asarray(subsampling_weight, jnp.float32)
    return -jnp.sum(w * positive_score) / jnp.sum(w)


if __name__ == "__main__":
    # args-equivalent, deterministic parameter initialization:
    pos_gamma = 6.0   # args.pos_gamma -> frozen pos_margin parameter
    # args.negative_adversarial_sampling / adversarial_temperature are never
    # read in this forward pass (adv_flag unused), so they are not needed.

    key = jax.random.PRNGKey(0)
    k1, k2, k3, k4, k5, k6 = jax.random.split(key, 6)

    # Module-typical small shapes (batch, 1) -> small-input fast path.
    sim_small = jax.random.normal(k1, (128, 1), dtype=jnp.float32) * 3.0
    w_small = jax.random.uniform(k2, (128, 1), dtype=jnp.float32,
                                 minval=0.1, maxval=1.0)

    loss1, rec1 = sigmoid_loss_knowledge_injection(
        sim_small, pos_gamma, subsampling=False, small_better=True)
    ref1 = _reference(sim_small, pos_gamma, None, subsampling=False,
                      small_better=True, big_better=False, sub=False, add=False)

    loss2, rec2 = sigmoid_loss_knowledge_injection(
        sim_small, pos_gamma, w_small, subsampling=True, big_better=True)
    ref2 = _reference(sim_small, pos_gamma, w_small, subsampling=True,
                      small_better=False, big_better=True, sub=False, add=False)

    # Kernel path, 128-aligned (zero-copy reshape), mean.
    sim_a = jax.random.normal(k3, (1024, 128), dtype=jnp.float32) * 2.0
    loss3, rec3 = sigmoid_loss_knowledge_injection(
        sim_a, pos_gamma, subsampling=False, add=True)
    ref3 = _reference(sim_a, pos_gamma, None, subsampling=False,
                      small_better=False, big_better=False, sub=False, add=True)

    # Kernel path, 128-aligned, weighted.
    sim_b = jax.random.normal(k4, (768, 128), dtype=jnp.float32) * 2.0
    w_b = jax.random.uniform(k5, (768, 128), dtype=jnp.float32,
                             minval=0.1, maxval=1.0)
    loss4, rec4 = sigmoid_loss_knowledge_injection(
        sim_b, pos_gamma, w_b, subsampling=True, sub=True)
    ref4 = _reference(sim_b, pos_gamma, w_b, subsampling=True,
                      small_better=False, big_better=False, sub=True, add=False)

    # Kernel path, ragged size: in-kernel boundary-row mask + plain-JAX tail.
    sim_c = jax.random.normal(k6, (520, 200), dtype=jnp.float32) * 2.0
    loss5, rec5 = sigmoid_loss_knowledge_injection(
        sim_c, pos_gamma, subsampling=False, small_better=True)
    ref5 = _reference(sim_c, pos_gamma, None, subsampling=False,
                      small_better=True, big_better=False, sub=False, add=False)

    results = [(loss1, ref1), (loss2, ref2), (loss3, ref3),
               (loss4, ref4), (loss5, ref5)]
    for got, ref in results:
        got = jax.block_until_ready(got)
        assert jnp.allclose(got, ref, rtol=1e-4, atol=1e-5), (got, ref)

    print("KERNEL_OK")
</pallas_src>

<mosaic_0001>
module attributes {stable_mosaic.version = 11 : i64} {
  func.func @_mean_kernel(%arg0: i32, %arg1: i32, %arg2: memref<1024x128xf32, #tpu.memory_space<vmem>>, %arg3: memref<8x128xf32, #tpu.memory_space<vmem>>) attributes {dimension_semantics = [#tpu.dimension_semantics<parallel>, #tpu.dimension_semantics<arbitrary>], iteration_bounds = array<i64: 1, 1>, scalar_prefetch = 0 : i64, scratch_operands = 0 : i64, tpu.core_type = #tpu.core_type<tc>, window_params = [{transform_indices = @transform_0, window_bounds = array<i64: 1024, 128>}, {transform_indices = @transform_1, window_bounds = array<i64: 8, 128>}]} {
    %c0_i32 = arith.constant 0 : i32
    %0 = arith.cmpi eq, %arg1, %c0_i32 : i32
    %1 = arith.extui %0 : i1 to i32
    %c0_i32_0 = arith.constant 0 : i32
    %2 = arith.cmpi ne, %1, %c0_i32_0 : i32
    scf.if %2 {
      %cst_9 = arith.constant 0.000000e+00 : f32
      %19 = vector.broadcast %cst_9 : f32 to vector<8x128xf32>
      %c0_10 = arith.constant 0 : index
      %c0_11 = arith.constant 0 : index
      %20 = vector.load %arg3[%c0_10, %c0_11] : memref<8x128xf32, #tpu.memory_space<vmem>>, vector<8x128xf32>
      tpu.vector_store %arg3[%c0_10, %c0_11], %19 {strides = array<i32>} : memref<8x128xf32, #tpu.memory_space<vmem>>, vector<8x128xf32>,
    } else {
    }
    %c0 = arith.constant 0 : index
    %c0_1 = arith.constant 0 : index
    %3 = vector.load %arg2[%c0, %c0_1] : memref<1024x128xf32, #tpu.memory_space<vmem>>, vector<1024x128xf32>
    %cst = arith.constant 6.000000e+00 : f32
    %4 = vector.broadcast %cst : f32 to vector<1024x128xf32>
    %5 = arith.addf %4, %3 : vector<1024x128xf32>
    %cst_2 = arith.constant 0.000000e+00 : f32
    %6 = vector.broadcast %cst_2 : f32 to vector<1024x128xf32>
    %7 = arith.minimumf %5, %6 : vector<1024x128xf32>
    %8 = math.absf %5 : vector<1024x128xf32>
    %cst_3 = arith.constant 0.000000e+00 : f32
    %9 = vector.broadcast %cst_3 : f32 to vector<1024x128xf32>
    %10 = arith.subf %9, %8 : vector<1024x128xf32>
    %11 = math.exp %10 : vector<1024x128xf32>
    %12 = math.log1p %11 : vector<1024x128xf32>
    %13 = arith.subf %7, %12 : vector<1024x128xf32>
    %c0_4 = arith.constant 0 : index
    %c0_5 = arith.constant 0 : index
    %14 = vector.load %arg3[%c0_4, %c0_5] : memref<8x128xf32, #tpu.memory_space<vmem>>, vector<8x128xf32>
    %15 = vector.shape_cast %13 : vector<1024x128xf32> to vector<128x8x128xf32>
    %cst_6 = arith.constant dense<0.000000e+00> : vector<8x128xf32>
    %16 = vector.multi_reduction <add>, %15, %cst_6 [0] : vector<128x8x128xf32> to vector<8x128xf32>
    %17 = arith.addf %14, %16 : vector<8x128xf32>
    %c0_7 = arith.constant 0 : index
    %c0_8 = arith.constant 0 : index
    %18 = vector.load %arg3[%c0_7, %c0_8] : memref<8x128xf32, #tpu.memory_space<vmem>>, vector<8x128xf32>
    tpu.vector_store %arg3[%c0_7, %c0_8], %17 {strides = array<i32>} : memref<8x128xf32, #tpu.memory_space<vmem>>, vector<8x128xf32>,
    return
  }
  func.func @transform_0(%arg0: i32, %arg1: i32) -> (i32, i32) {
    %c1_i32 = arith.constant 1 : i32
    %0 = arith.muli %arg0, %c1_i32 : i32
    %1 = arith.addi %0, %arg1 : i32
    %c0_i32 = arith.constant 0 : i32
    %c0_i32_0 = arith.constant 0 : i32
    return %1, %c0_i32 : i32, i32
  }
  func.func @transform_1(%arg0: i32, %arg1: i32) -> (i32, i32) {
    %c0_i32 = arith.constant 0 : i32
    %c0_i32_0 = arith.constant 0 : i32
    return %arg0, %c0_i32 : i32, i32
  }
}

</mosaic_0001>

<bundles_post_ra>
// kernel: tpu_custom_call.1
= control target key start
LH: loop header
LB: loop body
LE: loop exit
PB: predicated region body
PF: predicated region fallthrough
CT: control target
= control target key end

     0   :  { %6 = vsyncpa [#allocation3], 0  ;;  %s7497_s0 = inlined_call_operand.hbm [shape: f32[1024,128], index: 0, kind: input, shape index: {}]   ;;  %s7498_s1 = inlined_call_operand.hbm [shape: f32[8,128], index: 1, kind: output, shape index: {}]  }
   0x1   :  { %7 = vsyncpa [#allocation4], 0  ;;  %s2916_s6 = smov [#allocation2]  }
   0x2   :  { %s17_s7 = sshll.u32 %s2916_s6, 4  ;;  %s18_s7 = int_to_ptr.vmem [resolvable:$true] %s17_s7 }
   0x3   :  { %s2880_s8 = scalar_lea.vmem %s18_s7, 16384  ;;  %p2885_p1 = scmp.lt.s32.totalorder %s18_s7, %s18_s7 }
   0x4   :  { %p2881_p0 = scmp.ne.s32.totalorder %s18_s7, %s2880_s8  ;;  %p2886_p2 = scmp.lt.s32.totalorder %s2880_s8, %s2880_s8 }
   0x6   :  { %p2887_p3 = por %p2886_p2, %p2885_p1 }
   0x8   :  { %p2888_p4 = pnand %p2887_p3, %p2881_p0 }
   0xa   :  { %2891 = shalt.err (!%p2888_p4)
}
   0xb   :  { %s2917_s9 = smov 128   ;;  %s2918_s10 = smov 8  }
   0xc   :  { %23 = dma.hbm_to_vmem [thread:$0]  %s7497_s0, 16384, %s18_s7, [#allocation3], %s2917_s9, %s2917_s9, %s2918_s10  }
   0xd   :  { %2912 = dma.done.wait [#allocation3], 16384  }
   0xe   :  { %2913 = vsyncadd [#allocation3], 4294950912  ;;  %v34_v0 = vld [vmem:[#allocation2] sm:$0xff]  ;;  %v35_v1 = vld [vmem:[#allocation2 + $0x8] sm:$0xff]  ;;  %s2919_s0 = smov [#allocation5]  }
   0xf   :  { %v36_v2 = vld [vmem:[#allocation2 + $0x10] sm:$0xff]  ;;  %v37_v3 = vld [vmem:[#allocation2 + $0x18] sm:$0xff]  ;;  %v38_v4 = vld [vmem:[#allocation2 + $0x20] sm:$0xff]  ;;  %v2933_v14 = vadd.f32 6.0, %v34_v0  ;;  %v2935_v15 = vadd.f32 6.0, %v35_v1  ;;  %s2346_s13 = sshll.u32 %s2919_s0, 4  ;;  %s2347_s13 = int_to_ptr.vmem [resolvable:$true] %s2346_s13 }
  0x10   :  { %v39_v5 = vld [vmem:[#allocation2 + $0x28] sm:$0xff]  ;;  %v40_v6 = vld [vmem:[#allocation2 + $0x30] sm:$0xff]  ;;  %v41_v7 = vld [vmem:[#allocation2 + $0x38] sm:$0xff]  ;;  %v2937_v16 = vadd.f32 6.0, %v36_v2  ;;  %v2939_v20 = vadd.f32 6.0, %v37_v3  ;;  %v2941_v21 = vadd.f32 6.0, %v38_v4  ;;  %p2897_p6 = scmp.lt.s32.totalorder %s2347_s13, %s2347_s13 }
  0x11   :  { %v42_v8 = vld [vmem:[#allocation2 + $0x40] sm:$0xff]  ;;  %v43_v9 = vld [vmem:[#allocation2 + $0x48] sm:$0xff]  ;;  %v44_v10 = vld [vmem:[#allocation2 + $0x50] sm:$0xff]  ;;  %8013 = vst [vmem:[#allocation8_spill] sm:$0xff] %v2933_v14  ;;  %v2943_v22 = vadd.f32 6.0, %v39_v5  ;;  %v2945_v26 = vadd.f32 6.0, %v40_v6 }
  0x12   :  { %v45_v11 = vld [vmem:[#allocation2 + $0x58] sm:$0xff]  ;;  %v46_v12 = vld [vmem:[#allocation2 + $0x60] sm:$0xff]  ;;  %v47_v13 = vld [vmem:[#allocation2 + $0x68] sm:$0xff]  ;;  %8014 = vst [vmem:[#allocation9_spill] sm:$0xff] %v2935_v15  ;;  %v2947_v27 = vadd.f32 6.0, %v41_v7  ;;  %v2949_v28 = vadd.f32 6.0, %v42_v8 }
  0x13   :  { %8015 = vst [vmem:[#allocation10_spill] sm:$0xff] %v2937_v16  ;;  %v48_v17 = vld [vmem:[#allocation2 + $0x70] sm:$0xff]  ;;  %v49_v18 = vld [vmem:[#allocation2 + $0x78] sm:$0xff]  ;;  %v50_v19 = vld [vmem:[#allocation2 + $0x80] sm:$0xff]  ;;  %v2951_v32 = vadd.f32 6.0, %v43_v9  ;;  %v2953_v33 = vadd.f32 6.0, %v44_v10 }
  0x14   :  { %8016 = vst [vmem:[#allocation11_spill] sm:$0xff] %v2939_v20  ;;  %8017 = vst [vmem:[#allocation12_spill] sm:$0xff] %v2941_v21  ;;  %v51_v23 = vld [vmem:[#allocation2 + $0x88] sm:$0xff]  ;;  %v52_v24 = vld [vmem:[#allocation2 + $0x90] sm:$0xff]  ;;  %v2955_v34 = vadd.f32 6.0, %v45_v11  ;;  %v2957_v38 = vadd.f32 6.0, %v46_v12 }
  0x15   :  { %8018 = vst [vmem:[#allocation13_spill] sm:$0xff] %v2943_v22  ;;  %v53_v25 = vld [vmem:[#allocation2 + $0x98] sm:$0xff]  ;;  %8019 = vst [vmem:[#allocation14_spill] sm:$0xff] %v2945_v26  ;;  %v54_v29 = vld [vmem:[#allocation2 + $0xa0] sm:$0xff]  ;;  %v2959_v39 = vadd.f32 6.0, %v47_v13  ;;  %v2961_v40 = vadd.f32 6.0, %v48_v17 }
  0x16   :  { %8020 = vst [vmem:[#allocation15_spill] sm:$0xff] %v2947_v27  ;;  %8021 = vst [vmem:[#allocation16_spill] sm:$0xff] %v2949_v28  ;;  %v55_v30 = vld [vmem:[#allocation2 + $0xa8] sm:$0xff]  ;;  %v56_v31 = vld [vmem:[#allocation2 + $0xb0] sm:$0xff]  ;;  %v2963_v44 = vadd.f32 6.0, %v49_v18  ;;  %v2965_v45 = vadd.f32 6.0, %v50_v19 }
  0x17   :  { %8022 = vst [vmem:[#allocation17_spill] sm:$0xff] %v2951_v32  ;;  %8023 = vst [vmem:[#allocation18_spill] sm:$0xff] %v2953_v33  ;;  %v57_v35 = vld [vmem:[#allocation2 + $0xb8] sm:$0xff]  ;;  %v58_v36 = vld [vmem:[#allocation2 + $0xc0] sm:$0xff]  ;;  %v2967_v46 = vadd.f32 6.0, %v51_v23  ;;  %v2969_v50 = vadd.f32 6.0, %v52_v24 }
  0x18   :  { %8024 = vst [vmem:[#allocation19_spill] sm:$0xff] %v2955_v34  ;;  %v59_v37 = vld [vmem:[#allocation2 + $0xc8] sm:$0xff]  ;;  %8025 = vst [vmem:[#allocation20_spill] sm:$0xff] %v2957_v38  ;;  %v60_v41 = vld [vmem:[#allocation2 + $0xd0] sm:$0xff]  ;;  %v2971_v51 = vadd.f32 6.0, %v53_v25  ;;  %v2973_v52 = vadd.f32 6.0, %v54_v29 }
  0x19   :  { %8026 = vst [vmem:[#allocation21_spill] sm:$0xff] %v2959_v39  ;;  %8027 = vst [vmem:[#allocation22_spill] sm:$0xff] %v2961_v40  ;;  %v61_v42 = vld [vmem:[#allocation2 + $0xd8] sm:$0xff]  ;;  %v62_v43 = vld [vmem:[#allocation2 + $0xe0] sm:$0xff]  ;;  %v2975_v56 = vadd.f32 6.0, %v55_v30  ;;  %v2977_v57 = vadd.f32 6.0, %v56_v31 }
  0x1a   :  { %8028 = vst [vmem:[#allocation23_spill] sm:$0xff] %v2963_v44  ;;  %8029 = vst [vmem:[#allocation24_spill] sm:$0xff] %v2965_v45  ;;  %v63_v47 = vld [vmem:[#allocation2 + $0xe8] sm:$0xff]  ;;  %v64_v48 = vld [vmem:[#allocation2 + $0xf0] sm:$0xff]  ;;  %v2979_v58 = vadd.f32 6.0, %v57_v35  ;;  %v2981_v62 = vadd.f32 6.0, %v58_v36 }
  0x1b   :  { %8030 = vst [vmem:[#allocation25_spill] sm:$0xff] %v2967_v46  ;;  %v65_v49 = vld [vmem:[#allocation2 + $0xf8] sm:$0xff]  ;;  %8031 = vst [vmem:[#allocation26_spill] sm:$0xff] %v2969_v50  ;;  %v66_v53 = vld [vmem:[#allocation2 + $0x100] sm:$0xff]  ;;  %v2983_v63 = vadd.f32 6.0, %v59_v37  ;;  %v2985_v0 = vadd.f32 6.0, %v60_v41 }
  0x1c   :  { %8032 = vst [vmem:[#allocation27_spill] sm:$0xff] %v2971_v51  ;;  %8033 = vst [vmem:[#allocation28_spill] sm:$0xff] %v2973_v52  ;;  %v67_v54 = vld [vmem:[#allocation2 + $0x108] sm:$0xff]  ;;  %v68_v55 = vld [vmem:[#allocation2 + $0x110] sm:$0xff]  ;;  %v2987_v4 = vadd.f32 6.0, %v61_v42  ;;  %v2989_v5 = vadd.f32 6.0, %v62_v43 }
  0x1d   :  { %8034 = vst [vmem:[#allocation29_spill] sm:$0xff] %v2975_v56  ;;  %8035 = vst [vmem:[#allocation30_spill] sm:$0xff] %v2977_v57  ;;  %v69_v59 = vld [vmem:[#allocation2 + $0x118] sm:$0xff]  ;;  %v70_v60 = vld [vmem:[#allocation2 + $0x120] sm:$0xff]  ;;  %v2991_v6 = vadd.f32 6.0, %v63_v47  ;;  %v2993_v10 = vadd.f32 6.0, %v64_v48 }
  0x1e   :  { %8036 = vst [vmem:[#allocation31_spill] sm:$0xff] %v2979_v58  ;;  %v71_v61 = vld [vmem:[#allocation2 + $0x128] sm:$0xff]  ;;  %8037 = vst [vmem:[#allocation32_spill] sm:$0xff] %v2981_v62  ;;  %v72_v1 = vld [vmem:[#allocation2 + $0x130] sm:$0xff]  ;;  %v2995_v11 = vadd.f32 6.0, %v65_v49  ;;  %v2997_v12 = vadd.f32 6.0, %v66_v53 }
  0x1f   :  { %8038 = vst [vmem:[#allocation33_spill] sm:$0xff] %v2983_v63  ;;  %8039 = vst [vmem:[#allocation34_spill] sm:$0xff] %v2985_v0  ;;  %v73_v2 = vld [vmem:[#allocation2 + $0x138] sm:$0xff]  ;;  %v74_v3 = vld [vmem:[#allocation2 + $0x140] sm:$0xff]  ;;  %v2999_v19 = vadd.f32 6.0, %v67_v54  ;;  %v3001_v23 = vadd.f32 6.0, %v68_v55 }
  0x20   :  { %8040 = vst [vmem:[#allocation35_spill] sm:$0xff] %v2987_v4  ;;  %8041 = vst [vmem:[#allocation36_spill] sm:$0xff] %v2989_v5  ;;  %v75_v7 = vld [vmem:[#allocation2 + $0x148] sm:$0xff]  ;;  %v76_v8 = vld [vmem:[#allocation2 + $0x150] sm:$0xff]  ;;  %v3003_v24 = vadd.f32 6.0, %v69_v59  ;;  %v3005_v31 = vadd.f32 6.0, %v70_v60 }
  0x21   :  { %8042 = vst [vmem:[#allocation37_spill] sm:$0xff] %v2991_v6  ;;  %v77_v9 = vld [vmem:[#allocation2 + $0x158] sm:$0xff]  ;;  %8043 = vst [vmem:[#allocation38_spill] sm:$0xff] %v2993_v10  ;;  %v78_v13 = vld [vmem:[#allocation2 + $0x160] sm:$0xff]  ;;  %v3007_v35 = vadd.f32 6.0, %v71_v61  ;;  %v3009_v36 = vadd.f32 6.0, %v72_v1 }
  0x22   :  { %8044 = vst [vmem:[#allocation39_spill] sm:$0xff] %v2995_v11  ;;  %8045 = vst [vmem:[#allocation40_spill] sm:$0xff] %v2997_v12  ;;  %v79_v17 = vld [vmem:[#allocation2 + $0x168] sm:$0xff]  ;;  %v80_v18 = vld [vmem:[#allocation2 + $0x170] sm:$0xff]  ;;  %v3011_v43 = vadd.f32 6.0, %v73_v2  ;;  %v3013_v47 = vadd.f32 6.0, %v74_v3 }
  0x23   :  { %8046 = vst [vmem:[#allocation41_spill] sm:$0xff] %v2999_v19  ;;  %8047 = vst [vmem:[#allocation42_spill] sm:$0xff] %v3001_v23  ;;  %v81_v25 = vld [vmem:[#allocation2 + $0x178] sm:$0xff]  ;;  %v82_v29 = vld [vmem:[#allocation2 + $0x180] sm:$0xff]  ;;  %v3015_v48 = vadd.f32 6.0, %v75_v7  ;;  %v3017_v55 = vadd.f32 6.0, %v76_v8 }
  0x24   :  { %8048 = vst [vmem:[#allocation43_spill] sm:$0xff] %v3003_v24  ;;  %v83_v30 = vld [vmem:[#allocation2 + $0x188] sm:$0xff]  ;;  %8049 = vst [vmem:[#allocation44_spill] sm:$0xff] %v3005_v31  ;;  %v84_v37 = vld [vmem:[#allocation2 + $0x190] sm:$0xff]  ;;  %v3019_v59 = vadd.f32 6.0, %v77_v9  ;;  %v3021_v60 = vadd.f32 6.0, %v78_v13 }
  0x25   :  { %8050 = vst [vmem:[#allocation45_spill] sm:$0xff] %v3007_v35  ;;  %8051 = vst [vmem:[#allocation46_spill] sm:$0xff] %v3009_v36  ;;  %v85_v41 = vld [vmem:[#allocation2 + $0x198] sm:$0xff]  ;;  %v86_v42 = vld [vmem:[#allocation2 + $0x1a0] sm:$0xff]  ;;  %v3023_v35 = vadd.f32 6.0, %v79_v17  ;;  %v3025_v2 = vadd.f32 6.0, %v80_v18 }
  0x26   :  { %8052 = vst [vmem:[#allocation47_spill] sm:$0xff] %v3011_v43  ;;  %8053 = vst [vmem:[#allocation48_spill] sm:$0xff] %v3013_v47  ;;  %v87_v49 = vld [vmem:[#allocation2 + $0x1a8] sm:$0xff]  ;;  %v88_v53 = vld [vmem:[#allocation2 + $0x1b0] sm:$0xff]  ;;  %v3027_v3 = vadd.f32 6.0, %v81_v25  ;;  %v3029_v43 = vadd.f32 6.0, %v82_v29 }
  0x27   :  { %8054 = vst [vmem:[#allocation49_spill] sm:$0xff] %v3015_v48  ;;  %v89_v54 = vld [vmem:[#allocation2 + $0x1b8] sm:$0xff]  ;;  %8055 = vst [vmem:[#allocation50_spill] sm:$0xff] %v3017_v55  ;;  %v90_v61 = vld [vmem:[#allocation2 + $0x1c0] sm:$0xff]  ;;  %v3031_v8 = vadd.f32 6.0, %v83_v30  ;;  %v3033_v9 = vadd.f32 6.0, %v84_v37 }
  0x28   :  { %8056 = vst [vmem:[#allocation51_spill] sm:$0xff] %v3019_v59  ;;  %8057 = vst [vmem:[#allocation52_spill] sm:$0xff] %v3021_v60  ;;  %v91_v1 = vld [vmem:[#allocation2 + $0x1c8] sm:$0xff]  ;;  %v92_v36 = vld [vmem:[#allocation2 + $0x1d0] sm:$0xff]  ;;  %v3035_v55 = vadd.f32 6.0, %v85_v41  ;;  %v3037_v17 = vadd.f32 6.0, %v86_v42 }
  0x29   :  { %8058 = vst [vmem:[#allocation53_spill] sm:$0xff] %v3023_v35  ;;  %8059 = vst [vmem:[#allocation54_spill] sm:$0xff] %v3025_v2  ;;  %v93_v7 = vld [vmem:[#allocation2 + $0x1d8] sm:$0xff]  ;;  %v94_v48 = vld [vmem:[#allocation2 + $0x1e0] sm:$0xff]  ;;  %v3039_v18 = vadd.f32 6.0, %v87_v49  ;;  %v3041_v35 = vadd.f32 6.0, %v88_v53 }
  0x2a   :  { %8060 = vst [vmem:[#allocation55_spill] sm:$0xff] %v3027_v3  ;;  %v95_v47 = vld [vmem:[#allocation2 + $0x1e8] sm:$0xff]  ;;  %8061 = vst [vmem:[#allocation56_spill] sm:$0xff] %v3029_v43  ;;  %v96_v13 = vld [vmem:[#allocation2 + $0x1f0] sm:$0xff]  ;;  %v3043_v29 = vadd.f32 6.0, %v89_v54  ;;  %v3045_v30 = vadd.f32 6.0, %v90_v61 }
  0x2b   :  { %8062 = vst [vmem:[#allocation57_spill] sm:$0xff] %v3031_v8  ;;  %8063 = vst [vmem:[#allocation58_spill] sm:$0xff] %v3033_v9  ;;  %v97_v60 = vld [vmem:[#allocation2 + $0x1f8] sm:$0xff]  ;;  %v98_v59 = vld [vmem:[#allocation2 + $0x200] sm:$0xff]  ;;  %v3047_v43 = vadd.f32 6.0, %v91_v1  ;;  %v3049_v41 = vadd.f32 6.0, %v92_v36 }
  0x2c   :  { %8064 = vst [vmem:[#allocation59_spill] sm:$0xff] %v3035_v55  ;;  %8065 = vst [vmem:[#allocation60_spill] sm:$0xff] %v3037_v17  ;;  %v99_v25 = vld [vmem:[#allocation2 + $0x208] sm:$0xff]  ;;  %v100_v3 = vld [vmem:[#allocation2 + $0x210] sm:$0xff]  ;;  %v3051_v42 = vadd.f32 6.0, %v93_v7  ;;  %v3053_v55 = vadd.f32 6.0, %v94_v48 }
  0x2d   :  { %8066 = vst [vmem:[#allocation61_spill] sm:$0xff] %v3039_v18  ;;  %v101_v2 = vld [vmem:[#allocation2 + $0x218] sm:$0xff]  ;;  %8067 = vst [vmem:[#allocation62_spill] sm:$0xff] %v3041_v35  ;;  %v102_v37 = vld [vmem:[#allocation2 + $0x220] sm:$0xff]  ;;  %v3055_v53 = vadd.f32 6.0, %v95_v47  ;;  %v3057_v54 = vadd.f32 6.0, %v96_v13 }
  0x2e   :  { %8068 = vst [vmem:[#allocation63_spill] sm:$0xff] %v3043_v29  ;;  %8069 = vst [vmem:[#allocation64_spill] sm:$0xff] %v3045_v30  ;;  %v103_v9 = vld [vmem:[#allocation2 + $0x228] sm:$0xff]  ;;  %v104_v8 = vld [vmem:[#allocation2 + $0x230] sm:$0xff]  ;;  %v3059_v35 = vadd.f32 6.0, %v97_v60  ;;  %v3061_v1 = vadd.f32 6.0, %v98_v59 }
  0x2f   :  { %8070 = vst [vmem:[#allocation65_spill] sm:$0xff] %v3047_v43  ;;  %8071 = vst [vmem:[#allocation66_spill] sm:$0xff] %v3049_v41  ;;  %v105_v49 = vld [vmem:[#allocation2 + $0x238] sm:$0xff]  ;;  %v106_v18 = vld [vmem:[#allocation2 + $0x240] sm:$0xff]  ;;  %v3063_v36 = vadd.f32 6.0, %v99_v25  ;;  %v3065_v43 = vadd.f32 6.0, %v100_v3 }
  0x30   :  { %8072 = vst [vmem:[#allocation67_spill] sm:$0xff] %v3051_v42  ;;  %v107_v17 = vld [vmem:[#allocation2 + $0x248] sm:$0xff]  ;;  %8073 = vst [vmem:[#allocation68_spill] sm:$0xff] %v3053_v55  ;;  %v108_v61 = vld [vmem:[#allocation2 + $0x250] sm:$0xff]  ;;  %v3067_v48 = vadd.f32 6.0, %v101_v2  ;;  %v3069_v47 = vadd.f32 6.0, %v102_v37 }
  0x31   :  { %8074 = vst [vmem:[#allocation69_spill] sm:$0xff] %v3055_v53  ;;  %8075 = vst [vmem:[#allocation70_spill] sm:$0xff] %v3057_v54  ;;  %v109_v30 = vld [vmem:[#allocation2 + $0x258] sm:$0xff]  ;;  %v110_v29 = vld [vmem:[#allocation2 + $0x260] sm:$0xff]  ;;  %v3071_v55 = vadd.f32 6.0, %v103_v9  ;;  %v3073_v60 = vadd.f32 6.0, %v104_v8 }
  0x32   :  { %8076 = vst [vmem:[#allocation71_spill] sm:$0xff] %v3059_v35  ;;  %8077 = vst [vmem:[#allocation72_spill] sm:$0xff] %v3061_v1  ;;  %v111_v7 = vld [vmem:[#allocation2 + $0x268] sm:$0xff]  ;;  %v112_v42 = vld [vmem:[#allocation2 + $0x270] sm:$0xff]  ;;  %v3075_v59 = vadd.f32 6.0, %v105_v49  ;;  %v3077_v35 = vadd.f32 6.0, %v106_v18 }
  0x33   :  { %8078 = vst [vmem:[#allocation73_spill] sm:$0xff] %v3063_v36  ;;  %v113_v41 = vld [vmem:[#allocation2 + $0x278] sm:$0xff]  ;;  %8079 = vst [vmem:[#allocation74_spill] sm:$0xff] %v3065_v43  ;;  %v114_v13 = vld [vmem:[#allocation2 + $0x280] sm:$0xff]  ;;  %v3079_v3 = vadd.f32 6.0, %v107_v17  ;;  %v3081_v2 = vadd.f32 6.0, %v108_v61 }
  0x34   :  { %8080 = vst [vmem:[#allocation75_spill] sm:$0xff] %v3067_v48  ;;  %8081 = vst [vmem:[#allocation76_spill] sm:$0xff] %v3069_v47  ;;  %v115_v54 = vld [vmem:[#allocation2 + $0x288] sm:$0xff]  ;;  %v116_v53 = vld [vmem:[#allocation2 + $0x290] sm:$0xff]  ;;  %v3083_v43 = vadd.f32 6.0, %v109_v30  ;;  %v3085_v9 = vadd.f32 6.0, %v110_v29 }
  0x35   :  { %8082 = vst [vmem:[#allocation77_spill] sm:$0xff] %v3071_v55  ;;  %8083 = vst [vmem:[#allocation78_spill] sm:$0xff] %v3073_v60  ;;  %v117_v25 = vld [vmem:[#allocation2 + $0x298] sm:$0xff]  ;;  %v118_v36 = vld [vmem:[#allocation2 + $0x2a0] sm:$0xff]  ;;  %v3087_v8 = vadd.f32 6.0, %v111_v7  ;;  %v3089_v55 = vadd.f32 6.0, %v112_v42 }
  0x36   :  { %8084 = vst [vmem:[#allocation79_spill] sm:$0xff] %v3075_v59  ;;  %v119_v1 = vld [vmem:[#allocation2 + $0x2a8] sm:$0xff]  ;;  %8085 = vst [vmem:[#allocation80_spill] sm:$0xff] %v3077_v35  ;;  %v120_v37 = vld [vmem:[#allocation2 + $0x2b0] sm:$0xff]  ;;  %v3091_v18 = vadd.f32 6.0, %v113_v41  ;;  %v3093_v17 = vadd.f32 6.0, %v114_v13 }
  0x37   :  { %8086 = vst [vmem:[#allocation81_spill] sm:$0xff] %v3079_v3  ;;  %8087 = vst [vmem:[#allocation82_spill] sm:$0xff] %v3081_v2  ;;  %v121_v47 = vld [vmem:[#allocation2 + $0x2b8] sm:$0xff]  ;;  %v122_v48 = vld [vmem:[#allocation2 + $0x2c0] sm:$0xff]  ;;  %v3095_v35 = vadd.f32 6.0, %v115_v54  ;;  %v3097_v30 = vadd.f32 6.0, %v116_v53 }
  0x38   :  { %8088 = vst [vmem:[#allocation83_spill] sm:$0xff] %v3083_v43  ;;  %8089 = vst [vmem:[#allocation84_spill] sm:$0xff] %v3085_v9  ;;  %v123_v49 = vld [vmem:[#allocation2 + $0x2c8] sm:$0xff]  ;;  %v124_v59 = vld [vmem:[#allocation2 + $0x2d0] sm:$0xff]  ;;  %v3099_v29 = vadd.f32 6.0, %v117_v25  ;;  %v3101_v43 = vadd.f32 6.0, %v118_v36 }
  0x39   :  { %8090 = vst [vmem:[#allocation85_spill] sm:$0xff] %v3087_v8  ;;  %v125_v60 = vld [vmem:[#allocation2 + $0x2d8] sm:$0xff]  ;;  %8091 = vst [vmem:[#allocation86_spill] sm:$0xff] %v3089_v55  ;;  %v126_v61 = vld [vmem:[#allocation2 + $0x2e0] sm:$0xff]  ;;  %v3103_v42 = vadd.f32 6.0, %v119_v1  ;;  %v3105_v41 = vadd.f32 6.0, %v120_v37 }
  0x3a   :  { %8092 = vst [vmem:[#allocation87_spill] sm:$0xff] %v3091_v18  ;;  %8093 = vst [vmem:[#allocation88_spill] sm:$0xff] %v3093_v17  ;;  %v127_v2 = vld [vmem:[#allocation2 + $0x2e8] sm:$0xff]  ;;  %v128_v3 = vld [vmem:[#allocation2 + $0x2f0] sm:$0xff]  ;;  %v3107_v55 = vadd.f32 6.0, %v121_v47  ;;  %v3109_v54 = vadd.f32 6.0, %v122_v48 }
  0x3b   :  { %8094 = vst [vmem:[#allocation89_spill] sm:$0xff] %v3095_v35  ;;  %8095 = vst [vmem:[#allocation90_spill] sm:$0xff] %v3097_v30  ;;  %v129_v7 = vld [vmem:[#allocation2 + $0x2f8] sm:$0xff]  ;;  %v130_v8 = vld [vmem:[#allocation2 + $0x300] sm:$0xff]  ;;  %v3111_v53 = vadd.f32 6.0, %v123_v49  ;;  %v3113_v35 = vadd.f32 6.0, %v124_v59 }
  0x3c   :  { %8096 = vst [vmem:[#allocation91_spill] sm:$0xff] %v3099_v29  ;;  %v131_v9 = vld [vmem:[#allocation2 + $0x308] sm:$0xff]  ;;  %8097 = vst [vmem:[#allocation92_spill] sm:$0xff] %v3101_v43  ;;  %v132_v13 = vld [vmem:[#allocation2 + $0x310] sm:$0xff]  ;;  %v3115_v36 = vadd.f32 6.0, %v125_v60  ;;  %v3117_v1 = vadd.f32 6.0, %v126_v61 }
  0x3d   :  { %8098 = vst [vmem:[#allocation93_spill] sm:$0xff] %v3103_v42  ;;  %8099 = vst [vmem:[#allocation94_spill] sm:$0xff] %v3105_v41  ;;  %v133_v17 = vld [vmem:[#allocation2 + $0x318] sm:$0xff]  ;;  %v134_v18 = vld [vmem:[#allocation2 + $0x320] sm:$0xff]  ;;  %v3119_v43 = vadd.f32 6.0, %v127_v2  ;;  %v3121_v47 = vadd.f32 6.0, %v128_v3 }
  0x3e   :  { %8100 = vst [vmem:[#allocation95_spill] sm:$0xff] %v3107_v55  ;;  %8101 = vst [vmem:[#allocation96_spill] sm:$0xff] %v3109_v54  ;;  %v135_v25 = vld [vmem:[#allocation2 + $0x328] sm:$0xff]  ;;  %v136_v29 = vld [vmem:[#allocation2 + $0x330] sm:$0xff]  ;;  %v3123_v48 = vadd.f32 6.0, %v129_v7  ;;  %v3125_v55 = vadd.f32 6.0, %v130_v8 }
  0x3f   :  { %8102 = vst [vmem:[#allocation97_spill] sm:$0xff] %v3111_v53  ;;  %v137_v30 = vld [vmem:[#allocation2 + $0x338] sm:$0xff]  ;;  %8103 = vst [vmem:[#allocation98_spill] sm:$0xff] %v3113_v35  ;;  %v138_v37 = vld [vmem:[#allocation2 + $0x340] sm:$0xff]  ;;  %v3127_v59 = vadd.f32 6.0, %v131_v9  ;;  %v3129_v60 = vadd.f32 6.0, %v132_v13 }
  0x40   :  { %8104 = vst [vmem:[#allocation99_spill] sm:$0xff] %v3115_v36  ;;  %8105 = vst [vmem:[#allocation100_spill] sm:$0xff] %v3117_v1  ;;  %v139_v41 = vld [vmem:[#allocation2 + $0x348] sm:$0xff]  ;;  %v140_v42 = vld [vmem:[#allocation2 + $0x350] sm:$0xff]  ;;  %v3131_v35 = vadd.f32 6.0, %v133_v17  ;;  %v3133_v2 = vadd.f32 6.0, %v134_v18 }
  0x41   :  { %8106 = vst [vmem:[#allocation101_spill] sm:$0xff] %v3119_v43  ;;  %8107 = vst [vmem:[#allocation102_spill] sm:$0xff] %v3121_v47  ;;  %v141_v49 = vld [vmem:[#allocation2 + $0x358] sm:$0xff]  ;;  %v142_v53 = vld [vmem:[#allocation2 + $0x360] sm:$0xff]  ;;  %v3135_v3 = vadd.f32 6.0, %v135_v25  ;;  %v3137_v43 = vadd.f32 6.0, %v136_v29 }
  0x42   :  { %8108 = vst [vmem:[#allocation103_spill] sm:$0xff] %v3123_v48  ;;  %v143_v54 = vld [vmem:[#allocation2 + $0x368] sm:$0xff]  ;;  %8109 = vst [vmem:[#allocation104_spill] sm:$0xff] %v3125_v55  ;;  %v144_v61 = vld [vmem:[#allocation2 + $0x370] sm:$0xff]  ;;  %v3139_v8 = vadd.f32 6.0, %v137_v30  ;;  %v3141_v9 = vadd.f32 6.0, %v138_v37 }
  0x43   :  { %8110 = vst [vmem:[#allocation105_spill] sm:$0xff] %v3127_v59  ;;  %8111 = vst [vmem:[#allocation106_spill] sm:$0xff] %v3129_v60  ;;  %v145_v1 = vld [vmem:[#allocation2 + $0x378] sm:$0xff]  ;;  %v146_v36 = vld [vmem:[#allocation2 + $0x380] sm:$0xff]  ;;  %v3143_v55 = vadd.f32 6.0, %v139_v41  ;;  %v3145_v17 = vadd.f32 6.0, %v140_v42 }
  0x44   :  { %8112 = vst [vmem:[#allocation107_spill] sm:$0xff] %v3131_v35  ;;  %8113 = vst [vmem:[#allocation108_spill] sm:$0xff] %v3133_v2  ;;  %v147_v7 = vld [vmem:[#allocation2 + $0x388] sm:$0xff]  ;;  %v148_v48 = vld [vmem:[#allocation2 + $0x390] sm:$0xff]  ;;  %v3147_v18 = vadd.f32 6.0, %v141_v49  ;;  %v3149_v35 = vadd.f32 6.0, %v142_v53 }
  0x45   :  { %8114 = vst [vmem:[#allocation109_spill] sm:$0xff] %v3135_v3  ;;  %v149_v47 = vld [vmem:[#allocation2 + $0x398] sm:$0xff]  ;;  %8115 = vst [vmem:[#allocation110_spill] sm:$0xff] %v3137_v43  ;;  %v150_v13 = vld [vmem:[#allocation2 + $0x3a0] sm:$0xff]  ;;  %v3151_v29 = vadd.f32 6.0, %v143_v54  ;;  %v3153_v30 = vadd.f32 6.0, %v144_v61 }
  0x46   :  { %8116 = vst [vmem:[#allocation111_spill] sm:$0xff] %v3139_v8  ;;  %8117 = vst [vmem:[#allocation112_spill] sm:$0xff] %v3141_v9  ;;  %v151_v60 = vld [vmem:[#allocation2 + $0x3a8] sm:$0xff]  ;;  %v152_v59 = vld [vmem:[#allocation2 + $0x3b0] sm:$0xff]  ;;  %v3155_v43 = vadd.f32 6.0, %v145_v1  ;;  %v3157_v41 = vadd.f32 6.0, %v146_v36 }
  0x47   :  { %8118 = vst [vmem:[#allocation113_spill] sm:$0xff] %v3143_v55  ;;  %8119 = vst [vmem:[#allocation114_spill] sm:$0xff] %v3145_v17  ;;  %v153_v25 = vld [vmem:[#allocation2 + $0x3b8] sm:$0xff]  ;;  %v154_v3 = vld [vmem:[#allocation2 + $0x3c0] sm:$0xff]  ;;  %v3159_v42 = vadd.f32 6.0, %v147_v7  ;;  %v3161_v55 = vadd.f32 6.0, %v148_v48 }
  0x48   :  { %8120 = vst [vmem:[#allocation115_spill] sm:$0xff] %v3147_v18  ;;  %v155_v2 = vld [vmem:[#allocation2 + $0x3c8] sm:$0xff]  ;;  %8121 = vst [vmem:[#allocation116_spill] sm:$0xff] %v3149_v35  ;;  %v156_v37 = vld [vmem:[#allocation2 + $0x3d0] sm:$0xff]  ;;  %v3163_v53 = vadd.f32 6.0, %v149_v47  ;;  %v3165_v54 = vadd.f32 6.0, %v150_v13 }
  0x49   :  { %8122 = vst [vmem:[#allocation117_spill] sm:$0xff] %v3151_v29  ;;  %8123 = vst [vmem:[#allocation118_spill] sm:$0xff] %v3153_v30  ;;  %v157_v9 = vld [vmem:[#allocation2 + $0x3d8] sm:$0xff]  ;;  %v158_v8 = vld [vmem:[#allocation2 + $0x3e0] sm:$0xff]  ;;  %v3167_v61 = vadd.f32 6.0, %v151_v60  ;;  %v3169_v30 = vadd.f32 6.0, %v152_v59 }
  0x4a   :  { %8124 = vst [vmem:[#allocation119_spill] sm:$0xff] %v3155_v43  ;;  %8125 = vst [vmem:[#allocation120_spill] sm:$0xff] %v3157_v41  ;;  %v159_v49 = vld [vmem:[#allocation2 + $0x3e8] sm:$0xff]  ;;  %v160_v18 = vld [vmem:[#allocation2 + $0x3f0] sm:$0xff]  ;;  %v3171_v29 = vadd.f32 6.0, %v153_v25  ;;  %v3173_v1 = vadd.f32 6.0, %v154_v3 }
  0x4b   :  { %8126 = vst [vmem:[#allocation121_spill] sm:$0xff] %v3159_v42  ;;  %v161_v17 = vld [vmem:[#allocation2 + $0x3f8] sm:$0xff]  ;;  %8127 = vst [vmem:[#allocation122_spill] sm:$0xff] %v3161_v55  ;;  %v3175_v36 = vadd.f32 6.0, %v155_v2  ;;  %v3177_v7 = vadd.f32 6.0, %v156_v37  ;;  %v3179_v42 = vadd.f32 6.0, %v157_v9 }
  0x4c   :  { %8128 = vst [vmem:[#allocation123_spill] sm:$0xff] %v3163_v53  ;;  %8129 = vst [vmem:[#allocation124_spill] sm:$0xff] %v3165_v54  ;;  %v3181_v48 = vadd.f32 6.0, %v158_v8  ;;  %v3183_v47 = vadd.f32 6.0, %v159_v49  ;;  %v3185_v13 = vadd.f32 6.0, %v160_v18  ;;  %v3187_v60 = vadd.f32 6.0, %v161_v17 }
  0x4d   :  { %8130 = vst [vmem:[#allocation125_spill] sm:$0xff] %v3167_v61  ;;  %8131 = vst [vmem:[#allocation126_spill] sm:$0xff] %v3169_v30  ;;  %v8201_v11 = vld [vmem:[#allocation105_spill] sm:$0xff]  ;;  %v8204_v23 = vld [vmem:[#allocation108_spill] sm:$0xff]  ;;  %v8289_v2 = vand.u32 2147483647, %v2933_v14 }
  0x4e   :  { %8132 = vst [vmem:[#allocation127_spill] sm:$0xff] %v3171_v29  ;;  %8133 = vst [vmem:[#allocation128_spill] sm:$0xff] %v3173_v1  ;;  %v8205_v24 = vld [vmem:[#allocation109_spill] sm:$0xff]  ;;  %v8210_v6 = vld [vmem:[#allocation114_spill] sm:$0xff]  ;;  %v8290_v37 = vand.u32 2147483647, %v2935_v15 }
  0x4f   :  { %8134 = vst [vmem:[#allocation129_spill] sm:$0xff] %v3175_v36  ;;  %8135 = vst [vmem:[#allocation130_spill] sm:$0xff] %v3177_v7  ;;  %v8211_v10 = vld [vmem:[#allocation115_spill] sm:$0xff]  ;;  %v8272_v52 = vld [vmem:[#allocation94_spill] sm:$0xff]  ;;  %v546_v30 = vsub.f32 0.0, %v8289_v2  ;;  %s2892_s14 = scalar_lea.vmem %s2347_s13, 128 }
  0x50   :  { %8136 = vst [vmem:[#allocation131_spill] sm:$0xff] %v3179_v42  ;;  %8137 = vst [vmem:[#allocation132_spill] sm:$0xff] %v3181_v48  ;;  %v8275_v58 = vld [vmem:[#allocation97_spill] sm:$0xff]  ;;  %v8276_v62 = vld [vmem:[#allocation98_spill] sm:$0xff]  ;;  %v547_v9 = vsub.f32 0.0, %v8290_v37  ;;  %p2893_p5 = scmp.ne.s32.totalorder %s2347_s13, %s2892_s14  ;;  %p2898_p7 = scmp.lt.s32.totalorder %s2892_s14, %s2892_s14 }
  0x51   :  { %8138 = vst [vmem:[#allocation133_spill] sm:$0xff] %v3183_v47  ;;  %8139 = vst [vmem:[#allocation134_spill] sm:$0xff] %v3185_v13  ;;  %v8208_v13 = vld [vmem:[#allocation112_spill] sm:$0xff]  ;;  %v8209_v47 = vld [vmem:[#allocation113_spill] sm:$0xff]  ;;  %v8291_v8 = vand.u32 2147483647, %v2937_v16 }
  0x52   :  { %8140 = vst [vmem:[#allocation135_spill] sm:$0xff] %v3187_v60  ;;  %v8207_v60 = vld [vmem:[#allocation111_spill] sm:$0xff]  ;;  %v8278_v0 = vld [vmem:[#allocation100_spill] sm:$0xff]  ;;  %v8279_v4 = vld [vmem:[#allocation101_spill] sm:$0xff]  ;;  %v8292_v49 = vand.u32 2147483647, %v2939_v20  ;;  %p2899_p8 = por %p2898_p7, %p2897_p6 }
  0x53   :  { %v8280_v5 = vld [vmem:[#allocation102_spill] sm:$0xff]  ;;  %v8281_v50 = vld [vmem:[#allocation103_spill] sm:$0xff]  ;;  %v8282_v51 = vld [vmem:[#allocation104_spill] sm:$0xff]  ;;  %v548_v36 = vsub.f32 0.0, %v8291_v8  ;;  %v8293_v17 = vand.u32 2147483647, %v2941_v21 }
  0x54   :  { %v8283_v56 = vld [vmem:[#allocation106_spill] sm:$0xff]  ;;  %v8284_v57 = vld [vmem:[#allocation107_spill] sm:$0xff]  ;;  %v549_v18 = vsub.f32 0.0, %v8292_v49  ;;  %v8294_v25 = vand.u32 2147483647, %v2943_v22  ;;  %v8311_v14 = vld [vmem:[#allocation28_spill] sm:$0xff]  ;;  %p2900_p9 = pnand %p2899_p8, %p2893_p5 }
  0x55   :  { %v8285_v63 = vld [vmem:[#allocation110_spill] sm:$0xff]  ;;  %v3452_v48 = vsub.f32 0.0, %v8293_v17  ;;  %v8295_v3 = vand.u32 2147483647, %v2945_v26  ;;  %v8296_v37 = vand.u32 2147483647, %v2947_v27 }
  0x56   :  { %v3456_v59 = vsub.f32 0.0, %v8294_v25  ;;  %v8297_v8 = vand.u32 2147483647, %v2949_v28  ;;  %v8298_v49 = vand.u32 2147483647, %v2951_v32  ;;  %v8307_v21 = vld [vmem:[#allocation26_spill] sm:$0xff] }
  0x57   :  { %v3460_v2 = vsub.f32 0.0, %v8295_v3  ;;  %v3464_v15 = vsub.f32 0.0, %v8296_v37  ;;  %v8299_v22 = vand.u32 2147483647, %v2953_v33  ;;  %v8300_v26 = vand.u32 2147483647, %v2955_v34 }
  0x58   :  { %v3468_v20 = vsub.f32 0.0, %v8297_v8  ;;  %v3472_v17 = vsub.f32 0.0, %v8298_v49  ;;  %v8301_v27 = vand.u32 2147483647, %v2957_v38  ;;  %v8302_v28 = vand.u32 2147483647, %v2959_v39 }
  0x59   :  { %v3476_v25 = vsub.f32 0.0, %v8299_v22  ;;  %v3480_v3 = vsub.f32 0.0, %v8300_v26  ;;  %v8303_v32 = vand.u32 2147483647, %v2961_v40  ;;  %v8304_v33 = vand.u32 2147483647, %v2963_v44 }
  0x5a   :  { %v3484_v37 = vsub.f32 0.0, %v8301_v27  ;;  %v3488_v8 = vsub.f32 0.0, %v8302_v28  ;;  %v8305_v34 = vand.u32 2147483647, %v2965_v45  ;;  %v8306_v38 = vand.u32 2147483647, %v2967_v46 }
  0x5b   :  { %v3492_v49 = vsub.f32 0.0, %v8303_v32  ;;  %v3496_v22 = vsub.f32 0.0, %v8304_v33  ;;  %v8308_v39 = vand.u32 2147483647, %v8307_v21  ;;  %v8309_v16 = vld [vmem:[#allocation27_spill] sm:$0xff]  ;;  %v8313_v54 = vld [vmem:[#allocation29_spill] sm:$0xff] }
  0x5c   :  { %v3500_v26 = vsub.f32 0.0, %v8305_v34  ;;  %v3504_v27 = vsub.f32 0.0, %v8306_v38  ;;  %v8310_v40 = vand.u32 2147483647, %v8309_v16  ;;  %v8312_v44 = vand.u32 2147483647, %v8311_v14 }
  0x5d   :  { %v3508_v28 = vsub.f32 0.0, %v8308_v39  ;;  %v8314_v45 = vand.u32 2147483647, %v8313_v54  ;;  %v8315_v53 = vld [vmem:[#allocation30_spill] sm:$0xff]  ;;  %v8317_v55 = vld [vmem:[#allocation31_spill] sm:$0xff]  ;;  %v8319_v42 = vld [vmem:[#allocation32_spill] sm:$0xff] }
  0x5e   :  { %v3512_v32 = vsub.f32 0.0, %v8310_v40  ;;  %v3516_v33 = vsub.f32 0.0, %v8312_v44  ;;  %v8316_v46 = vand.u32 2147483647, %v8315_v53  ;;  %v8318_v21 = vand.u32 2147483647, %v8317_v55 }
  0x5f   :  { %v3520_v34 = vsub.f32 0.0, %v8314_v45  ;;  %v8320_v16 = vand.u32 2147483647, %v8319_v42  ;;  %v8321_v7 = vld [vmem:[#allocation33_spill] sm:$0xff]  ;;  %v8323_v1 = vld [vmem:[#allocation34_spill] sm:$0xff]  ;;  %v8325_v29 = vld [vmem:[#allocation35_spill] sm:$0xff] }
  0x60   :  { %v3524_v38 = vsub.f32 0.0, %v8316_v46  ;;  %v3528_v39 = vsub.f32 0.0, %v8318_v21  ;;  %v8322_v14 = vand.u32 2147483647, %v8321_v7  ;;  %v8324_v54 = vand.u32 2147483647, %v8323_v1 }
  0x61   :  { %v3532_v40 = vsub.f32 0.0, %v8320_v16  ;;  %v8326_v53 = vand.u32 2147483647, %v8325_v29  ;;  %v8328_v61 = vld [vmem:[#allocation36_spill] sm:$0xff]  ;;  %v8331_v31 = vld [vmem:[#allocation37_spill] sm:$0xff]  ;;  %v8334_v41 = vld [vmem:[#allocation38_spill] sm:$0xff] }
  0x62   :  { %v3536_v44 = vsub.f32 0.0, %v8322_v14  ;;  %v3540_v45 = vsub.f32 0.0, %v8324_v54  ;;  %v8329_v55 = vand.u32 2147483647, %v8328_v61  ;;  %v8332_v42 = vand.u32 2147483647, %v8331_v31 }
  0x63   :  { %v3544_v46 = vsub.f32 0.0, %v8326_v53  ;;  %v8335_v7 = vand.u32 2147483647, %v8334_v41  ;;  %v8337_v43 = vld [vmem:[#allocation39_spill] sm:$0xff]  ;;  %v8340_v19 = vld [vmem:[#allocation40_spill] sm:$0xff] }
  0x64   :  { %v3548_v21 = vsub.f32 0.0, %v8329_v55  ;;  %v3552_v16 = vsub.f32 0.0, %v8332_v42  ;;  %v8338_v1 = vand.u32 2147483647, %v8337_v43  ;;  %v8341_v29 = vand.u32 2147483647, %v8340_v19 }
  0x65   :  { %8327 = vst [vmem:[#allocation136_spill] sm:$0xff] %v3544_v46  ;;  %v3556_v14 = vsub.f32 0.0, %v8335_v7  ;;  %v8343_v46 = vld [vmem:[#allocation41_spill] sm:$0xff] }
  0x66   :  { %8330 = vst [vmem:[#allocation137_spill] sm:$0xff] %v3548_v21  ;;  %8333 = vst [vmem:[#allocation138_spill] sm:$0xff] %v3552_v16  ;;  %v3560_v54 = vsub.f32 0.0, %v8338_v1  ;;  %v3564_v53 = vsub.f32 0.0, %v8341_v29  ;;  %v8344_v61 = vand.u32 2147483647, %v8343_v46 }
  0x67   :  { %8336 = vst [vmem:[#allocation139_spill] sm:$0xff] %v3556_v14  ;;  %v8346_v21 = vld [vmem:[#allocation42_spill] sm:$0xff]  ;;  %v8349_v16 = vld [vmem:[#allocation43_spill] sm:$0xff]  ;;  %v8352_v14 = vld [vmem:[#allocation44_spill] sm:$0xff] }
  0x68   :  { %8339 = vst [vmem:[#allocation140_spill] sm:$0xff] %v3560_v54  ;;  %8342 = vst [vmem:[#allocation141_spill] sm:$0xff] %v3564_v53  ;;  %v3568_v55 = vsub.f32 0.0, %v8344_v61  ;;  %v8347_v31 = vand.u32 2147483647, %v8346_v21  ;;  %v8355_v54 = vld [vmem:[#allocation45_spill] sm:$0xff] }
  0x69   :  { %v8350_v41 = vand.u32 2147483647, %v8349_v16  ;;  %v8353_v43 = vand.u32 2147483647, %v8352_v14  ;;  %v8356_v19 = vand.u32 2147483647, %v8355_v54 }
  0x6a   :  { %8345 = vst [vmem:[#allocation142_spill] sm:$0xff] %v3568_v55  ;;  %v3572_v42 = vsub.f32 0.0, %v8347_v31  ;;  %v8358_v53 = vld [vmem:[#allocation46_spill] sm:$0xff]  ;;  %v8361_v55 = vld [vmem:[#allocation47_spill] sm:$0xff] }
  0x6b   :  { %v3576_v7 = vsub.f32 0.0, %v8350_v41  ;;  %v3580_v1 = vsub.f32 0.0, %v8353_v43  ;;  %v3584_v29 = vsub.f32 0.0, %v8356_v19  ;;  %v8359_v46 = vand.u32 2147483647, %v8358_v53 }
  0x6c   :  { %8348 = vst [vmem:[#allocation143_spill] sm:$0xff] %v3572_v42  ;;  %v8362_v21 = vand.u32 2147483647, %v8361_v55  ;;  %v8364_v42 = vld [vmem:[#allocation48_spill] sm:$0xff] }
  0x6d   :  { %8351 = vst [vmem:[#allocation144_spill] sm:$0xff] %v3576_v7  ;;  %8354 = vst [vmem:[#allocation145_spill] sm:$0xff] %v3580_v1  ;;  %v3588_v61 = vsub.f32 0.0, %v8359_v46  ;;  %v8365_v16 = vand.u32 2147483647, %v8364_v42  ;;  %v8367_v7 = vld [vmem:[#allocation49_spill] sm:$0xff] }
  0x6e   :  { %8357 = vst [vmem:[#allocation146_spill] sm:$0xff] %v3584_v29  ;;  %v3592_v31 = vsub.f32 0.0, %v8362_v21  ;;  %v8368_v14 = vand.u32 2147483647, %v8367_v7  ;;  %v8370_v1 = vld [vmem:[#allocation50_spill] sm:$0xff]  ;;  %v8373_v29 = vld [vmem:[#allocation51_spill] sm:$0xff] }
  0x6f   :  { %8360 = vst [vmem:[#allocation147_spill] sm:$0xff] %v3588_v61  ;;  %v3596_v41 = vsub.f32 0.0, %v8365_v16  ;;  %v8371_v54 = vand.u32 2147483647, %v8370_v1  ;;  %v8374_v53 = vand.u32 2147483647, %v8373_v29 }
  0x70   :  { %8363 = vst [vmem:[#allocation148_spill] sm:$0xff] %v3592_v31  ;;  %v3600_v43 = vsub.f32 0.0, %v8368_v14  ;;  %v8376_v61 = vld [vmem:[#allocation52_spill] sm:$0xff]  ;;  %v8379_v31 = vld [vmem:[#allocation53_spill] sm:$0xff] }
  0x71   :  { %8366 = vst [vmem:[#allocation149_spill] sm:$0xff] %v3596_v41  ;;  %v3604_v19 = vsub.f32 0.0, %v8371_v54  ;;  %v3608_v46 = vsub.f32 0.0, %v8374_v53  ;;  %v8377_v55 = vand.u32 2147483647, %v8376_v61  ;;  %v8382_v41 = vld [vmem:[#allocation54_spill] sm:$0xff] }
  0x72   :  { %8369 = vst [vmem:[#allocation150_spill] sm:$0xff] %v3600_v43  ;;  %v8380_v42 = vand.u32 2147483647, %v8379_v31  ;;  %v8383_v7 = vand.u32 2147483647, %v8382_v41  ;;  %v8385_v43 = vld [vmem:[#allocation55_spill] sm:$0xff] }
  0x73   :  { %8372 = vst [vmem:[#allocation151_spill] sm:$0xff] %v3604_v19  ;;  %8375 = vst [vmem:[#allocation152_spill] sm:$0xff] %v3608_v46  ;;  %v3612_v21 = vsub.f32 0.0, %v8377_v55  ;;  %v8386_v1 = vand.u32 2147483647, %v8385_v43  ;;  %v8388_v19 = vld [vmem:[#allocation56_spill] sm:$0xff] }
  0x74   :  { %v3616_v16 = vsub.f32 0.0, %v8380_v42  ;;  %v3620_v14 = vsub.f32 0.0, %v8383_v7  ;;  %v8389_v29 = vand.u32 2147483647, %v8388_v19  ;;  %v8391_v46 = vld [vmem:[#allocation57_spill] sm:$0xff] }
  0x75   :  { %8378 = vst [vmem:[#allocation153_spill] sm:$0xff] %v3612_v21  ;;  %v3624_v54 = vsub.f32 0.0, %v8386_v1  ;;  %v8392_v61 = vand.u32 2147483647, %v8391_v46  ;;  %v8394_v21 = vld [vmem:[#allocation58_spill] sm:$0xff]  ;;  %v8403_v19 = vld [vmem:[#allocation61_spill] sm:$0xff] }
  0x76   :  { %8381 = vst [vmem:[#allocation154_spill] sm:$0xff] %v3616_v16  ;;  %8384 = vst [vmem:[#allocation155_spill] sm:$0xff] %v3620_v14  ;;  %v3628_v53 = vsub.f32 0.0, %v8389_v29  ;;  %v8395_v31 = vand.u32 2147483647, %v8394_v21  ;;  %v8397_v16 = vld [vmem:[#allocation59_spill] sm:$0xff] }
  0x77   :  { %8387 = vst [vmem:[#allocation156_spill] sm:$0xff] %v3624_v54  ;;  %v3632_v55 = vsub.f32 0.0, %v8392_v61  ;;  %v8398_v41 = vand.u32 2147483647, %v8397_v16  ;;  %v8400_v14 = vld [vmem:[#allocation60_spill] sm:$0xff]  ;;  %v8406_v46 = vld [vmem:[#allocation62_spill] sm:$0xff] }
  0x78   :  { %8390 = vst [vmem:[#allocation157_spill] sm:$0xff] %v3628_v53  ;;  %v3636_v42 = vsub.f32 0.0, %v8395_v31  ;;  %v8401_v43 = vand.u32 2147483647, %v8400_v14  ;;  %v674_v54 = vmul.f32 1.442695, %v546_v30 }
  0x79   :  { %8393 = vst [vmem:[#allocation158_spill] sm:$0xff] %v3632_v55  ;;  %v3640_v7 = vsub.f32 0.0, %v8398_v41  ;;  %v8404_v29 = vand.u32 2147483647, %v8403_v19  ;;  %v8407_v61 = vand.u32 2147483647, %v8406_v46 }
  0x7a   :  { %8396 = vst [vmem:[#allocation159_spill] sm:$0xff] %v3636_v42  ;;  %v3644_v1 = vsub.f32 0.0, %v8401_v43  ;;  %v8409_v21 = vld [vmem:[#allocation63_spill] sm:$0xff]  ;;  %v676_v16 = vmul.f32 1.442695, %v547_v9  ;;  %v8412_v41 = vld [vmem:[#allocation64_spill] sm:$0xff]  ;;  %2360 = vpow2.f32 %v674_v54 }
  0x7b   :  { %8399 = vst [vmem:[#allocation160_spill] sm:$0xff] %v3640_v7  ;;  %v3648_v53 = vsub.f32 0.0, %v8404_v29  ;;  %v3652_v55 = vsub.f32 0.0, %v8407_v61  ;;  %v8410_v31 = vand.u32 2147483647, %v8409_v21  ;;  %v8415_v43 = vld [vmem:[#allocation65_spill] sm:$0xff] }
  0x7c   :  { %8402 = vst [vmem:[#allocation161_spill] sm:$0xff] %v3644_v1  ;;  %v8413_v7 = vand.u32 2147483647, %v8412_v41  ;;  %v8416_v14 = vand.u32 2147483647, %v8415_v43  ;;  %v8418_v19 = vld [vmem:[#allocation66_spill] sm:$0xff]  ;;  %2362 = vpow2.f32 %v676_v16 }
  0x7d   :  { %8405 = vst [vmem:[#allocation162_spill] sm:$0xff] %v3648_v53  ;;  %8408 = vst [vmem:[#allocation163_spill] sm:$0xff] %v3652_v55  ;;  %v3656_v42 = vsub.f32 0.0, %v8410_v31  ;;  %v8419_v29 = vand.u32 2147483647, %v8418_v19  ;;  %v8420_v61 = vld [vmem:[#allocation67_spill] sm:$0xff] }
  0x7e   :  { %v3660_v12 = vsub.f32 0.0, %v8413_v7  ;;  %v3664_v30 = vsub.f32 0.0, %v8416_v14  ;;  %v678_v46 = vmul.f32 1.442695, %v548_v36  ;;  %v8421_v55 = vand.u32 2147483647, %v8420_v61 }
  0x7f   :  { %8411 = vst [vmem:[#allocation164_spill] sm:$0xff] %v3656_v42  ;;  %v3668_v53 = vsub.f32 0.0, %v8419_v29  ;;  %v8422_v31 = vld [vmem:[#allocation68_spill] sm:$0xff]  ;;  %v8425_v41 = vld [vmem:[#allocation69_spill] sm:$0xff]  ;;  %v680_v43 = vmul.f32 1.442695, %v549_v18 }
  0x80   :  { %8414 = vst [vmem:[#allocation165_spill] sm:$0xff] %v3660_v12  ;;  %8417 = vst [vmem:[#allocation166_spill] sm:$0xff] %v3664_v30  ;;  %v3672_v1 = vsub.f32 0.0, %v8421_v55  ;;  %v8423_v21 = vand.u32 2147483647, %v8422_v31  ;;  %v8427_v14 = vld [vmem:[#allocation70_spill] sm:$0xff]  ;;  %2364 = vpow2.f32 %v678_v46 }
  0x81   :  { %v8426_v7 = vand.u32 2147483647, %v8425_v41  ;;  %v8428_v30 = vand.u32 2147483647, %v8427_v14  ;;  %v8430_v29 = vld [vmem:[#allocation71_spill] sm:$0xff]  ;;  %v8432_v61 = vld [vmem:[#allocation72_spill] sm:$0xff]  ;;  %2366 = vpow2.f32 %v680_v43 }
  0x82   :  { %v3676_v9 = vsub.f32 0.0, %v8423_v21  ;;  %v8431_v19 = vand.u32 2147483647, %v8430_v29  ;;  %v682_v55 = vmul.f32 1.442695, %v3452_v48 }
  0x83   :  { %v3680_v12 = vsub.f32 0.0, %v8426_v7  ;;  %v3684_v42 = vsub.f32 0.0, %v8428_v30  ;;  %v8433_v31 = vand.u32 2147483647, %v8432_v61  ;;  %v684_v18 = vmul.f32 1.442695, %v3456_v59 }
  0x84   :  { %8424 = vst [vmem:[#allocation167_spill] sm:$0xff] %v3676_v9  ;;  %v3688_v36 = vsub.f32 0.0, %v8431_v19  ;;  %v8435_v9 = vld [vmem:[#allocation73_spill] sm:$0xff]  ;;  %v8437_v30 = vld [vmem:[#allocation74_spill] sm:$0xff]  ;;  %v8440_v19 = vld [vmem:[#allocation75_spill] sm:$0xff]  ;;  %2368 = vpow2.f32 %v682_v55 }
  0x85   :  { %8429 = vst [vmem:[#allocation168_spill] sm:$0xff] %v3684_v42  ;;  %v3693_v21 = vsub.f32 0.0, %v8433_v31  ;;  %v8436_v41 = vand.u32 2147483647, %v8435_v9  ;;  %v8438_v14 = vand.u32 2147483647, %v8437_v30  ;;  %2370 = vpow2.f32 %v684_v18 }
  0x86   :  { %v8441_v29 = vand.u32 2147483647, %v8440_v19  ;;  %v686_v48 = vmul.f32 1.442695, %v3460_v2  ;;  %v8442_v31 = vld [vmem:[#allocation76_spill] sm:$0xff] }
  0x87   :  { %8434 = vst [vmem:[#allocation169_spill] sm:$0xff] %v3693_v21  ;;  %v3697_v7 = vsub.f32 0.0, %v8436_v41  ;;  %v3702_v42 = vsub.f32 0.0, %v8438_v14  ;;  %v8443_v61 = vand.u32 2147483647, %v8442_v31  ;;  %v8445_v41 = vld [vmem:[#allocation77_spill] sm:$0xff] }
  0x88   :  { %v3706_v54 = vsub.f32 0.0, %v8441_v29  ;;  %v8446_v9 = vand.u32 2147483647, %v8445_v41  ;;  %v688_v59 = vmul.f32 1.442695, %v3464_v15  ;;  %v8447_v14 = vld [vmem:[#allocation78_spill] sm:$0xff]  ;;  %2372 = vpow2.f32 %v686_v48 }
  0x89   :  { %8439 = vst [vmem:[#allocation170_spill] sm:$0xff] %v3702_v42  ;;  %v3711_v21 = vsub.f32 0.0, %v8443_v61  ;;  %v8448_v30 = vand.u32 2147483647, %v8447_v14  ;;  %v8450_v29 = vld [vmem:[#allocation79_spill] sm:$0xff]  ;;  %v8452_v61 = vld [vmem:[#allocation80_spill] sm:$0xff] }
  0x8a   :  { %v3715_v16 = vsub.f32 0.0, %v8446_v9  ;;  %v8451_v19 = vand.u32 2147483647, %v8450_v29  ;;  %v690_v2 = vmul.f32 1.442695, %v3468_v20  ;;  %v8455_v9 = vld [vmem:[#allocation81_spill] sm:$0xff]  ;;  %2374 = vpow2.f32 %v688_v59 }
  0x8b   :  { %8444 = vst [vmem:[#allocation171_spill] sm:$0xff] %v3711_v21  ;;  %v3720_v42 = vsub.f32 0.0, %v8448_v30  ;;  %v8453_v31 = vand.u32 2147483647, %v8452_v61  ;;  %v8456_v41 = vand.u32 2147483647, %v8455_v9 }
  0x8c   :  { %v3724_v46 = vsub.f32 0.0, %v8451_v19  ;;  %v692_v15 = vmul.f32 1.442695, %v3472_v17  ;;  %v8457_v30 = vld [vmem:[#allocation82_spill] sm:$0xff]  ;;  %v8460_v19 = vld [vmem:[#allocation83_spill] sm:$0xff]  ;;  %2376 = vpow2.f32 %v690_v2 }
  0x8d   :  { %8449 = vst [vmem:[#allocation172_spill] sm:$0xff] %v3720_v42  ;;  %v3729_v21 = vsub.f32 0.0, %v8453_v31  ;;  %v3733_v43 = vsub.f32 0.0, %v8456_v41  ;;  %v8458_v14 = vand.u32 2147483647, %v8457_v30  ;;  %v8462_v31 = vld [vmem:[#allocation84_spill] sm:$0xff] }
  0x8e   :  { %v8461_v29 = vand.u32 2147483647, %v8460_v19  ;;  %v694_v20 = vmul.f32 1.442695, %v3476_v25  ;;  %v8463_v61 = vand.u32 2147483647, %v8462_v31  ;;  %2378 = vpow2.f32 %v692_v15 }
  0x8f   :  { %8454 = vst [vmem:[#allocation173_spill] sm:$0xff] %v3729_v21  ;;  %v3738_v42 = vsub.f32 0.0, %v8458_v14  ;;  %v8465_v41 = vld [vmem:[#allocation85_spill] sm:$0xff]  ;;  %v696_v17 = vmul.f32 1.442695, %v3480_v3  ;;  %v8467_v14 = vld [vmem:[#allocation86_spill] sm:$0xff] }
  0x90   :  { %v3742_v55 = vsub.f32 0.0, %v8461_v29  ;;  %v3747_v21 = vsub.f32 0.0, %v8463_v61  ;;  %v8466_v9 = vand.u32 2147483647, %v8465_v41  ;;  %v8468_v30 = vand.u32 2147483647, %v8467_v14 }
  0x91   :  { %8459 = vst [vmem:[#allocation174_spill] sm:$0xff] %v3738_v42  ;;  %v8470_v29 = vld [vmem:[#allocation87_spill] sm:$0xff]  ;;  %v698_v25 = vmul.f32 1.442695, %v3484_v37  ;;  %v8472_v61 = vld [vmem:[#allocation88_spill] sm:$0xff]  ;;  %2380 = vpow2.f32 %v694_v20 }
  0x92   :  { %8464 = vst [vmem:[#allocation175_spill] sm:$0xff] %v3747_v21  ;;  %v3751_v18 = vsub.f32 0.0, %v8466_v9  ;;  %v3756_v42 = vsub.f32 0.0, %v8468_v30  ;;  %v8471_v19 = vand.u32 2147483647, %v8470_v29  ;;  %v8475_v9 = vld [vmem:[#allocation89_spill] sm:$0xff]  ;;  %2382 = vpow2.f32 %v696_v17 }
  0x93   :  { %v8473_v31 = vand.u32 2147483647, %v8472_v61  ;;  %v8476_v41 = vand.u32 2147483647, %v8475_v9  ;;  %v700_v3 = vmul.f32 1.442695, %v3488_v8  ;;  %2384 = vpow2.f32 %v698_v25 }
  0x94   :  { %8469 = vst [vmem:[#allocation176_spill] sm:$0xff] %v3756_v42  ;;  %v3760_v48 = vsub.f32 0.0, %v8471_v19  ;;  %v8477_v30 = vld [vmem:[#allocation90_spill] sm:$0xff]  ;;  %v8479_v19 = vld [vmem:[#allocation91_spill] sm:$0xff]  ;;  %v702_v37 = vmul.f32 1.442695, %v3492_v49 }
  0x95   :  { %v3765_v21 = vsub.f32 0.0, %v8473_v31  ;;  %v3769_v59 = vsub.f32 0.0, %v8476_v41  ;;  %v8478_v14 = vand.u32 2147483647, %v8477_v30  ;;  %v8480_v29 = vand.u32 2147483647, %v8479_v19 }
  0x96   :  { %v8481_v31 = vld [vmem:[#allocation92_spill] sm:$0xff]  ;;  %v8483_v41 = vld [vmem:[#allocation93_spill] sm:$0xff]  ;;  %v704_v8 = vmul.f32 1.442695, %v3496_v22  ;;  %v706_v49 = vmul.f32 1.442695, %v3500_v26  ;;  %2386 = vpow2.f32 %v700_v3 }
  0x97   :  { %8474 = vst [vmem:[#allocation177_spill] sm:$0xff] %v3765_v21  ;;  %v3774_v42 = vsub.f32 0.0, %v8478_v14  ;;  %v3778_v2 = vsub.f32 0.0, %v8480_v29  ;;  %v8482_v61 = vand.u32 2147483647, %v8481_v31  ;;  %v8486_v29 = vld [vmem:[#allocation95_spill] sm:$0xff]  ;;  %2388 = vpow2.f32 %v702_v37 }
  0x98   :  { %v8484_v9 = vand.u32 2147483647, %v8483_v41  ;;  %v8485_v14 = vand.u32 2147483647, %v8272_v52  ;;  %v8487_v19 = vand.u32 2147483647, %v8486_v29  ;;  %2390 = vpow2.f32 %v704_v8 }
  0x99   :  { %v3783_v21 = vsub.f32 0.0, %v8482_v61  ;;  %v3799_v61 = vpop.eup %2360  ;;  %v8489_v31 = vld [vmem:[#allocation96_spill] sm:$0xff]  ;;  %v8491_v17 = vand.u32 2147483647, %v8275_v58  ;;  %v8494_v26 = vld [vmem:[#allocation99_spill] sm:$0xff]  ;;  %2392 = vpow2.f32 %v706_v49 }
  0x9a   :  { %v3787_v15 = vsub.f32 0.0, %v8484_v9  ;;  %v3792_v30 = vsub.f32 0.0, %v8485_v14  ;;  %v3796_v20 = vsub.f32 0.0, %v8487_v19  ;;  %8488 = vst [vmem:[#allocation178_spill] sm:$0xff] %v3799_v61  ;;  %v8490_v41 = vand.u32 2147483647, %v8489_v31  ;;  %v3810_v52 = vpop.eup %2362 }
  0x9b   :  { %v3807_v22 = vsub.f32 0.0, %v8491_v17  ;;  %v708_v14 = vmul.f32 1.442695, %v3504_v27  ;;  %8492 = vst [vmem:[#allocation179_spill] sm:$0xff] %v3810_v52  ;;  %v8493_v19 = vand.u32 2147483647, %v8276_v62  ;;  %v3821_v31 = vpop.eup %2364 }
  0x9c   :  { %v3803_v9 = vsub.f32 0.0, %v8490_v41  ;;  %v8495_v29 = vand.u32 2147483647, %v8494_v26  ;;  %v710_v41 = vmul.f32 1.442695, %v3508_v28  ;;  %8496 = vst [vmem:[#allocation180_spill] sm:$0xff] %v3821_v31  ;;  %v3832_v62 = vpop.eup %2366 }
  0x9d   :  { %v3814_v25 = vsub.f32 0.0, %v8493_v19  ;;  %v8497_v17 = vand.u32 2147483647, %v8278_v0  ;;  %v8498_v27 = vand.u32 2147483647, %v8279_v4  ;;  %8499 = vst [vmem:[#allocation181_spill] sm:$0xff] %v3832_v62  ;;  %v3843_v0 = vpop.eup %2368  ;;  %2394 = vpow2.f32 %v708_v14 }
  0x9e   :  { %v3818_v61 = vsub.f32 0.0, %v8495_v29  ;;  %v712_v19 = vmul.f32 1.442695, %v3512_v32  ;;  %v8500_v29 = vand.u32 2147483647, %v8280_v5  ;;  %8502 = vst [vmem:[#allocation182_spill] sm:$0xff] %v3843_v0  ;;  %v3854_v5 = vpop.eup %2370  ;;  %2396 = vpow2.f32 %v710_v41 }
  0x9f   :  { %v3825_v3 = vsub.f32 0.0, %v8497_v17  ;;  %v3829_v58 = vsub.f32 0.0, %v8498_v27  ;;  %v8501_v28 = vand.u32 2147483647, %v8281_v50  ;;  %v714_v17 = vmul.f32 1.442695, %v3516_v33 }
  0xa0   :  { %v3836_v37 = vsub.f32 0.0, %v8500_v29  ;;  %v8503_v27 = vand.u32 2147483647, %v8282_v51  ;;  %v8504_v32 = vand.u32 2147483647, %v8201_v11  ;;  %8505 = vst [vmem:[#allocation183_spill] sm:$0xff] %v3854_v5  ;;  %v3865_v51 = vpop.eup %2372  ;;  %2398 = vpow2.f32 %v712_v19 }
  0xa1   :  { %v3840_v26 = vsub.f32 0.0, %v8501_v28  ;;  %v716_v29 = vmul.f32 1.442695, %v3520_v34  ;;  %v8506_v28 = vand.u32 2147483647, %v8283_v56  ;;  %8508 = vst [vmem:[#allocation184_spill] sm:$0xff] %v3865_v51  ;;  %v3876_v56 = vpop.eup %2374  ;;  %2400 = vpow2.f32 %v714_v17 }
  0xa2   :  { %v3847_v8 = vsub.f32 0.0, %v8503_v27  ;;  %v3851_v4 = vsub.f32 0.0, %v8504_v32  ;;  %v8507_v33 = vand.u32 2147483647, %v8284_v57  ;;  %v718_v27 = vmul.f32 1.442695, %v3524_v38 }
  0xa3   :  { %v3858_v49 = vsub.f32 0.0, %v8506_v28  ;;  %v8509_v32 = vand.u32 2147483647, %v8204_v23  ;;  %v8510_v34 = vand.u32 2147483647, %v8205_v24  ;;  %8511 = vst [vmem:[#allocation185_spill] sm:$0xff] %v3876_v56  ;;  %v3887_v23 = vpop.eup %2376  ;;  %2402 = vpow2.f32 %v716_v29 }
  0xa4   :  { %v3862_v50 = vsub.f32 0.0, %v8507_v33  ;;  %v720_v28 = vmul.f32 1.442695, %v3528_v39  ;;  %v8512_v33 = vand.u32 2147483647, %v8285_v63  ;;  %8514 = vst [vmem:[#allocation186_spill] sm:$0xff] %v3887_v23  ;;  %v3898_v63 = vpop.eup %2378  ;;  %2404 = vpow2.f32 %v718_v27 }
  0xa5   :  { %v3869_v14 = vsub.f32 0.0, %v8509_v32  ;;  %v3873_v11 = vsub.f32 0.0, %v8510_v34  ;;  %v8513_v38 = vand.u32 2147483647, %v8207_v60  ;;  %v722_v32 = vmul.f32 1.442695, %v3532_v40 }
  0xa6   :  { %v3880_v41 = vsub.f32 0.0, %v8512_v33  ;;  %v8515_v34 = vand.u32 2147483647, %v8208_v13  ;;  %v8516_v39 = vand.u32 2147483647, %v8209_v47  ;;  %8517 = vst [vmem:[#allocation187_spill] sm:$0xff] %v3898_v63  ;;  %v3909_v13 = vpop.eup %2380  ;;  %2406 = vpow2.f32 %v720_v28 }
  0xa7   :  { %v3884_v57 = vsub.f32 0.0, %v8513_v38  ;;  %v724_v33 = vmul.f32 1.442695, %v3536_v44  ;;  %v8518_v38 = vand.u32 2147483647, %v8210_v6  ;;  %8521 = vst [vmem:[#allocation189_spill] sm:$0xff] %v3909_v13  ;;  %v3920_v23 = vpop.eup %2382  ;;  %2408 = vpow2.f32 %v722_v32 }
  0xa8   :  { %v3891_v19 = vsub.f32 0.0, %v8515_v34  ;;  %v3895_v24 = vsub.f32 0.0, %v8516_v39  ;;  %v8519_v40 = vand.u32 2147483647, %v8211_v10  ;;  %v726_v34 = vmul.f32 1.442695, %v3540_v45  ;;  %v3931_v51 = vpop.eup %2384 }
  0xa9   :  { %v3902_v17 = vsub.f32 0.0, %v8518_v38  ;;  %v8522_v39 = vand.u32 2147483647, %v3149_v35  ;;  %v8524_v44 = vld [vmem:[#allocation117_spill] sm:$0xff]  ;;  %v8527_v38 = vld [vmem:[#allocation136_spill] sm:$0xff]  ;;  %v8532_v45 = vld [vmem:[#allocation119_spill] sm:$0xff]  ;;  %2410 = vpow2.f32 %v724_v33  ;;  %v3942_v0 = vpop.eup %2386 }
  0xaa   :  { %v3906_v60 = vsub.f32 0.0, %v8519_v40  ;;  %v8525_v47 = vand.u32 2147483647, %v8524_v44  ;;  %v728_v6 = vmul.f32 1.442695, %v8527_v38  ;;  %8528 = vst [vmem:[#allocation136_spill] sm:$0xff] %v3920_v23  ;;  %2412 = vpow2.f32 %v726_v34  ;;  %v3953_v31 = vpop.eup %2388 }
  0xab   :  { %v3913_v29 = vsub.f32 0.0, %v8522_v39  ;;  %v8529_v40 = vld [vmem:[#allocation118_spill] sm:$0xff]  ;;  %v8533_v56 = vand.u32 2147483647, %v8532_v45  ;;  %v8535_v39 = vld [vmem:[#allocation137_spill] sm:$0xff] }
  0xac   :  { %8520 = vst [vmem:[#allocation188_spill] sm:$0xff] %v3906_v60  ;;  %v3917_v63 = vsub.f32 0.0, %v8525_v47  ;;  %v8530_v10 = vand.u32 2147483647, %v8529_v40  ;;  %v730_v35 = vmul.f32 1.442695, %v8535_v39  ;;  %2414 = vpow2.f32 %v728_v6 }
  0xad   :  { %8523 = vst [vmem:[#allocation190_spill] sm:$0xff] %v3913_v29  ;;  %v3928_v13 = vsub.f32 0.0, %v8533_v56  ;;  %8536 = vst [vmem:[#allocation137_spill] sm:$0xff] %v3931_v51  ;;  %v8537_v47 = vld [vmem:[#allocation120_spill] sm:$0xff]  ;;  %v8540_v38 = vld [vmem:[#allocation121_spill] sm:$0xff] }
  0xae   :  { %8526 = vst [vmem:[#allocation191_spill] sm:$0xff] %v3917_v63  ;;  %v3924_v27 = vsub.f32 0.0, %v8530_v10  ;;  %v8538_v44 = vand.u32 2147483647, %v8537_v47  ;;  %v8541_v5 = vand.u32 2147483647, %v8540_v38  ;;  %2416 = vpow2.f32 %v730_v35 }
  0xaf   :  { %8534 = vst [vmem:[#allocation193_spill] sm:$0xff] %v3928_v13  ;;  %v8543_v10 = vld [vmem:[#allocation138_spill] sm:$0xff]  ;;  %v8548_v39 = vld [vmem:[#allocation123_spill] sm:$0xff]  ;;  %v8619_v29 = vld [vmem:[#allocation160_spill] sm:$0xff] }
  0xb0   :  { %8531 = vst [vmem:[#allocation192_spill] sm:$0xff] %v3924_v27  ;;  %v3935_v28 = vsub.f32 0.0, %v8538_v44  ;;  %v3939_v23 = vsub.f32 0.0, %v8541_v5  ;;  %v732_v40 = vmul.f32 1.442695, %v8543_v10  ;;  %8544 = vst [vmem:[#allocation138_spill] sm:$0xff] %v3942_v0 }
  0xb1   :  { %v8545_v56 = vld [vmem:[#allocation122_spill] sm:$0xff]  ;;  %v8549_v62 = vand.u32 2147483647, %v8548_v39  ;;  %v8551_v44 = vld [vmem:[#allocation139_spill] sm:$0xff]  ;;  %v8553_v5 = vld [vmem:[#allocation124_spill] sm:$0xff] }
  0xb2   :  { %8539 = vst [vmem:[#allocation194_spill] sm:$0xff] %v3935_v28  ;;  %8542 = vst [vmem:[#allocation195_spill] sm:$0xff] %v3939_v23  ;;  %v8546_v45 = vand.u32 2147483647, %v8545_v56  ;;  %v734_v47 = vmul.f32 1.442695, %v8551_v44  ;;  %2418 = vpow2.f32 %v732_v40 }
  0xb3   :  { %v3950_v51 = vsub.f32 0.0, %v8549_v62  ;;  %8552 = vst [vmem:[#allocation139_spill] sm:$0xff] %v3953_v31  ;;  %v8554_v38 = vand.u32 2147483647, %v8553_v5  ;;  %v8556_v10 = vld [vmem:[#allocation125_spill] sm:$0xff]  ;;  %v8561_v62 = vld [vmem:[#allocation126_spill] sm:$0xff] }
  0xb4   :  { %v3946_v32 = vsub.f32 0.0, %v8546_v45  ;;  %v8557_v52 = vand.u32 2147483647, %v8556_v10  ;;  %v8559_v45 = vld [vmem:[#allocation140_spill] sm:$0xff]  ;;  %v8562_v39 = vand.u32 2147483647, %v8561_v62  ;;  %2420 = vpow2.f32 %v734_v47 }
  0xb5   :  { %8550 = vst [vmem:[#allocation197_spill] sm:$0xff] %v3950_v51  ;;  %v3957_v33 = vsub.f32 0.0, %v8554_v38  ;;  %v736_v56 = vmul.f32 1.442695, %v8559_v45  ;;  %v8564_v44 = vld [vmem:[#allocation127_spill] sm:$0xff]  ;;  %v8567_v38 = vld [vmem:[#allocation141_spill] sm:$0xff] }
  0xb6   :  { %8547 = vst [vmem:[#allocation196_spill] sm:$0xff] %v3946_v32  ;;  %v3961_v0 = vsub.f32 0.0, %v8557_v52  ;;  %v3964_v32 = vpop.eup %2390  ;;  %v3968_v34 = vsub.f32 0.0, %v8562_v39  ;;  %v8565_v51 = vand.u32 2147483647, %v8564_v44  ;;  %v8569_v52 = vld [vmem:[#allocation128_spill] sm:$0xff] }
  0xb7   :  { %8555 = vst [vmem:[#allocation198_spill] sm:$0xff] %v3957_v33  ;;  %8560 = vst [vmem:[#allocation140_spill] sm:$0xff] %v3964_v32  ;;  %v738_v5 = vmul.f32 1.442695, %v8567_v38  ;;  %v3975_v33 = vpop.eup %2392  ;;  %v8570_v10 = vand.u32 2147483647, %v8569_v52  ;;  %2422 = vpow2.f32 %v736_v56 }
  0xb8   :  { %8558 = vst [vmem:[#allocation199_spill] sm:$0xff] %v3961_v0  ;;  %8563 = vst [vmem:[#allocation200_spill] sm:$0xff] %v3968_v34  ;;  %v3972_v31 = vsub.f32 0.0, %v8565_v51  ;;  %v8572_v45 = vld [vmem:[#allocation129_spill] sm:$0xff]  ;;  %v8575_v39 = vld [vmem:[#allocation142_spill] sm:$0xff]  ;;  %v3986_v34 = vpop.eup %2394 }
  0xb9   :  { %8568 = vst [vmem:[#allocation141_spill] sm:$0xff] %v3975_v33  ;;  %v3979_v6 = vsub.f32 0.0, %v8570_v10  ;;  %v8573_v0 = vand.u32 2147483647, %v8572_v45  ;;  %v740_v62 = vmul.f32 1.442695, %v8575_v39  ;;  %2424 = vpow2.f32 %v738_v5 }
  0xba   :  { %8566 = vst [vmem:[#allocation201_spill] sm:$0xff] %v3972_v31  ;;  %8576 = vst [vmem:[#allocation142_spill] sm:$0xff] %v3986_v34  ;;  %v8577_v51 = vld [vmem:[#allocation130_spill] sm:$0xff]  ;;  %v8580_v38 = vld [vmem:[#allocation131_spill] sm:$0xff] }
  0xbb   :  { %8571 = vst [vmem:[#allocation202_spill] sm:$0xff] %v3979_v6  ;;  %v3983_v32 = vsub.f32 0.0, %v8573_v0  ;;  %v8578_v44 = vand.u32 2147483647, %v8577_v51  ;;  %v8581_v31 = vand.u32 2147483647, %v8580_v38  ;;  %v3997_v6 = vpop.eup %2396  ;;  %2426 = vpow2.f32 %v740_v62 }
  0xbc   :  { %v8583_v10 = vld [vmem:[#allocation143_spill] sm:$0xff]  ;;  %v8585_v0 = vld [vmem:[#allocation132_spill] sm:$0xff]  ;;  %v8588_v39 = vld [vmem:[#allocation133_spill] sm:$0xff] }
  0xbd   :  { %8574 = vst [vmem:[#allocation203_spill] sm:$0xff] %v3983_v32  ;;  %v3990_v35 = vsub.f32 0.0, %v8578_v44  ;;  %v3994_v33 = vsub.f32 0.0, %v8581_v31  ;;  %v742_v52 = vmul.f32 1.442695, %v8583_v10  ;;  %8584 = vst [vmem:[#allocation143_spill] sm:$0xff] %v3997_v6 }
  0xbe   :  { %v8586_v45 = vand.u32 2147483647, %v8585_v0  ;;  %v8589_v32 = vand.u32 2147483647, %v8588_v39  ;;  %v8591_v44 = vld [vmem:[#allocation144_spill] sm:$0xff]  ;;  %v8593_v31 = vld [vmem:[#allocation134_spill] sm:$0xff] }
  0xbf   :  { %8579 = vst [vmem:[#allocation204_spill] sm:$0xff] %v3990_v35  ;;  %8582 = vst [vmem:[#allocation205_spill] sm:$0xff] %v3994_v33  ;;  %v744_v51 = vmul.f32 1.442695, %v8591_v44  ;;  %v4008_v35 = vpop.eup %2398  ;;  %v8594_v38 = vand.u32 2147483647, %v8593_v31  ;;  %2428 = vpow2.f32 %v742_v52 }
  0xc0   :  { %v4001_v40 = vsub.f32 0.0, %v8586_v45  ;;  %v4005_v34 = vsub.f32 0.0, %v8589_v32  ;;  %8592 = vst [vmem:[#allocation144_spill] sm:$0xff] %v4008_v35  ;;  %v8596_v10 = vld [vmem:[#allocation135_spill] sm:$0xff]  ;;  %v8599_v45 = vld [vmem:[#allocation145_spill] sm:$0xff]  ;;  %v8601_v32 = vld [vmem:[#allocation146_spill] sm:$0xff] }
  0xc1   :  { %v4012_v47 = vsub.f32 0.0, %v8594_v38  ;;  %v8597_v33 = vand.u32 2147483647, %v8596_v10  ;;  %v746_v0 = vmul.f32 1.442695, %v8599_v45  ;;  %v8602_v39 = vld [vmem:[#allocation147_spill] sm:$0xff]  ;;  %2430 = vpow2.f32 %v744_v51 }
  0xc2   :  { %8587 = vst [vmem:[#allocation206_spill] sm:$0xff] %v4001_v40  ;;  %8590 = vst [vmem:[#allocation207_spill] sm:$0xff] %v4005_v34  ;;  %v4019_v40 = vpop.eup %2400  ;;  %v748_v56 = vmul.f32 1.442695, %v8601_v32  ;;  %v750_v44 = vmul.f32 1.442695, %v8602_v39 }
  0xc3   :  { %8595 = vst [vmem:[#allocation208_spill] sm:$0xff] %v4012_v47  ;;  %v4016_v6 = vsub.f32 0.0, %v8597_v33  ;;  %8600 = vst [vmem:[#allocation145_spill] sm:$0xff] %v4019_v40  ;;  %v8603_v34 = vld [vmem:[#allocation148_spill] sm:$0xff]  ;;  %v4024_v23 = vpop.eup %2402  ;;  %v8605_v38 = vld [vmem:[#allocation149_spill] sm:$0xff]  ;;  %2432 = vpow2.f32 %v746_v0 }
  0xc4   :  { %v752_v35 = vmul.f32 1.442695, %v8603_v34  ;;  %8604 = vst [vmem:[#allocation146_spill] sm:$0xff] %v4024_v23  ;;  %v754_v31 = vmul.f32 1.442695, %v8605_v38  ;;  %v8606_v10 = vld [vmem:[#allocation150_spill] sm:$0xff]  ;;  %v4029_v47 = vpop.eup %2404  ;;  %2434 = vpow2.f32 %v748_v56 }
  0xc5   :  { %8598 = vst [vmem:[#allocation209_spill] sm:$0xff] %v4016_v6  ;;  %v756_v33 = vmul.f32 1.442695, %v8606_v10  ;;  %v8607_v6 = vld [vmem:[#allocation151_spill] sm:$0xff]  ;;  %8608 = vst [vmem:[#allocation147_spill] sm:$0xff] %v4029_v47  ;;  %v8609_v45 = vld [vmem:[#allocation152_spill] sm:$0xff]  ;;  %v4034_v13 = vpop.eup %2406  ;;  %2436 = vpow2.f32 %v750_v44 }
  0xc6   :  { %v758_v5 = vmul.f32 1.442695, %v8607_v6  ;;  %v760_v62 = vmul.f32 1.442695, %v8609_v45  ;;  %v8610_v40 = vld [vmem:[#allocation153_spill] sm:$0xff]  ;;  %v8611_v28 = vld [vmem:[#allocation154_spill] sm:$0xff]  ;;  %v4039_v63 = vpop.eup %2408  ;;  %2438 = vpow2.f32 %v752_v35 }
  0xc7   :  { %v762_v32 = vmul.f32 1.442695, %v8610_v40  ;;  %v764_v39 = vmul.f32 1.442695, %v8611_v28  ;;  %8612 = vst [vmem:[#allocation148_spill] sm:$0xff] %v4034_v13  ;;  %v8613_v34 = vld [vmem:[#allocation155_spill] sm:$0xff]  ;;  %v4046_v28 = vpop.eup %2410  ;;  %2440 = vpow2.f32 %v754_v31 }
  0xc8   :  { %v766_v52 = vmul.f32 1.442695, %v8613_v34  ;;  %v8614_v23 = vld [vmem:[#allocation156_spill] sm:$0xff]  ;;  %v8615_v27 = vld [vmem:[#allocation157_spill] sm:$0xff]  ;;  %8616 = vst [vmem:[#allocation149_spill] sm:$0xff] %v4039_v63  ;;  %v8617_v6 = vld [vmem:[#allocation158_spill] sm:$0xff]  ;;  %v4057_v56 = vpop.eup %2412  ;;  %2442 = vpow2.f32 %v756_v33 }
  0xc9   :  { %v768_v38 = vmul.f32 1.442695, %v8614_v23  ;;  %v770_v10 = vmul.f32 1.442695, %v8615_v27  ;;  %v772_v51 = vmul.f32 1.442695, %v8617_v6  ;;  %2444 = vpow2.f32 %v758_v5 }
  0xca   :  { %v8618_v47 = vld [vmem:[#allocation159_spill] sm:$0xff]  ;;  %v4044_v40 = vmul.f32 1.442695, %v8619_v29  ;;  %8620 = vst [vmem:[#allocation150_spill] sm:$0xff] %v4046_v28  ;;  %v8621_v0 = vld [vmem:[#allocation161_spill] sm:$0xff]  ;;  %v8622_v34 = vld [vmem:[#allocation162_spill] sm:$0xff] }
  0xcb   :  { %v774_v45 = vmul.f32 1.442695, %v8618_v47  ;;  %v4049_v13 = vmul.f32 1.442695, %v8621_v0  ;;  %v4052_v23 = vmul.f32 1.442695, %v8622_v34  ;;  %v4068_v0 = vpop.eup %2414  ;;  %2446 = vpow2.f32 %v760_v62 }
  0xcc   :  { %v8623_v27 = vld [vmem:[#allocation163_spill] sm:$0xff]  ;;  %8624 = vst [vmem:[#allocation151_spill] sm:$0xff] %v4057_v56  ;;  %v8625_v6 = vld [vmem:[#allocation164_spill] sm:$0xff]  ;;  %v8626_v29 = vld [vmem:[#allocation165_spill] sm:$0xff]  ;;  %v4071_v34 = vmul.f32 1.442695, %v3668_v53 }
  0xcd   :  { %v4055_v60 = vmul.f32 1.442695, %v8623_v27  ;;  %v4060_v47 = vmul.f32 1.442695, %v8625_v6  ;;  %v4063_v63 = vmul.f32 1.442695, %v8626_v29  ;;  %v4079_v6 = vpop.eup %2416  ;;  %2448 = vpow2.f32 %v762_v32 }
  0xce   :  { %v8627_v28 = vld [vmem:[#allocation166_spill] sm:$0xff]  ;;  %8629 = vst [vmem:[#allocation153_spill] sm:$0xff] %v4068_v0  ;;  %v4074_v27 = vmul.f32 1.442695, %v3672_v1  ;;  %v8630_v56 = vld [vmem:[#allocation167_spill] sm:$0xff]  ;;  %8631 = vst [vmem:[#allocation154_spill] sm:$0xff] %v4079_v6  ;;  %v4090_v53 = vpop.eup %2418  ;;  %2450 = vpow2.f32 %v764_v39 }
  0xcf   :  { %v4066_v44 = vmul.f32 1.442695, %v8627_v28  ;;  %v4077_v35 = vmul.f32 1.442695, %v8630_v56  ;;  %v4082_v29 = vmul.f32 1.442695, %v3680_v12  ;;  %v4101_v12 = vpop.eup %2420  ;;  %2452 = vpow2.f32 %v766_v52 }
  0xd0   :  { %v8632_v28 = vld [vmem:[#allocation168_spill] sm:$0xff]  ;;  %v4088_v31 = vmul.f32 1.442695, %v3688_v36  ;;  %8634 = vst [vmem:[#allocation156_spill] sm:$0xff] %v4090_v53  ;;  %v8635_v1 = vld [vmem:[#allocation169_spill] sm:$0xff]  ;;  %v8636_v6 = vld [vmem:[#allocation170_spill] sm:$0xff] }
  0xd1   :  { %8628 = vst [vmem:[#allocation152_spill] sm:$0xff] %v4066_v44  ;;  %v4085_v44 = vmul.f32 1.442695, %v8632_v28  ;;  %v4093_v0 = vmul.f32 1.442695, %v8635_v1  ;;  %8637 = vst [vmem:[#allocation157_spill] sm:$0xff] %v4101_v12  ;;  %v4112_v1 = vpop.eup %2422  ;;  %2454 = vpow2.f32 %v768_v38 }
  0xd2   :  { %8633 = vst [vmem:[#allocation155_spill] sm:$0xff] %v4088_v31  ;;  %v4096_v56 = vmul.f32 1.442695, %v3697_v7  ;;  %v4099_v33 = vmul.f32 1.442695, %v8636_v6  ;;  %v8638_v36 = vld [vmem:[#allocation171_spill] sm:$0xff] }
  0xd3   :  { %v4104_v28 = vmul.f32 1.442695, %v3706_v54  ;;  %v4107_v31 = vmul.f32 1.442695, %v8638_v36  ;;  %v4110_v5 = vmul.f32 1.442695, %v3715_v16  ;;  %v4123_v54 = vpop.eup %2424  ;;  %2456 = vpow2.f32 %v770_v10 }
  0xd4   :  { %8640 = vst [vmem:[#allocation159_spill] sm:$0xff] %v4112_v1  ;;  %v8641_v7 = vld [vmem:[#allocation172_spill] sm:$0xff]  ;;  %v4118_v6 = vmul.f32 1.442695, %v3724_v46  ;;  %v8642_v12 = vld [vmem:[#allocation173_spill] sm:$0xff]  ;;  %8643 = vst [vmem:[#allocation160_spill] sm:$0xff] %v4123_v54 }
  0xd5   :  { %8639 = vst [vmem:[#allocation158_spill] sm:$0xff] %v4110_v5  ;;  %v4115_v53 = vmul.f32 1.442695, %v8641_v7  ;;  %v4121_v62 = vmul.f32 1.442695, %v8642_v12  ;;  %v8644_v16 = vld [vmem:[#allocation174_spill] sm:$0xff]  ;;  %v4134_v7 = vpop.eup %2426  ;;  %2458 = vpow2.f32 %v772_v51 }
  0xd6   :  { %v4126_v36 = vmul.f32 1.442695, %v3733_v43  ;;  %v4129_v5 = vmul.f32 1.442695, %v8644_v16  ;;  %v4132_v32 = vmul.f32 1.442695, %v3742_v55  ;;  %v4145_v43 = vpop.eup %2428  ;;  %2460 = vpow2.f32 %v774_v45 }
  0xd7   :  { %8646 = vst [vmem:[#allocation162_spill] sm:$0xff] %v4134_v7  ;;  %v8647_v46 = vld [vmem:[#allocation175_spill] sm:$0xff]  ;;  %v4140_v12 = vmul.f32 1.442695, %v3751_v18  ;;  %v8648_v54 = vld [vmem:[#allocation176_spill] sm:$0xff]  ;;  %8649 = vst [vmem:[#allocation163_spill] sm:$0xff] %v4145_v43 }
  0xd8   :  { %8645 = vst [vmem:[#allocation161_spill] sm:$0xff] %v4132_v32  ;;  %v4137_v1 = vmul.f32 1.442695, %v8647_v46  ;;  %v4143_v39 = vmul.f32 1.442695, %v8648_v54  ;;  %v8650_v55 = vld [vmem:[#allocation177_spill] sm:$0xff]  ;;  %v4156_v46 = vpop.eup %2430  ;;  %2462 = vpow2.f32 %v4044_v40 }
  0xd9   :  { %v4148_v16 = vmul.f32 1.442695, %v3760_v48  ;;  %v4151_v32 = vmul.f32 1.442695, %v8650_v55  ;;  %v4154_v52 = vmul.f32 1.442695, %v3769_v59  ;;  %v4167_v48 = vpop.eup %2432  ;;  %2464 = vpow2.f32 %v4049_v13 }
  0xda   :  { %8651 = vst [vmem:[#allocation164_spill] sm:$0xff] %v4156_v46  ;;  %v4159_v18 = vmul.f32 1.442695, %v3774_v42  ;;  %v4162_v54 = vmul.f32 1.442695, %v3778_v2  ;;  %8652 = vst [vmem:[#allocation165_spill] sm:$0xff] %v4167_v48  ;;  %v4178_v42 = vpop.eup %2434  ;;  %2466 = vpow2.f32 %v4052_v23 }
  0xdb   :  { %v4165_v38 = vmul.f32 1.442695, %v3783_v21  ;;  %v4170_v55 = vmul.f32 1.442695, %v3787_v15  ;;  %v4173_v59 = vmul.f32 1.442695, %v3792_v30  ;;  %v4189_v15 = vpop.eup %2436  ;;  %2468 = vpow2.f32 %v4055_v60 }
  0xdc   :  { %v4176_v10 = vmul.f32 1.442695, %v3796_v20  ;;  %8653 = vst [vmem:[#allocation166_spill] sm:$0xff] %v4178_v42  ;;  %v4181_v2 = vmul.f32 1.442695, %v3803_v9  ;;  %8654 = vst [vmem:[#allocation167_spill] sm:$0xff] %v4189_v15  ;;  %v4201_v9 = vpop.eup %2438  ;;  %2470 = vpow2.f32 %v4060_v47 }
  0xdd   :  { %v4184_v21 = vmul.f32 1.442695, %v3807_v22  ;;  %v4187_v51 = vmul.f32 1.442695, %v3814_v25  ;;  %v4193_v30 = vmul.f32 1.442695, %v3818_v61  ;;  %v4213_v61 = vpop.eup %2440  ;;  %2472 = vpow2.f32 %v4063_v63 }
  0xde   :  { %v4196_v20 = vmul.f32 1.442695, %v3825_v3  ;;  %v4199_v45 = vmul.f32 1.442695, %v3829_v58  ;;  %8655 = vst [vmem:[#allocation168_spill] sm:$0xff] %v4201_v9  ;;  %8656 = vst [vmem:[#allocation169_spill] sm:$0xff] %v4213_v61 }
  0xdf   :  { %v4205_v22 = vmul.f32 1.442695, %v3836_v37  ;;  %v4208_v25 = vmul.f32 1.442695, %v3840_v26  ;;  %v4211_v40 = vmul.f32 1.442695, %v3847_v8  ;;  %v4225_v37 = vpop.eup %2442 }
  0xe0   :  { %v4217_v58 = vmul.f32 1.442695, %v3851_v4  ;;  %v4220_v3 = vmul.f32 1.442695, %v3858_v49  ;;  %v4223_v13 = vmul.f32 1.442695, %v3862_v50  ;;  %v4237_v4 = vpop.eup %2444 }
  0xe1   :  { %8657 = vst [vmem:[#allocation170_spill] sm:$0xff] %v4225_v37  ;;  %v4229_v26 = vmul.f32 1.442695, %v3869_v14  ;;  %v4232_v8 = vmul.f32 1.442695, %v3873_v11  ;;  %8658 = vst [vmem:[#allocation171_spill] sm:$0xff] %v4237_v4  ;;  %v4249_v14 = vpop.eup %2446 }
  0xe2   :  { %v4235_v23 = vmul.f32 1.442695, %v3880_v41  ;;  %v4241_v50 = vmul.f32 1.442695, %v3884_v57  ;;  %v4244_v49 = vmul.f32 1.442695, %v3891_v19  ;;  %v4261_v57 = vpop.eup %2448 }
  0xe3   :  { %v4247_v60 = vmul.f32 1.442695, %v3895_v24  ;;  %8659 = vst [vmem:[#allocation172_spill] sm:$0xff] %v4249_v14  ;;  %v4253_v11 = vmul.f32 1.442695, %v3902_v17  ;;  %v8660_v41 = vld [vmem:[#allocation188_spill] sm:$0xff]  ;;  %v4273_v17 = vpop.eup %2450 }
  0xe4   :  { %v4256_v4 = vmul.f32 1.442695, %v8660_v41  ;;  %v8661_v47 = vld [vmem:[#allocation190_spill] sm:$0xff]  ;;  %8662 = vst [vmem:[#allocation173_spill] sm:$0xff] %v4261_v57  ;;  %v8663_v19 = vld [vmem:[#allocation152_spill] sm:$0xff]  ;;  %v8664_v61 = vld [vmem:[#allocation191_spill] sm:$0xff] }
  0xe5   :  { %v4259_v37 = vmul.f32 1.442695, %v8661_v47  ;;  %2474 = vpow2.f32 %v8663_v19  ;;  %v4265_v24 = vmul.f32 1.442695, %v8664_v61  ;;  %v8665_v9 = vld [vmem:[#allocation192_spill] sm:$0xff]  ;;  %v8667_v63 = vld [vmem:[#allocation193_spill] sm:$0xff]  ;;  %v4285_v61 = vpop.eup %2452 }
  0xe6   :  { %v4268_v14 = vmul.f32 1.442695, %v8665_v9  ;;  %v4271_v15 = vmul.f32 1.442695, %v8667_v63  ;;  %8669 = vst [vmem:[#allocation176_spill] sm:$0xff] %v4273_v17  ;;  %2476 = vpow2.f32 %v4071_v34  ;;  %v8670_v41 = vld [vmem:[#allocation194_spill] sm:$0xff] }
  0xe7   :  { %v4277_v47 = vmul.f32 1.442695, %v8670_v41  ;;  %v8672_v42 = vld [vmem:[#allocation195_spill] sm:$0xff]  ;;  %v8674_v19 = vld [vmem:[#allocation196_spill] sm:$0xff]  ;;  %8676 = vst [vmem:[#allocation152_spill] sm:$0xff] %v4285_v61  ;;  %2478 = vpow2.f32 %v4074_v27  ;;  %v8677_v9 = vld [vmem:[#allocation197_spill] sm:$0xff]  ;;  %v4297_v41 = vpop.eup %2454 }
  0xe8   :  { %8666 = vst [vmem:[#allocation174_spill] sm:$0xff] %v4268_v14  ;;  %8668 = vst [vmem:[#allocation175_spill] sm:$0xff] %v4271_v15  ;;  %v4280_v57 = vmul.f32 1.442695, %v8672_v42  ;;  %v4283_v48 = vmul.f32 1.442695, %v8674_v19  ;;  %2480 = vpow2.f32 %v4077_v35 }
  0xe9   :  { %8671 = vst [vmem:[#allocation177_spill] sm:$0xff] %v4277_v47  ;;  %v4289_v63 = vmul.f32 1.442695, %v8677_v9  ;;  %v8679_v46 = vld [vmem:[#allocation198_spill] sm:$0xff]  ;;  %v8681_v34 = vld [vmem:[#allocation199_spill] sm:$0xff]  ;;  %8683 = vst [vmem:[#allocation194_spill] sm:$0xff] %v4297_v41  ;;  %v4307_v9 = vpop.eup %2456  ;;  %2482 = vpow2.f32 %v4082_v29 }
  0xea   :  { %8673 = vst [vmem:[#allocation188_spill] sm:$0xff] %v4280_v57  ;;  %8675 = vst [vmem:[#allocation190_spill] sm:$0xff] %v4283_v48  ;;  %v4292_v17 = vmul.f32 1.442695, %v8679_v46  ;;  %v4295_v43 = vmul.f32 1.442695, %v8681_v34  ;;  %v4315_v35 = vpop.eup %2458  ;;  %2484 = vpow2.f32 %v4085_v44 }
  0xeb   :  { %8678 = vst [vmem:[#allocation191_spill] sm:$0xff] %v4289_v63  ;;  %v8684_v42 = vld [vmem:[#allocation200_spill] sm:$0xff]  ;;  %v8686_v7 = vld [vmem:[#allocation201_spill] sm:$0xff]  ;;  %v8688_v27 = vld [vmem:[#allocation178_spill] sm:$0xff]  ;;  %v4327_v29 = vpop.eup %2460 }
  0xec   :  { %8680 = vst [vmem:[#allocation192_spill] sm:$0xff] %v4292_v17  ;;  %8682 = vst [vmem:[#allocation193_spill] sm:$0xff] %v4295_v43  ;;  %v4301_v19 = vmul.f32 1.442695, %v8684_v42  ;;  %v4304_v61 = vmul.f32 1.442695, %v8686_v7 }
  0xed   :  { %v933_v48 = vmul.f32 -0.5, %v8688_v27  ;;  %8689 = vst [vmem:[#allocation197_spill] sm:$0xff] %v4307_v9  ;;  %v8690_v46 = vld [vmem:[#allocation202_spill] sm:$0xff]  ;;  %v8692_v34 = vld [vmem:[#allocation179_spill] sm:$0xff]  ;;  %v8693_v41 = vld [vmem:[#allocation180_spill] sm:$0xff] }
  0xee   :  { %8685 = vst [vmem:[#allocation195_spill] sm:$0xff] %v4301_v19  ;;  %8687 = vst [vmem:[#allocation196_spill] sm:$0xff] %v4304_v61  ;;  %v4311_v17 = vmul.f32 1.442695, %v8690_v46  ;;  %v942_v43 = vmul.f32 -0.5, %v8692_v34  ;;  %v951_v63 = vmul.f32 -0.5, %v8693_v41 }
  0xef   :  { %8694 = vst [vmem:[#allocation199_spill] sm:$0xff] %v4315_v35  ;;  %v8695_v42 = vld [vmem:[#allocation203_spill] sm:$0xff]  ;;  %v8696_v61 = vld [vmem:[#allocation204_spill] sm:$0xff]  ;;  %v8697_v9 = vld [vmem:[#allocation205_spill] sm:$0xff] }
  0xf0   :  { %8691 = vst [vmem:[#allocation198_spill] sm:$0xff] %v4311_v17  ;;  %v4319_v7 = vmul.f32 1.442695, %v8695_v42  ;;  %v4322_v19 = vmul.f32 1.442695, %v8696_v61  ;;  %8699 = vst [vmem:[#allocation201_spill] sm:$0xff] %v4327_v29  ;;  %v4339_v42 = vpop.eup %2462 }
  0xf1   :  { %v4325_v57 = vmul.f32 1.442695, %v8697_v9  ;;  %v8700_v46 = vld [vmem:[#allocation155_spill] sm:$0xff]  ;;  %v8701_v17 = vld [vmem:[#allocation206_spill] sm:$0xff]  ;;  %v8704_v44 = vld [vmem:[#allocation208_spill] sm:$0xff]  ;;  %8706 = vst [vmem:[#allocation203_spill] sm:$0xff] %v4339_v42 }
  0xf2   :  { %2486 = vpow2.f32 %v8700_v46  ;;  %v4331_v47 = vmul.f32 1.442695, %v8701_v17  ;;  %v8702_v15 = vld [vmem:[#allocation207_spill] sm:$0xff]  ;;  %v4337_v14 = vmul.f32 1.442695, %v8704_v44  ;;  %v8707_v61 = vld [vmem:[#allocation209_spill] sm:$0xff] }
  0xf3   :  { %8698 = vst [vmem:[#allocation200_spill] sm:$0xff] %v4325_v57  ;;  %v4334_v35 = vmul.f32 1.442695, %v8702_v15  ;;  %2488 = vpow2.f32 %v4093_v0  ;;  %v4343_v9 = vmul.f32 1.442695, %v8707_v61  ;;  %v4346_v29 = vadd.f32 1.0, %v8688_v27  ;;  %v4348_v57 = vpop.eup %2464 }
  0xf4   :  { %8705 = vst [vmem:[#allocation179_spill] sm:$0xff] %v4337_v14  ;;  %v934_v46 = vadd.f32 1.0, %v933_v48  ;;  %8709 = vst [vmem:[#allocation205_spill] sm:$0xff] %v4348_v57  ;;  %2490 = vpow2.f32 %v4096_v56  ;;  %v943_v15 = vadd.f32 1.0, %v942_v43  ;;  %v952_v17 = vadd.f32 1.0, %v951_v63  ;;  %v4352_v14 = vpop.eup %2466  ;;  %v8713_v42 = vld [vmem:[#allocation182_spill] sm:$0xff] }
  0xf5   :  { %8703 = vst [vmem:[#allocation202_spill] sm:$0xff] %v4334_v35  ;;  %8708 = vst [vmem:[#allocation204_spill] sm:$0xff] %v4346_v29  ;;  %v8710_v35 = vld [vmem:[#allocation181_spill] sm:$0xff]  ;;  %2492 = vpow2.f32 %v4099_v33  ;;  %v4357_v61 = vadd.f32 1.0, %v8692_v34  ;;  %v969_v29 = vmul.f32 -0.5, %v8713_v42  ;;  %v4360_v48 = vpop.eup %2468  ;;  %v4365_v43 = vadd.f32 1.0, %v8693_v41 }
  0xf6   :  { %v960_v44 = vmul.f32 -0.5, %v8710_v35  ;;  %8711 = vst [vmem:[#allocation155_spill] sm:$0xff] %v4352_v14  ;;  %8714 = vst [vmem:[#allocation207_spill] sm:$0xff] %v4360_v48  ;;  %2494 = vpow2.f32 %v4104_v28  ;;  %v8716_v63 = vld [vmem:[#allocation183_spill] sm:$0xff]  ;;  %v4368_v57 = vpop.eup %2470  ;;  %v4372_v33 = vmul.f32 %v8688_v27, %v934_v46  ;;  %v4376_v48 = vadd.f32 1.0, %v8710_v35  ;;  %v8721_v56 = vld [vmem:[#allocation158_spill] sm:$0xff] }
  0xf7   :  { %8712 = vst [vmem:[#allocation206_spill] sm:$0xff] %v4357_v61  ;;  %8715 = vst [vmem:[#allocation208_spill] sm:$0xff] %v4365_v43  ;;  %v978_v14 = vmul.f32 -0.5, %v8716_v63  ;;  %2496 = vpow2.f32 %v4107_v31  ;;  %v4378_v28 = vpop.eup %2472  ;;  %v4382_v43 = vmul.f32 %v8692_v34, %v943_v15  ;;  %v4385_v61 = vmul.f32 %v8693_v41, %v952_v17  ;;  %v8727_v17 = vld [vmem:[#allocation185_spill] sm:$0xff]  ;;  %v8729_v46 = vld [vmem:[#allocation186_spill] sm:$0xff] }
  0xf8   :  { %8717 = vst [vmem:[#allocation209_spill] sm:$0xff] %v4368_v57  ;;  %8718 = vst [vmem:[#allocation182_spill] sm:$0xff] %v4372_v33  ;;  %2498 = vpow2.f32 %v8721_v56  ;;  %v961_v57 = vadd.f32 1.0, %v960_v44  ;;  %v4387_v31 = vpop.eup %2474  ;;  %v970_v0 = vadd.f32 1.0, %v969_v29  ;;  %v8725_v33 = vld [vmem:[#allocation184_spill] sm:$0xff]  ;;  %v4396_v15 = vadd.f32 1.0, %v8713_v42 }
  0xf9   :  { %8719 = vst [vmem:[#allocation210_spill] sm:$0xff] %v4376_v48  ;;  %8720 = vst [vmem:[#allocation211_spill] sm:$0xff] %v4378_v28  ;;  %2500 = vpow2.f32 %v4115_v53  ;;  %v987_v27 = vmul.f32 -0.5, %v8725_v33  ;;  %v4392_v48 = vpop.eup %2476  ;;  %v979_v56 = vadd.f32 1.0, %v978_v14  ;;  %v996_v28 = vmul.f32 -0.5, %v8727_v17 }
  0xfa   :  { %8722 = vst [vmem:[#allocation158_spill] sm:$0xff] %v4382_v43  ;;  %8723 = vst [vmem:[#allocation212_spill] sm:$0xff] %v4385_v61  ;;  %2502 = vpow2.f32 %v4118_v6  ;;  %v4399_v44 = vpop.eup %2478  ;;  %v4404_v29 = vadd.f32 1.0, %v8716_v63  ;;  %v4411_v6 = vmul.f32 %v8710_v35, %v961_v57  ;;  %v4421_v53 = vmul.f32 %v8713_v42, %v970_v0  ;;  %v8739_v0 = vld [vmem:[#allocation189_spill] sm:$0xff] }
  0xfb   :  { %8724 = vst [vmem:[#allocation213_spill] sm:$0xff] %v4387_v31  ;;  %8726 = vst [vmem:[#allocation184_spill] sm:$0xff] %v4392_v48  ;;  %2504 = vpow2.f32 %v4121_v62  ;;  %v1005_v31 = vmul.f32 -0.5, %v8729_v46  ;;  %v4407_v48 = vpop.eup %2480  ;;  %v988_v61 = vadd.f32 1.0, %v987_v27  ;;  %v4428_v57 = vmul.f32 %v8716_v63, %v979_v56 }
  0xfc   :  { %8728 = vst [vmem:[#allocation185_spill] sm:$0xff] %v4399_v44  ;;  %8730 = vst [vmem:[#allocation186_spill] sm:$0xff] %v4407_v48  ;;  %2506 = vpow2.f32 %v4126_v36  ;;  %v4415_v44 = vadd.f32 1.0, %v8725_v33  ;;  %v4417_v62 = vpop.eup %2482  ;;  %v8735_v36 = vld [vmem:[#allocation161_spill] sm:$0xff]  ;;  %v997_v14 = vadd.f32 1.0, %v996_v28  ;;  %v1023_v48 = vmul.f32 -0.5, %v8739_v0 }
  0xfd   :  { %8731 = vst [vmem:[#allocation214_spill] sm:$0xff] %v4411_v6  ;;  %8732 = vst [vmem:[#allocation215_spill] sm:$0xff] %v4417_v62  ;;  %2508 = vpow2.f32 %v4129_v5  ;;  %v4424_v43 = vpop.eup %2484  ;;  %v8737_v6 = vld [vmem:[#allocation187_spill] sm:$0xff]  ;;  %v4435_v5 = vadd.f32 1.0, %v8727_v17  ;;  %v1006_v27 = vadd.f32 1.0, %v1005_v31  ;;  %v4443_v28 = vadd.f32 1.0, %v8729_v46 }
  0xfe   :  { %8733 = vst [vmem:[#allocation216_spill] sm:$0xff] %v4421_v53  ;;  %8734 = vst [vmem:[#allocation217_spill] sm:$0xff] %v4424_v43  ;;  %2510 = vpow2.f32 %v8735_v36  ;;  %v1014_v35 = vmul.f32 -0.5, %v8737_v6  ;;  %v8741_v36 = vld [vmem:[#allocation136_spill] sm:$0xff]  ;;  %v4460_v56 = vmul.f32 %v8727_v17, %v997_v14  ;;  %v8746_v53 = vld [vmem:[#allocation137_spill] sm:$0xff]  ;;  %v1024_v31 = vadd.f32 1.0, %v1023_v48 }
  0xff   :  { %8736 = vst [vmem:[#allocation161_spill] sm:$0xff] %v4428_v57  ;;  %v4431_v41 = vpop.eup %2486  ;;  %2512 = vpow2.f32 %v4137_v1  ;;  %v1032_v43 = vmul.f32 -0.5, %v8741_v36  ;;  %v4450_v1 = vmul.f32 %v8725_v33, %v988_v61  ;;  %v8750_v14 = vld [vmem:[#allocation138_spill] sm:$0xff]  ;;  %v8752_v48 = vld [vmem:[#allocation139_spill] sm:$0xff] }
 0x100   :  { %8738 = vst [vmem:[#allocation187_spill] sm:$0xff] %v4431_v41  ;;  %v4438_v62 = vpop.eup %2488  ;;  %2514 = vpow2.f32 %v4140_v12  ;;  %8745 = vst [vmem:[#allocation221_spill] sm:$0xff] %v4460_v56  ;;  %v1015_v57 = vadd.f32 1.0, %v1014_v35  ;;  %v1059_v61 = vmul.f32 -0.5, %v8752_v48 }
 0x101   :  { %8740 = vst [vmem:[#allocation189_spill] sm:$0xff] %v4438_v62  ;;  %v4446_v41 = vpop.eup %2490  ;;  %2516 = vpow2.f32 %v4143_v39  ;;  %8743 = vst [vmem:[#allocation219_spill] sm:$0xff] %v4450_v1  ;;  %v4454_v62 = vadd.f32 1.0, %v8737_v6  ;;  %v4467_v39 = vmul.f32 %v8729_v46, %v1006_v27  ;;  %v1033_v35 = vadd.f32 1.0, %v1032_v43 }
 0x102   :  { %8742 = vst [vmem:[#allocation218_spill] sm:$0xff] %v4446_v41  ;;  %v4456_v12 = vpop.eup %2492  ;;  %2518 = vpow2.f32 %v4148_v16  ;;  %v1041_v41 = vmul.f32 -0.5, %v8746_v53  ;;  %v4474_v16 = vadd.f32 1.0, %v8739_v0  ;;  %v4482_v27 = vadd.f32 1.0, %v8741_v36 }
 0x103   :  { %8744 = vst [vmem:[#allocation220_spill] sm:$0xff] %v4456_v12  ;;  %v4463_v63 = vpop.eup %2494  ;;  %2520 = vpow2.f32 %v4151_v32  ;;  %8748 = vst [vmem:[#allocation223_spill] sm:$0xff] %v4467_v39  ;;  %v1050_v12 = vmul.f32 -0.5, %v8750_v14  ;;  %v4499_v32 = vadd.f32 1.0, %v8746_v53 }
 0x104   :  { %8747 = vst [vmem:[#allocation222_spill] sm:$0xff] %v4463_v63  ;;  %v4470_v1 = vpop.eup %2496  ;;  %2522 = vpow2.f32 %v4154_v52  ;;  %v4489_v52 = vmul.f32 %v8737_v6, %v1015_v57  ;;  %v1042_v63 = vadd.f32 1.0, %v1041_v41  ;;  %v8759_v57 = vld [vmem:[#allocation140_spill] sm:$0xff] }
 0x105   :  { %8749 = vst [vmem:[#allocation224_spill] sm:$0xff] %v4470_v1  ;;  %v4477_v56 = vpop.eup %2498  ;;  %2524 = vpow2.f32 %v4159_v18  ;;  %v4496_v18 = vmul.f32 %v8739_v0, %v1024_v31  ;;  %v1051_v41 = vadd.f32 1.0, %v1050_v12  ;;  %v1068_v43 = vmul.f32 -0.5, %v8759_v57 }
 0x106   :  { %8751 = vst [vmem:[#allocation138_spill] sm:$0xff] %v4477_v56  ;;  %v4485_v1 = vpop.eup %2500  ;;  %2526 = vpow2.f32 %v4162_v54  ;;  %8754 = vst [vmem:[#allocation226_spill] sm:$0xff] %v4489_v52  ;;  %v4506_v54 = vmul.f32 %v8741_v36, %v1033_v35  ;;  %v1060_v31 = vadd.f32 1.0, %v1059_v61  ;;  %v4524_v35 = vadd.f32 1.0, %v8752_v48 }
 0x107   :  { %8753 = vst [vmem:[#allocation225_spill] sm:$0xff] %v4485_v1  ;;  %v4492_v56 = vpop.eup %2502  ;;  %2528 = vpow2.f32 %v4165_v38  ;;  %8756 = vst [vmem:[#allocation228_spill] sm:$0xff] %v4496_v18  ;;  %v4513_v38 = vadd.f32 1.0, %v8750_v14  ;;  %v8761_v18 = vld [vmem:[#allocation141_spill] sm:$0xff]  ;;  %v4531_v61 = vadd.f32 1.0, %v8759_v57  ;;  %v1069_v12 = vadd.f32 1.0, %v1068_v43 }
 0x108   :  { %8755 = vst [vmem:[#allocation227_spill] sm:$0xff] %v4492_v56  ;;  %v4502_v39 = vpop.eup %2504  ;;  %2530 = vpow2.f32 %v4170_v55  ;;  %8758 = vst [vmem:[#allocation230_spill] sm:$0xff] %v4506_v54  ;;  %v1077_v1 = vmul.f32 -0.5, %v8761_v18  ;;  %v4520_v55 = vmul.f32 %v8746_v53, %v1042_v63  ;;  %v4538_v63 = vmul.f32 %v8750_v14, %v1051_v41  ;;  %v8772_v43 = vld [vmem:[#allocation144_spill] sm:$0xff] }
 0x109   :  { %8757 = vst [vmem:[#allocation229_spill] sm:$0xff] %v4502_v39  ;;  %v4509_v56 = vpop.eup %2506  ;;  %2532 = vpow2.f32 %v4173_v59  ;;  %v1104_v41 = vmul.f32 -0.5, %v8772_v43 }
 0x10a   :  { %8760 = vst [vmem:[#allocation140_spill] sm:$0xff] %v4509_v56  ;;  %v4516_v52 = vpop.eup %2508  ;;  %2534 = vpow2.f32 %v4176_v10  ;;  %8763 = vst [vmem:[#allocation231_spill] sm:$0xff] %v4520_v55  ;;  %v8768_v55 = vld [vmem:[#allocation143_spill] sm:$0xff]  ;;  %v1078_v53 = vadd.f32 1.0, %v1077_v1 }
 0x10b   :  { %8762 = vst [vmem:[#allocation141_spill] sm:$0xff] %v4516_v52  ;;  %v4526_v56 = vpop.eup %2510  ;;  %2536 = vpow2.f32 %v4181_v2  ;;  %v8765_v52 = vld [vmem:[#allocation142_spill] sm:$0xff]  ;;  %8767 = vst [vmem:[#allocation233_spill] sm:$0xff] %v4538_v63  ;;  %v1095_v54 = vmul.f32 -0.5, %v8768_v55  ;;  %v4545_v2 = vmul.f32 %v8752_v48, %v1060_v31 }
 0x10c   :  { %8764 = vst [vmem:[#allocation232_spill] sm:$0xff] %v4526_v56  ;;  %v1086_v39 = vmul.f32 -0.5, %v8765_v52  ;;  %v4534_v10 = vpop.eup %2512  ;;  %2538 = vpow2.f32 %v4184_v21  ;;  %v4552_v21 = vadd.f32 1.0, %v8761_v18  ;;  %v4561_v31 = vadd.f32 1.0, %v8765_v52 }
 0x10d   :  { %8766 = vst [vmem:[#allocation142_spill] sm:$0xff] %v4534_v10  ;;  %v4541_v56 = vpop.eup %2514  ;;  %2540 = vpow2.f32 %v4187_v51  ;;  %8770 = vst [vmem:[#allocation235_spill] sm:$0xff] %v4545_v2  ;;  %v8773_v10 = vld [vmem:[#allocation145_spill] sm:$0xff]  ;;  %v1096_v2 = vadd.f32 1.0, %v1095_v54  ;;  %v4577_v51 = vadd.f32 1.0, %v8768_v55 }
 0x10e   :  { %8769 = vst [vmem:[#allocation234_spill] sm:$0xff] %v4541_v56  ;;  %v4548_v36 = vpop.eup %2516  ;;  %2542 = vpow2.f32 %v4193_v30  ;;  %v1113_v63 = vmul.f32 -0.5, %v8773_v10  ;;  %v1087_v1 = vadd.f32 1.0, %v1086_v39  ;;  %v4567_v30 = vmul.f32 %v8759_v57, %v1069_v12 }
 0x10f   :  { %8771 = vst [vmem:[#allocation236_spill] sm:$0xff] %v4548_v36  ;;  %v4556_v56 = vpop.eup %2518  ;;  %2544 = vpow2.f32 %v4196_v20  ;;  %v4574_v20 = vmul.f32 %v8761_v18, %v1078_v53  ;;  %v8780_v36 = vld [vmem:[#allocation146_spill] sm:$0xff]  ;;  %v4591_v53 = vadd.f32 1.0, %v8772_v43 }
 0x110   :  { %8774 = vst [vmem:[#allocation144_spill] sm:$0xff] %v4556_v56  ;;  %v4563_v59 = vpop.eup %2520  ;;  %2546 = vpow2.f32 %v4199_v45  ;;  %8776 = vst [vmem:[#allocation237_spill] sm:$0xff] %v4567_v30  ;;  %v1105_v45 = vadd.f32 1.0, %v1104_v41  ;;  %v1114_v12 = vadd.f32 1.0, %v1113_v63  ;;  %v1122_v54 = vmul.f32 -0.5, %v8780_v36 }
 0x111   :  { %8775 = vst [vmem:[#allocation145_spill] sm:$0xff] %v4563_v59  ;;  %v4570_v48 = vpop.eup %2522  ;;  %2548 = vpow2.f32 %v4205_v22  ;;  %8778 = vst [vmem:[#allocation239_spill] sm:$0xff] %v4574_v20  ;;  %v4588_v22 = vmul.f32 %v8765_v52, %v1087_v1  ;;  %v4602_v41 = vadd.f32 1.0, %v8773_v10 }
 0x112   :  { %8777 = vst [vmem:[#allocation238_spill] sm:$0xff] %v4570_v48  ;;  %v4580_v59 = vpop.eup %2524  ;;  %2550 = vpow2.f32 %v4208_v25  ;;  %v8783_v48 = vld [vmem:[#allocation147_spill] sm:$0xff]  ;;  %v4598_v25 = vmul.f32 %v8768_v55, %v1096_v2  ;;  %v4616_v2 = vmul.f32 %v8772_v43, %v1105_v45  ;;  %v4619_v63 = vmul.f32 %v8773_v10, %v1114_v12  ;;  %v8794_v45 = vld [vmem:[#allocation150_spill] sm:$0xff] }
 0x113   :  { %8779 = vst [vmem:[#allocation240_spill] sm:$0xff] %v4580_v59  ;;  %v4584_v56 = vpop.eup %2526  ;;  %2552 = vpow2.f32 %v4211_v40  ;;  %8782 = vst [vmem:[#allocation242_spill] sm:$0xff] %v4588_v22  ;;  %v1131_v39 = vmul.f32 -0.5, %v8783_v48  ;;  %v8792_v22 = vld [vmem:[#allocation149_spill] sm:$0xff]  ;;  %v1158_v12 = vmul.f32 -0.5, %v8794_v45 }
 0x114   :  { %8781 = vst [vmem:[#allocation241_spill] sm:$0xff] %v4584_v56  ;;  %v4594_v20 = vpop.eup %2528  ;;  %2554 = vpow2.f32 %v4217_v58  ;;  %8785 = vst [vmem:[#allocation244_spill] sm:$0xff] %v4598_v25  ;;  %v4609_v56 = vadd.f32 1.0, %v8780_v36  ;;  %v1149_v30 = vmul.f32 -0.5, %v8792_v22 }
 0x115   :  { %8784 = vst [vmem:[#allocation243_spill] sm:$0xff] %v4594_v20  ;;  %v4604_v40 = vpop.eup %2530  ;;  %2556 = vpow2.f32 %v4220_v3  ;;  %v8787_v20 = vld [vmem:[#allocation148_spill] sm:$0xff]  ;;  %8789 = vst [vmem:[#allocation247_spill] sm:$0xff] %v4616_v2  ;;  %v1132_v1 = vadd.f32 1.0, %v1131_v39  ;;  %v4649_v2 = vadd.f32 1.0, %v8792_v22 }
 0x116   :  { %8786 = vst [vmem:[#allocation245_spill] sm:$0xff] %v4604_v40  ;;  %v1140_v59 = vmul.f32 -0.5, %v8787_v20  ;;  %v4612_v58 = vpop.eup %2532  ;;  %2558 = vpow2.f32 %v4223_v13  ;;  %8790 = vst [vmem:[#allocation248_spill] sm:$0xff] %v4619_v63  ;;  %v1123_v40 = vadd.f32 1.0, %v1122_v54  ;;  %v4630_v13 = vadd.f32 1.0, %v8783_v48 }
 0x117   :  { %8788 = vst [vmem:[#allocation246_spill] sm:$0xff] %v4612_v58  ;;  %v4621_v25 = vpop.eup %2534  ;;  %2560 = vpow2.f32 %v4229_v26  ;;  %v8795_v58 = vld [vmem:[#allocation151_spill] sm:$0xff]  ;;  %v4639_v39 = vadd.f32 1.0, %v8787_v20 }
 0x118   :  { %8791 = vst [vmem:[#allocation249_spill] sm:$0xff] %v4621_v25  ;;  %v4626_v55 = vpop.eup %2536  ;;  %2562 = vpow2.f32 %v4232_v8  ;;  %v1167_v54 = vmul.f32 -0.5, %v8795_v58  ;;  %v1141_v3 = vadd.f32 1.0, %v1140_v59  ;;  %v4645_v8 = vmul.f32 %v8780_v36, %v1123_v40  ;;  %v8802_v25 = vld [vmem:[#allocation153_spill] sm:$0xff] }
 0x119   :  { %8793 = vst [vmem:[#allocation250_spill] sm:$0xff] %v4626_v55  ;;  %v4634_v63 = vpop.eup %2538  ;;  %2564 = vpow2.f32 %v4235_v23  ;;  %v4655_v23 = vmul.f32 %v8783_v48, %v1132_v1  ;;  %v1150_v59 = vadd.f32 1.0, %v1149_v30  ;;  %v4669_v1 = vadd.f32 1.0, %v8794_v45  ;;  %v8805_v30 = vld [vmem:[#allocation154_spill] sm:$0xff] }
 0x11a   :  { %8796 = vst [vmem:[#allocation251_spill] sm:$0xff] %v4634_v63  ;;  %v4641_v55 = vpop.eup %2540  ;;  %2566 = vpow2.f32 %v4241_v50  ;;  %8798 = vst [vmem:[#allocation253_spill] sm:$0xff] %v4645_v8  ;;  %v1159_v50 = vadd.f32 1.0, %v1158_v12  ;;  %v1168_v40 = vadd.f32 1.0, %v1167_v54  ;;  %v1176_v8 = vmul.f32 -0.5, %v8802_v25  ;;  %v8807_v54 = vld [vmem:[#allocation156_spill] sm:$0xff] }
 0x11b   :  { %8797 = vst [vmem:[#allocation252_spill] sm:$0xff] %v4641_v55  ;;  %v4651_v63 = vpop.eup %2542  ;;  %2568 = vpow2.f32 %v4244_v49  ;;  %8800 = vst [vmem:[#allocation255_spill] sm:$0xff] %v4655_v23  ;;  %v4666_v49 = vmul.f32 %v8787_v20, %v1141_v3  ;;  %v1185_v26 = vmul.f32 -0.5, %v8805_v30  ;;  %v4677_v12 = vadd.f32 1.0, %v8795_v58  ;;  %v8815_v23 = vld [vmem:[#allocation157_spill] sm:$0xff] }
 0x11c   :  { %8799 = vst [vmem:[#allocation254_spill] sm:$0xff] %v4651_v63  ;;  %v4658_v55 = vpop.eup %2544  ;;  %2570 = vpow2.f32 %v4247_v60  ;;  %v4684_v3 = vmul.f32 %v8792_v22, %v1150_v59  ;;  %v4694_v60 = vmul.f32 %v8794_v45, %v1159_v50  ;;  %v8814_v59 = vld [vmem:[#allocation174_spill] sm:$0xff]  ;;  %v1203_v22 = vmul.f32 -0.5, %v8815_v23 }
 0x11d   :  { %8801 = vst [vmem:[#allocation256_spill] sm:$0xff] %v4658_v55  ;;  %v4662_v36 = vpop.eup %2546  ;;  %2572 = vpow2.f32 %v4253_v11  ;;  %8804 = vst [vmem:[#allocation258_spill] sm:$0xff] %v4666_v49  ;;  %v4697_v49 = vmul.f32 %v8795_v58, %v1168_v40  ;;  %v8819_v40 = vld [vmem:[#allocation159_spill] sm:$0xff]  ;;  %v8823_v55 = vld [vmem:[#allocation160_spill] sm:$0xff] }
 0x11e   :  { %8803 = vst [vmem:[#allocation257_spill] sm:$0xff] %v4662_v36  ;;  %v4672_v63 = vpop.eup %2548  ;;  %2574 = vpow2.f32 %v4256_v4  ;;  %v1194_v36 = vmul.f32 -0.5, %v8807_v54  ;;  %8809 = vst [vmem:[#allocation261_spill] sm:$0xff] %v4684_v3  ;;  %v1186_v3 = vadd.f32 1.0, %v1185_v26  ;;  %v4716_v26 = vadd.f32 1.0, %v8807_v54 }
 0x11f   :  { %8806 = vst [vmem:[#allocation259_spill] sm:$0xff] %v4672_v63  ;;  %v4680_v11 = vpop.eup %2550  ;;  %2576 = vpow2.f32 %v4259_v37  ;;  %v4688_v63 = vadd.f32 1.0, %v8802_v25  ;;  %8811 = vst [vmem:[#allocation263_spill] sm:$0xff] %v4694_v60  ;;  %v1221_v60 = vmul.f32 -0.5, %v8823_v55 }
 0x120   :  { %8808 = vst [vmem:[#allocation260_spill] sm:$0xff] %v4680_v11  ;;  %v4690_v4 = vpop.eup %2552  ;;  %2578 = vpow2.f32 %v4265_v24  ;;  %8812 = vst [vmem:[#allocation264_spill] sm:$0xff] %v4697_v49  ;;  %v1177_v11 = vadd.f32 1.0, %v1176_v8  ;;  %v4708_v24 = vadd.f32 1.0, %v8805_v30  ;;  %v1195_v50 = vadd.f32 1.0, %v1194_v36 }
 0x121   :  { %8810 = vst [vmem:[#allocation262_spill] sm:$0xff] %v4690_v4  ;;  %v4699_v37 = vpop.eup %2554  ;;  %2580 = vpow2.f32 %v8814_v59  ;;  %v8817_v4 = vld [vmem:[#allocation175_spill] sm:$0xff]  ;;  %v1212_v49 = vmul.f32 -0.5, %v8819_v40  ;;  %v8829_v59 = vld [vmem:[#allocation190_spill] sm:$0xff]  ;;  %v4733_v45 = vmul.f32 %v8805_v30, %v1186_v3  ;;  %v4747_v3 = vadd.f32 1.0, %v8819_v40 }
 0x122   :  { %8813 = vst [vmem:[#allocation265_spill] sm:$0xff] %v4699_v37  ;;  %v4704_v20 = vpop.eup %2556  ;;  %2582 = vpow2.f32 %v8817_v4  ;;  %8818 = vst [vmem:[#allocation175_spill] sm:$0xff] %v4708_v24  ;;  %v8821_v37 = vld [vmem:[#allocation177_spill] sm:$0xff]  ;;  %v8825_v4 = vld [vmem:[#allocation188_spill] sm:$0xff]  ;;  %v4723_v58 = vmul.f32 %v8802_v25, %v1177_v11  ;;  %v4740_v11 = vmul.f32 %v8807_v54, %v1195_v50 }
 0x123   :  { %8816 = vst [vmem:[#allocation174_spill] sm:$0xff] %v4704_v20  ;;  %v4711_v8 = vpop.eup %2558  ;;  %2584 = vpow2.f32 %v8821_v37  ;;  %8822 = vst [vmem:[#allocation177_spill] sm:$0xff] %v4716_v26  ;;  %v1204_v26 = vadd.f32 1.0, %v1203_v22  ;;  %v1213_v36 = vadd.f32 1.0, %v1212_v49  ;;  %v1222_v22 = vadd.f32 1.0, %v1221_v60  ;;  %v8847_v50 = vld [vmem:[#allocation196_spill] sm:$0xff] }
 0x124   :  { %8820 = vst [vmem:[#allocation266_spill] sm:$0xff] %v4711_v8  ;;  %v4719_v20 = vpop.eup %2560  ;;  %2586 = vpow2.f32 %v8825_v4  ;;  %8826 = vst [vmem:[#allocation188_spill] sm:$0xff] %v4723_v58  ;;  %v4727_v8 = vadd.f32 1.0, %v8815_v23  ;;  %v8832_v4 = vld [vmem:[#allocation191_spill] sm:$0xff]  ;;  %v8834_v58 = vld [vmem:[#allocation162_spill] sm:$0xff]  ;;  %v4755_v49 = vadd.f32 1.0, %v8823_v55 }
 0x125   :  { %8824 = vst [vmem:[#allocation267_spill] sm:$0xff] %v4719_v20  ;;  %v4729_v37 = vpop.eup %2562  ;;  %2588 = vpow2.f32 %v8829_v59  ;;  %8830 = vst [vmem:[#allocation190_spill] sm:$0xff] %v4733_v45  ;;  %v1230_v25 = vmul.f32 -0.5, %v8834_v58  ;;  %v8838_v59 = vld [vmem:[#allocation163_spill] sm:$0xff]  ;;  %v4762_v54 = vmul.f32 %v8815_v23, %v1204_v26  ;;  %v4772_v30 = vmul.f32 %v8819_v40, %v1213_v36 }
 0x126   :  { %8827 = vst [vmem:[#allocation268_spill] sm:$0xff] %v4727_v8  ;;  %8828 = vst [vmem:[#allocation269_spill] sm:$0xff] %v4729_v37  ;;  %v4736_v48 = vpop.eup %2564  ;;  %2590 = vpow2.f32 %v8832_v4  ;;  %v8836_v37 = vld [vmem:[#allocation192_spill] sm:$0xff]  ;;  %v1239_v20 = vmul.f32 -0.5, %v8838_v59  ;;  %v4779_v26 = vmul.f32 %v8823_v55, %v1222_v22  ;;  %v4786_v36 = vadd.f32 1.0, %v8838_v59 }
 0x127   :  { %8831 = vst [vmem:[#allocation270_spill] sm:$0xff] %v4736_v48  ;;  %8833 = vst [vmem:[#allocation191_spill] sm:$0xff] %v4740_v11  ;;  %v4743_v8 = vpop.eup %2566  ;;  %2592 = vpow2.f32 %v8836_v37  ;;  %v8840_v48 = vld [vmem:[#allocation193_spill] sm:$0xff]  ;;  %v8842_v4 = vld [vmem:[#allocation164_spill] sm:$0xff] }
 0x128   :  { %8835 = vst [vmem:[#allocation271_spill] sm:$0xff] %v4743_v8  ;;  %8837 = vst [vmem:[#allocation192_spill] sm:$0xff] %v4747_v3  ;;  %v4750_v45 = vpop.eup %2568  ;;  %2594 = vpow2.f32 %v8840_v48  ;;  %v1248_v11 = vmul.f32 -0.5, %v8842_v4  ;;  %v8844_v37 = vld [vmem:[#allocation195_spill] sm:$0xff]  ;;  %v8849_v3 = vld [vmem:[#allocation165_spill] sm:$0xff] }
 0x129   :  { %8839 = vst [vmem:[#allocation272_spill] sm:$0xff] %v4750_v45  ;;  %8841 = vst [vmem:[#allocation193_spill] sm:$0xff] %v4755_v49  ;;  %v4758_v8 = vpop.eup %2570  ;;  %2596 = vpow2.f32 %v8844_v37  ;;  %v4766_v45 = vadd.f32 1.0, %v8834_v58  ;;  %v1231_v49 = vadd.f32 1.0, %v1230_v25  ;;  %v8851_v37 = vld [vmem:[#allocation198_spill] sm:$0xff]  ;;  %v4811_v22 = vadd.f32 1.0, %v8849_v3 }
 0x12a   :  { %8843 = vst [vmem:[#allocation273_spill] sm:$0xff] %v4758_v8  ;;  %8845 = vst [vmem:[#allocation195_spill] sm:$0xff] %v4762_v54  ;;  %v4768_v48 = vpop.eup %2572  ;;  %2598 = vpow2.f32 %v8847_v50  ;;  %v1257_v8 = vmul.f32 -0.5, %v8849_v3  ;;  %v1240_v54 = vadd.f32 1.0, %v1239_v20  ;;  %v1249_v25 = vadd.f32 1.0, %v1248_v11  ;;  %v8854_v50 = vld [vmem:[#allocation166_spill] sm:$0xff] }
 0x12b   :  { %8846 = vst [vmem:[#allocation274_spill] sm:$0xff] %v4768_v48  ;;  %8848 = vst [vmem:[#allocation196_spill] sm:$0xff] %v4772_v30  ;;  %v4775_v24 = vpop.eup %2574  ;;  %2600 = vpow2.f32 %v8851_v37  ;;  %v1266_v48 = vmul.f32 -0.5, %v8854_v50  ;;  %v4794_v37 = vadd.f32 1.0, %v8842_v4  ;;  %v8856_v20 = vld [vmem:[#allocation167_spill] sm:$0xff]  ;;  %v8865_v11 = vld [vmem:[#allocation168_spill] sm:$0xff] }
 0x12c   :  { %8850 = vst [vmem:[#allocation275_spill] sm:$0xff] %v4775_v24  ;;  %8852 = vst [vmem:[#allocation198_spill] sm:$0xff] %v4779_v26  ;;  %v4782_v23 = vpop.eup %2576  ;;  %2602 = vpow2.f32 %v4319_v7  ;;  %v1275_v60 = vmul.f32 -0.5, %v8856_v20  ;;  %v8858_v7 = vld [vmem:[#allocation200_spill] sm:$0xff]  ;;  %v4801_v24 = vmul.f32 %v8834_v58, %v1231_v49  ;;  %v1258_v26 = vadd.f32 1.0, %v1257_v8 }
 0x12d   :  { %8853 = vst [vmem:[#allocation276_spill] sm:$0xff] %v4782_v23  ;;  %v4789_v30 = vpop.eup %2578  ;;  %2604 = vpow2.f32 %v4322_v19  ;;  %v4808_v19 = vmul.f32 %v8838_v59, %v1240_v54  ;;  %v4818_v49 = vmul.f32 %v8842_v4, %v1249_v25  ;;  %v1267_v8 = vadd.f32 1.0, %v1266_v48  ;;  %v8868_v59 = vld [vmem:[#allocation169_spill] sm:$0xff] }
 0x12e   :  { %8855 = vst [vmem:[#allocation277_spill] sm:$0xff] %v4789_v30  ;;  %v4797_v23 = vpop.eup %2580  ;;  %2606 = vpow2.f32 %v8858_v7  ;;  %8859 = vst [vmem:[#allocation200_spill] sm:$0xff] %v4801_v24  ;;  %v8863_v7 = vld [vmem:[#allocation202_spill] sm:$0xff]  ;;  %v4825_v54 = vadd.f32 1.0, %v8854_v50  ;;  %v4832_v25 = vmul.f32 %v8849_v3, %v1258_v26  ;;  %v8879_v3 = vld [vmem:[#allocation171_spill] sm:$0xff] }
 0x12f   :  { %8857 = vst [vmem:[#allocation278_spill] sm:$0xff] %v4797_v23  ;;  %v4804_v30 = vpop.eup %2582  ;;  %2608 = vpow2.f32 %v4331_v47  ;;  %8861 = vst [vmem:[#allocation280_spill] sm:$0xff] %v4808_v19  ;;  %v8867_v47 = vld [vmem:[#allocation179_spill] sm:$0xff]  ;;  %v1276_v19 = vadd.f32 1.0, %v1275_v60  ;;  %v1293_v23 = vmul.f32 -0.5, %v8868_v59  ;;  %v8877_v26 = vld [vmem:[#allocation206_spill] sm:$0xff]  ;;  %v4850_v48 = vmul.f32 %v8854_v50, %v1267_v8 }
 0x130   :  { %8860 = vst [vmem:[#allocation279_spill] sm:$0xff] %v4804_v30  ;;  %v4814_v55 = vpop.eup %2584  ;;  %2610 = vpow2.f32 %v8863_v7  ;;  %8864 = vst [vmem:[#allocation202_spill] sm:$0xff] %v4818_v49  ;;  %v1284_v30 = vmul.f32 -0.5, %v8865_v11  ;;  %v4836_v7 = vadd.f32 1.0, %v8856_v20  ;;  %v1311_v4 = vmul.f32 -0.5, %v8879_v3 }
 0x131   :  { %8862 = vst [vmem:[#allocation281_spill] sm:$0xff] %v4814_v55  ;;  %v4821_v24 = vpop.eup %2586  ;;  %2612 = vpow2.f32 %v8867_v47  ;;  %8870 = vst [vmem:[#allocation283_spill] sm:$0xff] %v4832_v25  ;;  %v8873_v47 = vld [vmem:[#allocation204_spill] sm:$0xff]  ;;  %v4843_v55 = vadd.f32 1.0, %v8865_v11  ;;  %v4857_v60 = vmul.f32 %v8856_v20, %v1276_v19  ;;  %v1294_v40 = vadd.f32 1.0, %v1293_v23 }
 0x132   :  { %8866 = vst [vmem:[#allocation282_spill] sm:$0xff] %v4821_v24  ;;  %v4828_v58 = vpop.eup %2588  ;;  %2614 = vpow2.f32 %v4343_v9  ;;  %8871 = vst [vmem:[#allocation284_spill] sm:$0xff] %v4836_v7  ;;  %v1285_v25 = vadd.f32 1.0, %v1284_v30  ;;  %v4864_v8 = vadd.f32 1.0, %v8868_v59  ;;  %v8885_v30 = vld [vmem:[#allocation172_spill] sm:$0xff]  ;;  %v4889_v19 = vadd.f32 1.0, %v8879_v3 }
 0x133   :  { %8869 = vst [vmem:[#allocation179_spill] sm:$0xff] %v4828_v58  ;;  %v4838_v24 = vpop.eup %2590  ;;  %2616 = vlog2.f32 %v8873_v47  ;;  %8874 = vst [vmem:[#allocation204_spill] sm:$0xff] %v4843_v55  ;;  %v8875_v58 = vld [vmem:[#allocation170_spill] sm:$0xff]  ;;  %v8881_v47 = vld [vmem:[#allocation208_spill] sm:$0xff] }
 0x134   :  { %8872 = vst [vmem:[#allocation285_spill] sm:$0xff] %v4838_v24  ;;  %v1302_v49 = vmul.f32 -0.5, %v8875_v58  ;;  %v4846_v9 = vpop.eup %2592  ;;  %2618 = vlog2.f32 %v8877_v26  ;;  %8878 = vst [vmem:[#allocation206_spill] sm:$0xff] %v4850_v48  ;;  %v1320_v26 = vmul.f32 -0.5, %v8885_v30  ;;  %v8886_v48 = vld [vmem:[#allocation173_spill] sm:$0xff] }
 0x135   :  { %8876 = vst [vmem:[#allocation286_spill] sm:$0xff] %v4846_v9  ;;  %v4853_v24 = vpop.eup %2594  ;;  %2620 = vlog2.f32 %v8881_v47  ;;  %8882 = vst [vmem:[#allocation208_spill] sm:$0xff] %v4857_v60  ;;  %v8884_v9 = vld [vmem:[#allocation210_spill] sm:$0xff]  ;;  %v1329_v50 = vmul.f32 -0.5, %v8886_v48  ;;  %v4873_v47 = vadd.f32 1.0, %v8875_v58  ;;  %v1312_v60 = vadd.f32 1.0, %v1311_v4 }
 0x136   :  { %8880 = vst [vmem:[#allocation287_spill] sm:$0xff] %v4853_v24  ;;  %v4860_v7 = vpop.eup %2596  ;;  %2622 = vlog2.f32 %v8884_v9  ;;  %v1303_v23 = vadd.f32 1.0, %v1302_v49  ;;  %v4879_v9 = vmul.f32 %v8865_v11, %v1285_v25  ;;  %v8892_v49 = vld [vmem:[#allocation176_spill] sm:$0xff] }
 0x137   :  { %8883 = vst [vmem:[#allocation288_spill] sm:$0xff] %v4860_v7  ;;  %v4868_v24 = vpop.eup %2598  ;;  %2624 = vlog2.f32 %v4396_v15  ;;  %v4886_v15 = vmul.f32 %v8868_v59, %v1294_v40  ;;  %v1330_v25 = vadd.f32 1.0, %v1329_v50  ;;  %v8894_v7 = vld [vmem:[#allocation152_spill] sm:$0xff] }
 0x138   :  { %8887 = vst [vmem:[#allocation210_spill] sm:$0xff] %v4868_v24  ;;  %v4875_v55 = vpop.eup %2600  ;;  %2626 = vlog2.f32 %v4404_v29  ;;  %8889 = vst [vmem:[#allocation290_spill] sm:$0xff] %v4879_v9  ;;  %v1321_v29 = vadd.f32 1.0, %v1320_v26  ;;  %v1347_v4 = vmul.f32 -0.5, %v8894_v7  ;;  %v4913_v26 = vadd.f32 1.0, %v8886_v48 }
 0x139   :  { %8888 = vst [vmem:[#allocation289_spill] sm:$0xff] %v4875_v55  ;;  %v4882_v20 = vpop.eup %2602  ;;  %2628 = vlog2.f32 %v4415_v44  ;;  %8891 = vst [vmem:[#allocation292_spill] sm:$0xff] %v4886_v15  ;;  %v1338_v55 = vmul.f32 -0.5, %v8892_v49  ;;  %v4900_v44 = vmul.f32 %v8875_v58, %v1303_v23  ;;  %v8902_v23 = vld [vmem:[#allocation178_spill] sm:$0xff] }
 0x13a   :  { %8890 = vst [vmem:[#allocation291_spill] sm:$0xff] %v4882_v20  ;;  %v4892_v24 = vpop.eup %2604  ;;  %2630 = vlog2.f32 %v4435_v5  ;;  %v4904_v20 = vadd.f32 1.0, %v8885_v30  ;;  %v4909_v5 = vmul.f32 %v8879_v3, %v1312_v60  ;;  %8899 = vst [vmem:[#allocation298_spill] sm:$0xff] %v4913_v26  ;;  %v8908_v3 = vand.u32 2147483647, %v8692_v34  ;;  %v8913_v60 = vld [vmem:[#allocation197_spill] sm:$0xff] }
 0x13b   :  { %8893 = vst [vmem:[#allocation293_spill] sm:$0xff] %v4892_v24  ;;  %v4896_v9 = vpop.eup %2606  ;;  %2632 = vlog2.f32 %v4443_v28  ;;  %8896 = vst [vmem:[#allocation295_spill] sm:$0xff] %v4900_v44  ;;  %v8903_v44 = vand.u32 2147483647, %v8902_v23  ;;  %v1339_v50 = vadd.f32 1.0, %v1338_v55  ;;  %v4941_v23 = vmul.f32 %v8886_v48, %v1330_v25  ;;  %v8915_v55 = vld [vmem:[#allocation180_spill] sm:$0xff] }
 0x13c   :  { %8895 = vst [vmem:[#allocation294_spill] sm:$0xff] %v4896_v9  ;;  %v4906_v15 = vpop.eup %2608  ;;  %8898 = vst [vmem:[#allocation297_spill] sm:$0xff] %v4909_v5  ;;  %v8900_v9 = vld [vmem:[#allocation194_spill] sm:$0xff]  ;;  %2634 = vlog2.f32 %v4454_v62  ;;  %vm4933_vm1 = vcmp.lt.f32.partialorder %v8908_v3, 0.0004427343  ;;  %v1348_v62 = vadd.f32 1.0, %v1347_v4 }
 0x13d   :  { %8897 = vst [vmem:[#allocation296_spill] sm:$0xff] %v4906_v15  ;;  %v1356_v28 = vmul.f32 -0.5, %v8900_v9  ;;  %v4916_v24 = vpop.eup %2610  ;;  %vm4920_vm0 = vcmp.lt.f32.partialorder %v8903_v44, 0.0004427343  ;;  %v4927_v15 = vadd.f32 1.0, %v8892_v49  ;;  %v4938_v44 = vmul.f32 %v8885_v30, %v1321_v29  ;;  %8912 = vst [vmem:[#allocation302_spill] sm:$0xff] %v4941_v23 }
 0x13e   :  { %8901 = vst [vmem:[#allocation299_spill] sm:$0xff] %v4916_v24  ;;  %v4929_v5 = vpop.eup %2612  ;;  %v1365_v58 = vmul.f32 -0.5, %v8913_v60  ;;  %v8916_v11 = vand.u32 2147483647, %v8915_v55  ;;  %v8919_v34 = vld [vmem:[#allocation181_spill] sm:$0xff]  ;;  %2636 = vlog2.f32 %v4474_v16  ;;  %v8923_v25 = vld [vmem:[#allocation199_spill] sm:$0xff]  ;;  %v4969_v16 = vmul.f32 %v8892_v49, %v1339_v50 }
 0x13f   :  { %8906 = vst [vmem:[#allocation178_spill] sm:$0xff] %v4927_v15  ;;  %8907 = vst [vmem:[#allocation300_spill] sm:$0xff] %v4929_v5  ;;  %v4944_v59 = vpop.eup %2614  ;;  %v8920_v3 = vand.u32 2147483647, %v8919_v34  ;;  %v1374_v4 = vmul.f32 -0.5, %v8923_v25  ;;  %v8924_v23 = vld [vmem:[#allocation201_spill] sm:$0xff]  ;;  %2638 = vlog2.f32 %v4482_v27 }
 0x140   :  { %8911 = vst [vmem:[#allocation301_spill] sm:$0xff] %v4938_v44  ;;  %8914 = vst [vmem:[#allocation303_spill] sm:$0xff] %v4944_v59  ;;  %vm4948_vm2 = vcmp.lt.f32.partialorder %v8916_v11, 0.0004427343  ;;  %v1383_v59 = vmul.f32 -0.5, %v8924_v23  ;;  %v2617_v44 = vpop.eup %2616  ;;  %v4964_v11 = vadd.f32 1.0, %v8894_v7  ;;  %2640 = vlog2.f32 %v4499_v32 }
 0x141   :  { %vm4954_vm3 = vcmp.lt.f32.partialorder %v8920_v3, 0.0004427343  ;;  %v1357_v34 = vadd.f32 1.0, %v1356_v28  ;;  %v2619_v3 = vpop.eup %2618  ;;  %8926 = vst [vmem:[#allocation181_spill] sm:$0xff] %v4969_v16  ;;  %v4972_v29 = vadd.f32 1.0, %v8900_v9  ;;  %v8931_v55 = vld [vmem:[#allocation183_spill] sm:$0xff]  ;;  %2642 = vlog2.f32 %v4513_v38 }
 0x142   :  { %8925 = vst [vmem:[#allocation180_spill] sm:$0xff] %v4964_v11  ;;  %v2621_v30 = vpop.eup %2620  ;;  %v8928_v27 = vand.u32 2147483647, %v8713_v42  ;;  %v8932_v28 = vand.u32 2147483647, %v8931_v55  ;;  %v4989_v32 = vmul.f32 %v8894_v7, %v1348_v62  ;;  %v4992_v50 = vadd.f32 1.0, %v8913_v60 }
 0x143   :  { %8927 = vst [vmem:[#allocation304_spill] sm:$0xff] %v4972_v29  ;;  %v1366_v48 = vadd.f32 1.0, %v1365_v58  ;;  %v2623_v42 = vpop.eup %2622  ;;  %2644 = vlog2.f32 %v4524_v35  ;;  %v1384_v38 = vadd.f32 1.0, %v1383_v59  ;;  %v932_v62 = vmul.f32 0.6931472, %v2617_v44  ;;  %v8947_v59 = vld [vmem:[#allocation203_spill] sm:$0xff] }
 0x144   :  { %vm4977_vm4 = vcmp.lt.f32.partialorder %v8928_v27, 0.0004427343  ;;  %vm4983_vm5 = vcmp.lt.f32.partialorder %v8932_v28, 0.0004427343  ;;  %8935 = vst [vmem:[#allocation183_spill] sm:$0xff] %v4989_v32  ;;  %8936 = vst [vmem:[#allocation305_spill] sm:$0xff] %v4992_v50  ;;  %v2625_v49 = vpop.eup %2624  ;;  %2646 = vlog2.f32 %v4531_v61  ;;  %v5016_v35 = vmul.f32 %v8900_v9, %v1357_v34 }
 0x145   :  { %v8937_v27 = vand.u32 2147483647, %v8725_v33  ;;  %v1375_v28 = vadd.f32 1.0, %v1374_v4  ;;  %v8940_v32 = vand.u32 2147483647, %v8727_v17  ;;  %v1392_v4 = vmul.f32 -0.5, %v8947_v59  ;;  %v2627_v44 = vpop.eup %2626 }
 0x146   :  { %v8943_v33 = vand.u32 2147483647, %v8729_v46  ;;  %8946 = vst [vmem:[#allocation306_spill] sm:$0xff] %v5016_v35  ;;  %v5020_v17 = vadd.f32 1.0, %v8923_v25  ;;  %v5024_v46 = vadd.f32 1.0, %v8924_v23  ;;  %v5033_v35 = vmul.f32 %v8913_v60, %v1366_v48  ;;  %v8991_v26 = vld [vmem:[#allocation219_spill] sm:$0xff] }
 0x147   :  { %vm4996_vm6 = vcmp.lt.f32.partialorder %v8937_v27, 0.0004427343  ;;  %vm5004_vm7 = vcmp.lt.f32.partialorder %v8940_v32, 0.0004427343  ;;  %v941_v27 = vmul.f32 0.6931472, %v2619_v3  ;;  %2648 = vlog2.f32 %v4552_v21 }
 0x148   :  { %vm5010_vm8 = vcmp.lt.f32.partialorder %v8943_v33, 0.0004427343  ;;  %8948 = vst [vmem:[#allocation307_spill] sm:$0xff] %v5020_v17  ;;  %8949 = vst [vmem:[#allocation308_spill] sm:$0xff] %v5024_v46  ;;  %v2629_v33 = vpop.eup %2628  ;;  %v950_v55 = vmul.f32 0.6931472, %v2621_v30  ;;  %v5038_v32 = vmul.f32 %v8923_v25, %v1375_v28  ;;  %v5041_v30 = vmul.f32 %v8924_v23, %v1384_v38 }
 0x149   :  { %v959_v50 = vmul.f32 0.6931472, %v2623_v42  ;;  %v8950_v61 = vand.u32 2147483647, %v8737_v6  ;;  %8953 = vst [vmem:[#allocation309_spill] sm:$0xff] %v5033_v35  ;;  %v2631_v9 = vpop.eup %2630  ;;  %v5044_v6 = vadd.f32 1.0, %v8947_v59  ;;  %2650 = vlog2.f32 %v4561_v31 }
 0x14a   :  { %8954 = vst [vmem:[#allocation310_spill] sm:$0xff] %v5038_v32  ;;  %8955 = vst [vmem:[#allocation311_spill] sm:$0xff] %v5041_v30  ;;  %v2633_v42 = vpop.eup %2632  ;;  %v1393_v3 = vadd.f32 1.0, %v1392_v4  ;;  %v8958_v21 = vld [vmem:[#allocation158_spill] sm:$0xff]  ;;  %v968_v32 = vmul.f32 0.6931472, %v2625_v49  ;;  %2652 = vlog2.f32 %v4577_v51 }
 0x14b   :  { %vm5028_vm9 = vcmp.lt.f32.partialorder %v8950_v61, 0.0004427343  ;;  %8956 = vst [vmem:[#allocation312_spill] sm:$0xff] %v5044_v6  ;;  %v8957_v61 = vld [vmem:[#allocation182_spill] sm:$0xff]  ;;  %v947_v28 = vsel %vm4933_vm1, %v8958_v21, %v941_v27  ;;  %v5054_v38 = vmul.f32 0.6931472, %v2627_v44  ;;  %v2635_v40 = vpop.eup %2634  ;;  %2654 = vlog2.f32 %v4591_v53 }
 0x14c   :  { %v938_v48 = vsel %vm4920_vm0, %v8957_v61, %v932_v62  ;;  %v8959_v30 = vand.u32 2147483647, %v8739_v0  ;;  %v8962_v31 = vld [vmem:[#allocation212_spill] sm:$0xff]  ;;  %v8963_v4 = vld [vmem:[#allocation214_spill] sm:$0xff]  ;;  %v5069_v49 = vmul.f32 0.6931472, %v2629_v33  ;;  %2656 = vlog2.f32 %v4602_v41  ;;  %v2637_v33 = vpop.eup %2636 }
 0x14d   :  { %v956_v62 = vsel %vm4948_vm2, %v8962_v31, %v950_v55  ;;  %v965_v24 = vsel %vm4954_vm3, %v8963_v4, %v959_v50  ;;  %v8964_v44 = vld [vmem:[#allocation136_spill] sm:$0xff]  ;;  %v5084_v5 = vmul.f32 0.6931472, %v2631_v9  ;;  %v5086_v15 = vmul.f32 0.6931472, %v2633_v42  ;;  %v8972_v50 = vld [vmem:[#allocation205_spill] sm:$0xff] }
 0x14e   :  { %vm5058_vm10 = vcmp.lt.f32.partialorder %v8959_v30, 0.0004427343  ;;  %v8965_v27 = vand.u32 2147483647, %v8964_v44  ;;  %v8968_v30 = vld [vmem:[#allocation137_spill] sm:$0xff]  ;;  %v1401_v55 = vmul.f32 -0.5, %v8972_v50  ;;  %2658 = vlog2.f32 %v4609_v56 }
 0x14f   :  { %v8969_v61 = vand.u32 2147483647, %v8968_v30  ;;  %v8973_v21 = vand.u32 2147483647, %v8750_v14  ;;  %v8976_v4 = vld [vmem:[#allocation139_spill] sm:$0xff]  ;;  %v5104_v53 = vmul.f32 %v8947_v59, %v1393_v3  ;;  %v8981_v41 = vld [vmem:[#allocation8_spill] sm:$0xff]  ;;  %2660 = vlog2.f32 %v4630_v13 }
 0x150   :  { %vm5073_vm11 = vcmp.lt.f32.partialorder %v8965_v27, 0.0004427343  ;;  %v8977_v44 = vand.u32 2147483647, %v8976_v4  ;;  %v8982_v9 = vmin.f32 %v8981_v41, 0.0  ;;  %v8983_v30 = vld [vmem:[#allocation9_spill] sm:$0xff]  ;;  %2662 = vlog2.f32 %v4639_v39 }
 0x151   :  { %vm5079_vm12 = vcmp.lt.f32.partialorder %v8969_v61, 0.0004427343  ;;  %vm5092_vm13 = vcmp.lt.f32.partialorder %v8973_v21, 0.0004427343  ;;  %8980 = vst [vmem:[#allocation182_spill] sm:$0xff] %v5104_v53  ;;  %v8984_v14 = vmin.f32 %v8983_v30, 0.0  ;;  %v2639_v21 = vpop.eup %2638  ;;  %2664 = vlog2.f32 %v4649_v2 }
 0x152   :  { %vm5098_vm14 = vcmp.lt.f32.partialorder %v8977_v44, 0.0004427343  ;;  %v2082_v42 = vsub.f32 %v8982_v9, %v938_v48  ;;  %v8985_v35 = vld [vmem:[#allocation216_spill] sm:$0xff]  ;;  %v8986_v44 = vld [vmem:[#allocation161_spill] sm:$0xff]  ;;  %v5117_v56 = vmul.f32 0.6931472, %v2635_v40  ;;  %2666 = vlog2.f32 %v4669_v1 }
 0x153   :  { %v2083_v61 = vsub.f32 %v8984_v14, %v947_v28  ;;  %v974_v4 = vsel %vm4977_vm4, %v8985_v35, %v968_v32  ;;  %v983_v25 = vsel %vm4983_vm5, %v8986_v44, %v5054_v38  ;;  %v8987_v3 = vand.u32 2147483647, %v8759_v57  ;;  %v2641_v28 = vpop.eup %2640  ;;  %v8992_v32 = vld [vmem:[#allocation10_spill] sm:$0xff]  ;;  %v8994_v9 = vld [vmem:[#allocation221_spill] sm:$0xff]  ;;  %v8995_v14 = vld [vmem:[#allocation223_spill] sm:$0xff] }
 0x154   :  { %v8988_v41 = vmov 0  ;;  %v5126_v48 = vadd.f32 1.0, %v8972_v50  ;;  %v992_v35 = vsel %vm4996_vm6, %v8991_v26, %v5069_v49  ;;  %v8993_v38 = vmin.f32 %v8992_v32, 0.0  ;;  %v2643_v40 = vpop.eup %2642  ;;  %v8999_v7 = vld [vmem:[#allocation11_spill] sm:$0xff]  ;;  %v9044_v60 = vld [vmem:[#allocation148_spill] sm:$0xff] }
 0x155   :  { %vm5121_vm15 = vcmp.lt.f32.partialorder %v8987_v3, 0.0004427343  ;;  %v1001_v30 = vsel %vm5004_vm7, %v8994_v9, %v5084_v5  ;;  %v1010_v44 = vsel %vm5010_vm8, %v8995_v14, %v5086_v15  ;;  %v1402_v16 = vadd.f32 1.0, %v1401_v55  ;;  %v2645_v13 = vpop.eup %2644  ;;  %v9001_v15 = vld [vmem:[#allocation226_spill] sm:$0xff]  ;;  %v9034_v39 = vld [vmem:[#allocation235_spill] sm:$0xff]  ;;  %v9112_v51 = vld [vmem:[#allocation204_spill] sm:$0xff] }
 0x156   :  { %v8989_v41 = vsel %vm5121_vm15, 4294967295, %v8988_v41  ;;  %8990 = vst [vmem:[#allocation158_spill] sm:$0xff] %v5126_v48  ;;  %v2084_v57 = vsub.f32 %v8993_v38, %v956_v62  ;;  %v5145_v49 = vmul.f32 0.6931472, %v2637_v33  ;;  %v8996_v3 = vand.u32 2147483647, %v8761_v18  ;;  %v2647_v58 = vpop.eup %2646 }
 0x157   :  { %v8997_v62 = vmov 0  ;;  %v9000_v5 = vmin.f32 %v8999_v7, 0.0  ;;  %v2211_v32 = vadd.f32 %v2083_v61, %v2082_v42  ;;  %v5160_v55 = vmul.f32 0.6931472, %v2639_v21  ;;  %v9010_v21 = vld [vmem:[#allocation155_spill] sm:$0xff]  ;;  %v9049_v48 = vld [vmem:[#allocation192_spill] sm:$0xff] }
 0x158   :  { %vm5149_vm0 = vcmp.lt.f32.partialorder %v8996_v3, 0.0004427343  ;;  %v5162_v33 = vmul.f32 0.6931472, %v2641_v28  ;;  %v9002_v18 = vand.u32 2147483647, %v8765_v52  ;;  %2668 = vlog2.f32 %v4677_v12 }
 0x159   :  { %v8998_v62 = vsel %vm5149_vm0, 4294967295, %v8997_v62  ;;  %v2085_v26 = vsub.f32 %v9000_v5, %v965_v24  ;;  %v9005_v24 = vld [vmem:[#allocation143_spill] sm:$0xff]  ;;  %v9007_v61 = vmov 0  ;;  %v1410_v38 = vmul.f32 -0.5, %v9010_v21  ;;  %v9011_v28 = vld [vmem:[#allocation12_spill] sm:$0xff]  ;;  %v2649_v5 = vpop.eup %2648 }
 0x15a   :  { %vm5167_vm1 = vcmp.lt.f32.partialorder %v9002_v18, 0.0004427343  ;;  %v9006_v42 = vand.u32 2147483647, %v9005_v24  ;;  %v9012_v9 = vmin.f32 %v9011_v28, 0.0  ;;  %v2212_v1 = vadd.f32 %v2211_v32, %v2084_v57  ;;  %v9014_v18 = vld [vmem:[#allocation228_spill] sm:$0xff]  ;;  %v2651_v23 = vpop.eup %2650 }
 0x15b   :  { %v5181_v3 = vmul.f32 0.6931472, %v2643_v40  ;;  %v5183_v52 = vmul.f32 0.6931472, %v2645_v13  ;;  %2670 = vlog2.f32 %v4688_v63  ;;  %v5187_v7 = vmul.f32 %v8972_v50, %v1402_v16  ;;  %v9021_v16 = vld [vmem:[#allocation13_spill] sm:$0xff]  ;;  %v9128_v31 = vld [vmem:[#allocation163_spill] sm:$0xff] }
 0x15c   :  { %vm5173_vm2 = vcmp.lt.f32.partialorder %v9006_v42, 0.0004427343  ;;  %v2086_v14 = vsub.f32 %v9012_v9, %v974_v4  ;;  %v1028_v12 = vsel %vm5058_vm10, %v9014_v18, %v5145_v49  ;;  %v5193_v24 = vmul.f32 0.6931472, %v2647_v58  ;;  %v9023_v49 = vld [vmem:[#allocation230_spill] sm:$0xff]  ;;  %v9024_v58 = vld [vmem:[#allocation231_spill] sm:$0xff] }
 0x15d   :  { %v9008_v61 = vsel %vm5173_vm2, 4294967295, %v9007_v61  ;;  %9013 = vst [vmem:[#allocation214_spill] sm:$0xff] %v5187_v7  ;;  %v9015_v4 = vand.u32 2147483647, %v8772_v43  ;;  %v9018_v40 = vand.u32 2147483647, %v8773_v10  ;;  %v2213_v42 = vadd.f32 %v2212_v1, %v2085_v26  ;;  %v2653_v26 = vpop.eup %2652 }
 0x15e   :  { %9009 = vst [vmem:[#allocation212_spill] sm:$0xff] %v9008_v61  ;;  %v9019_v63 = vmov 0  ;;  %v9022_v13 = vmin.f32 %v9021_v16, 0.0  ;;  %v9025_v10 = vld [vmem:[#allocation146_spill] sm:$0xff]  ;;  %v9027_v18 = vmov 0  ;;  %v1411_v1 = vadd.f32 1.0, %v1410_v38  ;;  %v2655_v28 = vpop.eup %2654 }
 0x15f   :  { %vm5197_vm3 = vcmp.lt.f32.partialorder %v9015_v4, 0.0004427343  ;;  %vm5203_vm4 = vcmp.lt.f32.partialorder %v9018_v40, 0.0004427343  ;;  %v9026_v9 = vand.u32 2147483647, %v9025_v10  ;;  %v2214_v43 = vadd.f32 %v2213_v42, %v2086_v14  ;;  %v2657_v14 = vpop.eup %2656 }
 0x160   :  { %v9020_v63 = vsel %vm5203_vm4, 4294967295, %v9019_v63  ;;  %v2087_v32 = vsub.f32 %v9022_v13, %v983_v25  ;;  %v9029_v4 = vld [vmem:[#allocation175_spill] sm:$0xff]  ;;  %v5225_v25 = vadd.f32 1.0, %v9010_v21  ;;  %v9031_v16 = vld [vmem:[#allocation14_spill] sm:$0xff]  ;;  %v9033_v10 = vld [vmem:[#allocation233_spill] sm:$0xff]  ;;  %v9037_v40 = vmov 0  ;;  %v2659_v59 = vpop.eup %2658 }
 0x161   :  { %vm5219_vm5 = vcmp.lt.f32.partialorder %v9026_v9, 0.0004427343  ;;  %2672 = vlog2.f32 %v9029_v4  ;;  %v9032_v13 = vmin.f32 %v9031_v16, 0.0  ;;  %v5238_v7 = vmul.f32 0.6931472, %v2649_v5  ;;  %v9035_v38 = vld [vmem:[#allocation147_spill] sm:$0xff] }
 0x162   :  { %v9028_v18 = vsel %vm5219_vm5, 4294967295, %v9027_v18  ;;  %9030 = vst [vmem:[#allocation136_spill] sm:$0xff] %v5225_v25  ;;  %v9036_v53 = vand.u32 2147483647, %v9035_v38  ;;  %v9040_v42 = vld [vmem:[#allocation237_spill] sm:$0xff]  ;;  %v9042_v9 = vld [vmem:[#allocation15_spill] sm:$0xff]  ;;  %v2215_v50 = vadd.f32 %v2214_v43, %v2087_v32 }
 0x163   :  { %v2088_v11 = vsub.f32 %v9032_v13, %v992_v35  ;;  %v9039_v35 = vld [vmem:[#allocation177_spill] sm:$0xff]  ;;  %v9041_v13 = vld [vmem:[#allocation268_spill] sm:$0xff]  ;;  %v9043_v4 = vmin.f32 %v9042_v9, 0.0  ;;  %v5254_v38 = vmul.f32 0.6931472, %v2651_v23  ;;  %v9050_v16 = vld [vmem:[#allocation207_spill] sm:$0xff]  ;;  %v5274_v23 = vmul.f32 %v9010_v21, %v1411_v1  ;;  %v2661_v9 = vpop.eup %2660 }
 0x164   :  { %vm5242_vm6 = vcmp.lt.f32.partialorder %v9036_v53, 0.0004427343  ;;  %2674 = vlog2.f32 %v9039_v35  ;;  %v5256_v53 = vmul.f32 0.6931472, %v2653_v26  ;;  %v9045_v25 = vand.u32 2147483647, %v9044_v60 }
 0x165   :  { %v9038_v40 = vsel %vm5242_vm6, 4294967295, %v9037_v40  ;;  %2676 = vlog2.f32 %v9041_v13  ;;  %v2089_v5 = vsub.f32 %v9043_v4, %v1001_v30  ;;  %v9046_v35 = vmov 0  ;;  %v9051_v13 = vld [vmem:[#allocation149_spill] sm:$0xff]  ;;  %9056 = vst [vmem:[#allocation139_spill] sm:$0xff] %v5274_v23  ;;  %v9057_v60 = vld [vmem:[#allocation16_spill] sm:$0xff]  ;;  %v9062_v1 = vld [vmem:[#allocation150_spill] sm:$0xff] }
 0x166   :  { %vm5260_vm7 = vcmp.lt.f32.partialorder %v9045_v25, 0.0004427343  ;;  %2678 = vlog2.f32 %v9049_v48  ;;  %v1419_v6 = vmul.f32 -0.5, %v9050_v16  ;;  %v9052_v46 = vand.u32 2147483647, %v9051_v13  ;;  %v9055_v32 = vld [vmem:[#allocation193_spill] sm:$0xff] }
 0x167   :  { %v9047_v35 = vsel %vm5260_vm7, 4294967295, %v9046_v35  ;;  %2680 = vlog2.f32 %v9055_v32  ;;  %v9058_v43 = vmin.f32 %v9057_v60, 0.0  ;;  %v2216_v26 = vadd.f32 %v2215_v50, %v2088_v11  ;;  %v9059_v48 = vld [vmem:[#allocation239_spill] sm:$0xff]  ;;  %v2663_v32 = vpop.eup %2662  ;;  %v9078_v21 = vld [vmem:[#allocation242_spill] sm:$0xff]  ;;  %v9138_v27 = vld [vmem:[#allocation188_spill] sm:$0xff] }
 0x168   :  { %9048 = vst [vmem:[#allocation137_spill] sm:$0xff] %v9047_v35  ;;  %vm5268_vm8 = vcmp.lt.f32.partialorder %v9052_v46, 0.0004427343  ;;  %v5282_v13 = vmul.f32 0.6931472, %v2655_v28  ;;  %2682 = vlog2.f32 %v4766_v45  ;;  %v9066_v50 = vld [vmem:[#allocation151_spill] sm:$0xff]  ;;  %v2665_v4 = vpop.eup %2664 }
 0x169   :  { %v2090_v25 = vsub.f32 %v9058_v43, %v1010_v44  ;;  %v5284_v46 = vmul.f32 0.6931472, %v2657_v14  ;;  %v5287_v17 = vmul.f32 0.6931472, %v2659_v59  ;;  %v9063_v23 = vand.u32 2147483647, %v9062_v1  ;;  %v2667_v29 = vpop.eup %2666 }
 0x16a   :  { %v9067_v11 = vand.u32 2147483647, %v9066_v50  ;;  %v9068_v60 = vmov 0  ;;  %v9070_v28 = vld [vmem:[#allocation153_spill] sm:$0xff]  ;;  %v9072_v43 = vmov 0  ;;  %v5308_v45 = vadd.f32 1.0, %v9050_v16  ;;  %v2669_v61 = vpop.eup %2668 }
 0x16b   :  { %9060 = vst [vmem:[#allocation8_spill] sm:$0xff] %v5284_v46  ;;  %9061 = vst [vmem:[#allocation9_spill] sm:$0xff] %v5287_v17  ;;  %vm5291_vm10 = vcmp.lt.f32.partialorder %v9063_v23, 0.0004427343  ;;  %v9071_v14 = vand.u32 2147483647, %v9070_v28  ;;  %v9075_v59 = vsel %vm5028_vm9, %v9001_v15, %v5117_v56  ;;  %2684 = vlog2.f32 %v4786_v36 }
 0x16c   :  { %vm5297_vm15 = vcmp.lt.f32.partialorder %v9067_v11, 0.0004427343  ;;  %9074 = vst [vmem:[#allocation216_spill] sm:$0xff] %v5308_v45  ;;  %v9076_v23 = vld [vmem:[#allocation17_spill] sm:$0xff]  ;;  %v2217_v11 = vadd.f32 %v2216_v26, %v2089_v5  ;;  %v1420_v34 = vadd.f32 1.0, %v1419_v6  ;;  %v9080_v15 = vld [vmem:[#allocation154_spill] sm:$0xff]  ;;  %2686 = vlog2.f32 %v4794_v37  ;;  %v2671_v37 = vpop.eup %2670 }
 0x16d   :  { %v9069_v60 = vsel %vm5297_vm15, 4294967295, %v9068_v60  ;;  %vm5303_vm0 = vcmp.lt.f32.partialorder %v9071_v14, 0.0004427343  ;;  %v9077_v1 = vmin.f32 %v9076_v23, 0.0  ;;  %v9079_v14 = vld [vmem:[#allocation244_spill] sm:$0xff]  ;;  %v9082_v5 = vmov 0 }
 0x16e   :  { %v9073_v43 = vsel %vm5303_vm0, 4294967295, %v9072_v43  ;;  %v5326_v56 = vmul.f32 0.6931472, %v2661_v9  ;;  %v9084_v26 = vld [vmem:[#allocation18_spill] sm:$0xff]  ;;  %v2218_v28 = vadd.f32 %v2217_v11, %v2090_v25  ;;  %v9086_v45 = vld [vmem:[#allocation247_spill] sm:$0xff]  ;;  %2688 = vlog2.f32 %v4811_v22  ;;  %v9293_v30 = vld [vmem:[#allocation201_spill] sm:$0xff] }
 0x16f   :  { %v2091_v50 = vsub.f32 %v9077_v1, %v9075_v59  ;;  %v9081_v59 = vand.u32 2147483647, %v9080_v15  ;;  %v9085_v23 = vmin.f32 %v9084_v26, 0.0  ;;  %v5351_v25 = vmul.f32 0.6931472, %v2663_v32  ;;  %v9091_v26 = vld [vmem:[#allocation19_spill] sm:$0xff] }
 0x170   :  { %v9090_v11 = vsel %vm5073_vm11, %v9023_v49, %v5160_v55  ;;  %v5360_v22 = vmul.f32 0.6931472, %v2665_v4  ;;  %v9093_v15 = vld [vmem:[#allocation156_spill] sm:$0xff]  ;;  %2690 = vlog2.f32 %v4825_v54  ;;  %v5376_v0 = vmul.f32 %v9050_v16, %v1420_v34  ;;  %v9102_v55 = vld [vmem:[#allocation209_spill] sm:$0xff]  ;;  %v2673_v4 = vpop.eup %2672 }
 0x171   :  { %vm5330_vm9 = vcmp.lt.f32.partialorder %v9081_v59, 0.0004427343  ;;  %v2092_v1 = vsub.f32 %v9085_v23, %v1028_v12  ;;  %v9088_v59 = vld [vmem:[#allocation253_spill] sm:$0xff]  ;;  %9089 = vst [vmem:[#allocation161_spill] sm:$0xff] %v5351_v25  ;;  %v9092_v23 = vmin.f32 %v9091_v26, 0.0  ;;  %v2219_v36 = vadd.f32 %v2218_v28, %v2091_v50  ;;  %v9103_v50 = vld [vmem:[#allocation255_spill] sm:$0xff] }
 0x172   :  { %v9083_v5 = vsel %vm5330_vm9, 4294967295, %v9082_v5  ;;  %v9094_v46 = vand.u32 2147483647, %v9093_v15  ;;  %v9097_v12 = vld [vmem:[#allocation157_spill] sm:$0xff]  ;;  %9101 = vst [vmem:[#allocation219_spill] sm:$0xff] %v5376_v0  ;;  %v1428_v49 = vmul.f32 -0.5, %v9102_v55  ;;  %v9105_v15 = vsel %vm5079_vm12, %v9024_v58, %v5162_v33 }
 0x173   :  { %v2093_v9 = vsub.f32 %v9092_v23, %v9090_v11  ;;  %v9098_v32 = vand.u32 2147483647, %v9097_v12  ;;  %v9104_v28 = vld [vmem:[#allocation284_spill] sm:$0xff]  ;;  %v2220_v34 = vadd.f32 %v2219_v36, %v2092_v1  ;;  %v5391_v26 = vmul.f32 0.6931472, %v2667_v29  ;;  %v9108_v0 = vld [vmem:[#allocation159_spill] sm:$0xff] }
 0x174   :  { %vm5364_vm4 = vcmp.lt.f32.partialorder %v9094_v46, 0.0004427343  ;;  %2692 = vlog2.f32 %v9104_v28  ;;  %v9106_v12 = vld [vmem:[#allocation20_spill] sm:$0xff]  ;;  %v5393_v23 = vmul.f32 0.6931472, %v2669_v61  ;;  %v2675_v28 = vpop.eup %2674  ;;  %v9116_v61 = vmov 0 }
 0x175   :  { %vm5370_vm5 = vcmp.lt.f32.partialorder %v9098_v32, 0.0004427343  ;;  %v9107_v54 = vmin.f32 %v9106_v12, 0.0  ;;  %v5395_v32 = vmul.f32 0.6931472, %v2671_v37  ;;  %2694 = vlog2.f32 %v9112_v51  ;;  %v9114_v29 = vld [vmem:[#allocation160_spill] sm:$0xff] }
 0x176   :  { %v9109_v16 = vand.u32 2147483647, %v9108_v0  ;;  %v9115_v1 = vand.u32 2147483647, %v9114_v29  ;;  %v9118_v36 = vld [vmem:[#allocation162_spill] sm:$0xff]  ;;  %v5421_v0 = vadd.f32 1.0, %v9102_v55  ;;  %v2221_v29 = vadd.f32 %v2220_v34, %v2093_v9 }
 0x177   :  { %v2094_v11 = vsub.f32 %v9107_v54, %v9105_v15  ;;  %v9119_v37 = vand.u32 2147483647, %v9118_v36  ;;  %v9123_v15 = vsel %vm5092_vm13, %v9033_v10, %v5181_v3  ;;  %v9124_v12 = vld [vmem:[#allocation21_spill] sm:$0xff]  ;;  %2696 = vlog2.f32 %v4864_v8  ;;  %v9148_v10 = vld [vmem:[#allocation23_spill] sm:$0xff] }
 0x178   :  { %vm5399_vm11 = vcmp.lt.f32.partialorder %v9109_v16, 0.0004427343  ;;  %vm5410_vm12 = vcmp.lt.f32.partialorder %v9115_v1, 0.0004427343  ;;  %v9120_v16 = vmov 0  ;;  %v9125_v54 = vmin.f32 %v9124_v12, 0.0  ;;  %v2677_v1 = vpop.eup %2676 }
 0x179   :  { %v9117_v61 = vsel %vm5410_vm12, 4294967295, %v9116_v61  ;;  %vm5416_vm6 = vcmp.lt.f32.partialorder %v9119_v37, 0.0004427343  ;;  %v9126_v58 = vld [vmem:[#allocation261_spill] sm:$0xff]  ;;  %v5434_v37 = vmul.f32 0.6931472, %v2673_v4  ;;  %v2679_v33 = vpop.eup %2678  ;;  %2698 = vlog2.f32 %v4873_v47 }
 0x17a   :  { %v9121_v16 = vsel %vm5416_vm6, 4294967295, %v9120_v16  ;;  %v2095_v51 = vsub.f32 %v9125_v54, %v9123_v15  ;;  %v1429_v25 = vadd.f32 1.0, %v1428_v49  ;;  %v9129_v35 = vand.u32 2147483647, %v9128_v31  ;;  %v9134_v4 = vld [vmem:[#allocation22_spill] sm:$0xff]  ;;  %v2681_v15 = vpop.eup %2680  ;;  %v9136_v12 = vld [vmem:[#allocation263_spill] sm:$0xff] }
 0x17b   :  { %9122 = vst [vmem:[#allocation10_spill] sm:$0xff] %v9121_v16  ;;  %9127 = vst [vmem:[#allocation221_spill] sm:$0xff] %v5434_v37  ;;  %v9130_v3 = vmov 0  ;;  %v9133_v9 = vsel %vm5098_vm14, %v9034_v39, %v5183_v52  ;;  %v9135_v34 = vmin.f32 %v9134_v4, 0.0  ;;  %v2222_v49 = vadd.f32 %v2221_v29, %v2094_v11  ;;  %v9137_v54 = vld [vmem:[#allocation264_spill] sm:$0xff]  ;;  %v2683_v52 = vpop.eup %2682  ;;  %v9386_v46 = vld [vmem:[#allocation217_spill] sm:$0xff] }
 0x17c   :  { %vm5439_vm7 = vcmp.lt.f32.partialorder %v9129_v35, 0.0004427343  ;;  %2700 = vlog2.f32 %v4889_v19  ;;  %v5465_v11 = vmul.f32 0.6931472, %v2675_v28  ;;  %v5467_v29 = vmul.f32 0.6931472, %v2677_v1 }
 0x17d   :  { %v9131_v3 = vsel %vm5439_vm7, 4294967295, %v9130_v3  ;;  %v2096_v8 = vsub.f32 %v9135_v34, %v9133_v9  ;;  %v9141_v31 = vld [vmem:[#allocation164_spill] sm:$0xff]  ;;  %v9143_v4 = vmov 0  ;;  %vm9146_vm14 = vnez %v8989_v41  ;;  %v2685_v41 = vpop.eup %2684 }
 0x17e   :  { %9132 = vst [vmem:[#allocation223_spill] sm:$0xff] %v9131_v3  ;;  %9139 = vst [vmem:[#allocation11_spill] sm:$0xff] %v5465_v11  ;;  %v9142_v9 = vand.u32 2147483647, %v9141_v31  ;;  %v9147_v34 = vsel %vm9146_vm14, %v9040_v42, %v5193_v24  ;;  %v9149_v39 = vmin.f32 %v9148_v10, 0.0  ;;  %v2223_v19 = vadd.f32 %v2222_v49, %v2095_v51  ;;  %v9153_v24 = vld [vmem:[#allocation165_spill] sm:$0xff]  ;;  %v2687_v1 = vpop.eup %2686 }
 0x17f   :  { %9140 = vst [vmem:[#allocation226_spill] sm:$0xff] %v5467_v29  ;;  %2702 = vlog2.f32 %v4904_v20  ;;  %v5488_v31 = vmul.f32 %v9102_v55, %v1429_v25  ;;  %v5491_v36 = vmul.f32 0.6931472, %v2679_v33  ;;  %v9154_v42 = vand.u32 2147483647, %v9153_v24  ;;  %v9157_v51 = vld [vmem:[#allocation166_spill] sm:$0xff] }
 0x180   :  { %vm5471_vm13 = vcmp.lt.f32.partialorder %v9142_v9, 0.0004427343  ;;  %v2097_v47 = vsub.f32 %v9149_v39, %v9147_v34  ;;  %v9152_v9 = vld [vmem:[#allocation211_spill] sm:$0xff]  ;;  %v9155_v10 = vmov 0  ;;  %v9158_v49 = vand.u32 2147483647, %v9157_v51 }
 0x181   :  { %v9144_v4 = vsel %vm5471_vm13, 4294967295, %v9143_v4  ;;  %9151 = vst [vmem:[#allocation12_spill] sm:$0xff] %v5488_v31  ;;  %v1437_v35 = vmul.f32 -0.5, %v9152_v9  ;;  %vm5495_vm14 = vcmp.lt.f32.partialorder %v9154_v42, 0.0004427343  ;;  %v9159_v39 = vmov 0 }
 0x182   :  { %9145 = vst [vmem:[#allocation143_spill] sm:$0xff] %v9144_v4  ;;  %v9156_v10 = vsel %vm5495_vm14, 4294967295, %v9155_v10  ;;  %vm5501_vm0 = vcmp.lt.f32.partialorder %v9158_v49, 0.0004427343  ;;  %v9162_v20 = vld [vmem:[#allocation298_spill] sm:$0xff]  ;;  %vm9163_vm9 = vnez %v8998_v62  ;;  %v9165_v33 = vld [vmem:[#allocation24_spill] sm:$0xff]  ;;  %v2224_v42 = vadd.f32 %v2223_v19, %v2096_v8 }
 0x183   :  { %v9160_v39 = vsel %vm5501_vm0, 4294967295, %v9159_v39  ;;  %2704 = vlog2.f32 %v9162_v20  ;;  %v9164_v25 = vsel %vm9163_vm9, %v9059_v48, %v5238_v7  ;;  %v9166_v34 = vmin.f32 %v9165_v33, 0.0  ;;  %v9169_v51 = vld [vmem:[#allocation167_spill] sm:$0xff]  ;;  %v9174_v20 = vld [vmem:[#allocation178_spill] sm:$0xff]  ;;  %v2689_v7 = vpop.eup %2688  ;;  %v9177_v19 = vld [vmem:[#allocation168_spill] sm:$0xff] }
 0x184   :  { %9161 = vst [vmem:[#allocation228_spill] sm:$0xff] %v9160_v39  ;;  %v5513_v31 = vmul.f32 0.6931472, %v2681_v15  ;;  %v5515_v37 = vmul.f32 0.6931472, %v2683_v52  ;;  %v9171_v28 = vmov 0  ;;  %2706 = vlog2.f32 %v9174_v20 }
 0x185   :  { %v2098_v24 = vsub.f32 %v9166_v34, %v9164_v25  ;;  %v9170_v49 = vand.u32 2147483647, %v9169_v51  ;;  %v5525_v62 = vadd.f32 1.0, %v9152_v9  ;;  %v9178_v25 = vand.u32 2147483647, %v9177_v19  ;;  %v9183_v51 = vld [vmem:[#allocation25_spill] sm:$0xff] }
 0x186   :  { %9167 = vst [vmem:[#allocation13_spill] sm:$0xff] %v5513_v31  ;;  %9168 = vst [vmem:[#allocation230_spill] sm:$0xff] %v5515_v37  ;;  %v9179_v33 = vmov 0  ;;  %v9182_v34 = vsel %vm5167_vm1, %v9078_v21, %v5254_v38  ;;  %v2225_v8 = vadd.f32 %v2224_v42, %v2097_v47  ;;  %v5548_v11 = vmul.f32 0.6931472, %v2685_v41  ;;  %v9186_v48 = vld [vmem:[#allocation180_spill] sm:$0xff] }
 0x187   :  { %vm5519_vm15 = vcmp.lt.f32.partialorder %v9170_v49, 0.0004427343  ;;  %vm5537_vm9 = vcmp.lt.f32.partialorder %v9178_v25, 0.0004427343  ;;  %v9184_v49 = vmin.f32 %v9183_v51, 0.0  ;;  %2708 = vlog2.f32 %v9186_v48  ;;  %v2691_v25 = vpop.eup %2690  ;;  %v9187_v29 = vld [vmem:[#allocation196_spill] sm:$0xff] }
 0x188   :  { %v9172_v28 = vsel %vm5519_vm15, 4294967295, %v9171_v28  ;;  %v9180_v33 = vsel %vm5537_vm9, 4294967295, %v9179_v33  ;;  %9185 = vst [vmem:[#allocation175_spill] sm:$0xff] %v5548_v11  ;;  %v1438_v52 = vadd.f32 1.0, %v1437_v35  ;;  %v9188_v15 = vld [vmem:[#allocation304_spill] sm:$0xff]  ;;  %v9190_v38 = vsel %vm5173_vm2, %v9079_v14, %v5256_v53  ;;  %v9191_v47 = vld [vmem:[#allocation26_spill] sm:$0xff]  ;;  %v2693_v35 = vpop.eup %2692 }
 0x189   :  { %9173 = vst [vmem:[#allocation231_spill] sm:$0xff] %v9172_v28  ;;  %9181 = vst [vmem:[#allocation146_spill] sm:$0xff] %v9180_v33  ;;  %v2099_v20 = vsub.f32 %v9184_v49, %v9182_v34  ;;  %2710 = vlog2.f32 %v9188_v15  ;;  %v9192_v41 = vmin.f32 %v9191_v47, 0.0  ;;  %v2226_v48 = vadd.f32 %v2225_v8, %v2098_v24  ;;  %v9193_v34 = vld [vmem:[#allocation198_spill] sm:$0xff]  ;;  %v9196_v21 = vld [vmem:[#allocation305_spill] sm:$0xff]  ;;  %v2695_v53 = vpop.eup %2694 }
 0x18a   :  { %v5572_v2 = vmul.f32 0.6931472, %v2687_v1  ;;  %2712 = vlog2.f32 %v9196_v21  ;;  %v9197_v14 = vld [vmem:[#allocation169_spill] sm:$0xff]  ;;  %v9201_v8 = vld [vmem:[#allocation170_spill] sm:$0xff]  ;;  %v9205_v51 = vld [vmem:[#allocation307_spill] sm:$0xff]  ;;  %v9207_v21 = vsel %vm5197_vm3, %v9086_v45, %v5282_v13  ;;  %v2697_v57 = vpop.eup %2696  ;;  %vm9219_vm7 = vnez %v9020_v63 }
 0x18b   :  { %v2100_v42 = vsub.f32 %v9192_v41, %v9190_v38  ;;  %v9198_v47 = vand.u32 2147483647, %v9197_v14  ;;  %v9202_v38 = vand.u32 2147483647, %v9201_v8  ;;  %v9203_v41 = vmov 0  ;;  %v9206_v15 = vld [vmem:[#allocation213_spill] sm:$0xff]  ;;  %v2699_v11 = vpop.eup %2698 }
 0x18c   :  { %9195 = vst [vmem:[#allocation14_spill] sm:$0xff] %v5572_v2  ;;  %2714 = vlog2.f32 %v9205_v51  ;;  %v1446_v1 = vmul.f32 -0.5, %v9206_v15  ;;  %v9208_v14 = vld [vmem:[#allocation27_spill] sm:$0xff]  ;;  %v2227_v37 = vadd.f32 %v2226_v48, %v2099_v20  ;;  %v5602_v16 = vmul.f32 0.6931472, %v2691_v25  ;;  %v9218_v20 = vld [vmem:[#allocation308_spill] sm:$0xff] }
 0x18d   :  { %vm5577_vm1 = vcmp.lt.f32.partialorder %v9198_v47, 0.0004427343  ;;  %vm5583_vm2 = vcmp.lt.f32.partialorder %v9202_v38, 0.0004427343  ;;  %v9209_v47 = vmin.f32 %v9208_v14, 0.0  ;;  %v5605_v51 = vmul.f32 %v9152_v9, %v1438_v52  ;;  %v9214_v13 = vld [vmem:[#allocation171_spill] sm:$0xff] }
 0x18e   :  { %v9204_v41 = vsel %vm5583_vm2, 4294967295, %v9203_v41  ;;  %v5600_v38 = vmul.f32 0.6931472, %v2689_v7  ;;  %9211 = vst [vmem:[#allocation233_spill] sm:$0xff] %v5602_v16  ;;  %v5607_v31 = vmul.f32 0.6931472, %v2693_v35  ;;  %2716 = vlog2.f32 %v9218_v20 }
 0x18f   :  { %v2101_v19 = vsub.f32 %v9209_v47, %v9207_v21  ;;  %9212 = vst [vmem:[#allocation235_spill] sm:$0xff] %v5605_v51  ;;  %v9215_v45 = vand.u32 2147483647, %v9214_v13  ;;  %v9216_v21 = vmov 0  ;;  %v9220_v7 = vld [vmem:[#allocation248_spill] sm:$0xff]  ;;  %v2228_v8 = vadd.f32 %v2227_v37, %v2100_v42  ;;  %v9232_v63 = vld [vmem:[#allocation173_spill] sm:$0xff] }
 0x190   :  { %9213 = vst [vmem:[#allocation147_spill] sm:$0xff] %v5607_v31  ;;  %v9221_v48 = vld [vmem:[#allocation8_spill] sm:$0xff]  ;;  %v9229_v20 = vmov 0  ;;  %v1443_v42 = vadd.f32 1.0, %v9206_v15  ;;  %vm9243_vm12 = vnez %v9028_v18  ;;  %v9246_v13 = vld [vmem:[#allocation29_spill] sm:$0xff]  ;;  %v9248_v4 = vld [vmem:[#allocation283_spill] sm:$0xff]  ;;  %vm9256_vm0 = vnez %v9038_v40 }
 0x191   :  { %vm5611_vm3 = vcmp.lt.f32.partialorder %v9215_v45, 0.0004427343  ;;  %v9222_v25 = vsel %vm9219_vm7, %v9220_v7, %v9221_v48  ;;  %v9223_v14 = vld [vmem:[#allocation28_spill] sm:$0xff]  ;;  %v5627_v45 = vmul.f32 0.6931472, %v2695_v53  ;;  %v9234_v48 = vmov 0 }
 0x192   :  { %v9217_v21 = vsel %vm5611_vm3, 4294967295, %v9216_v21  ;;  %v9224_v47 = vmin.f32 %v9223_v14, 0.0  ;;  %v9227_v49 = vld [vmem:[#allocation172_spill] sm:$0xff]  ;;  %v9233_v7 = vand.u32 2147483647, %v9232_v63  ;;  %v9244_v63 = vld [vmem:[#allocation9_spill] sm:$0xff]  ;;  %v2229_v35 = vadd.f32 %v2228_v8, %v2101_v19 }
 0x193   :  { %9226 = vst [vmem:[#allocation177_spill] sm:$0xff] %v5627_v45  ;;  %v9228_v3 = vand.u32 2147483647, %v9227_v49  ;;  %v9237_v37 = vld [vmem:[#allocation312_spill] sm:$0xff]  ;;  %v1447_v49 = vadd.f32 1.0, %v1446_v1  ;;  %v9247_v2 = vmin.f32 %v9246_v13, 0.0  ;;  %vm9319_vm2 = vnez %v9069_v60 }
 0x194   :  { %v2102_v52 = vsub.f32 %v9224_v47, %v9222_v25  ;;  %vm5637_vm7 = vcmp.lt.f32.partialorder %v9233_v7, 0.0004427343  ;;  %2718 = vlog2.f32 %v9237_v37  ;;  %v2701_v25 = vpop.eup %2700  ;;  %v9238_v14 = vld [vmem:[#allocation176_spill] sm:$0xff]  ;;  %v9240_v47 = vmov 0  ;;  %v9264_v28 = vld [vmem:[#allocation194_spill] sm:$0xff]  ;;  %v9284_v33 = vld [vmem:[#allocation199_spill] sm:$0xff] }
 0x195   :  { %vm5631_vm6 = vcmp.lt.f32.partialorder %v9228_v3, 0.0004427343  ;;  %v9235_v48 = vsel %vm5637_vm7, 4294967295, %v9234_v48  ;;  %v9239_v53 = vand.u32 2147483647, %v9238_v14  ;;  %v9242_v3 = vld [vmem:[#allocation158_spill] sm:$0xff]  ;;  %v9245_v7 = vsel %vm9243_vm12, %v9088_v59, %v9244_v63  ;;  %v2703_v51 = vpop.eup %2702 }
 0x196   :  { %v9230_v20 = vsel %vm5631_vm6, 4294967295, %v9229_v20  ;;  %9236 = vst [vmem:[#allocation268_spill] sm:$0xff] %v9235_v48  ;;  %2720 = vlog2.f32 %v9242_v3  ;;  %v2103_v37 = vsub.f32 %v9247_v2, %v9245_v7  ;;  %v9250_v1 = vld [vmem:[#allocation136_spill] sm:$0xff]  ;;  %v5671_v2 = vmul.f32 0.6931472, %v2697_v57  ;;  %v2705_v16 = vpop.eup %2704  ;;  %v9545_v39 = vld [vmem:[#allocation142_spill] sm:$0xff] }
 0x197   :  { %9231 = vst [vmem:[#allocation237_spill] sm:$0xff] %v9230_v20  ;;  %vm5645_vm13 = vcmp.lt.f32.partialorder %v9239_v53, 0.0004427343  ;;  %2722 = vlog2.f32 %v9250_v1  ;;  %v9252_v8 = vld [vmem:[#allocation152_spill] sm:$0xff]  ;;  %v9254_v63 = vmov 0  ;;  %v9257_v7 = vsel %vm9256_vm0, %v9103_v50, %v5326_v56  ;;  %v9258_v1 = vld [vmem:[#allocation30_spill] sm:$0xff]  ;;  %v2707_v40 = vpop.eup %2706 }
 0x198   :  { %v9241_v47 = vsel %vm5645_vm13, 4294967295, %v9240_v47  ;;  %v9253_v13 = vand.u32 2147483647, %v9252_v8  ;;  %v9259_v3 = vmin.f32 %v9258_v1, 0.0  ;;  %v2230_v18 = vadd.f32 %v2229_v35, %v2102_v52  ;;  %v9263_v31 = vld [vmem:[#allocation184_spill] sm:$0xff]  ;;  %v9268_v50 = vld [vmem:[#allocation197_spill] sm:$0xff] }
 0x199   :  { %v5690_v8 = vmul.f32 0.6931472, %v2699_v11  ;;  %v1452_v59 = vadd.f32 1.0, %v9263_v31  ;;  %v9265_v53 = vand.u32 2147483647, %v9264_v28  ;;  %v9270_v35 = vmov 0 }
 0x19a   :  { %vm5675_vm12 = vcmp.lt.f32.partialorder %v9253_v13, 0.0004427343  ;;  %v2104_v14 = vsub.f32 %v9259_v3, %v9257_v7  ;;  %v9262_v13 = vld [vmem:[#allocation216_spill] sm:$0xff]  ;;  %v9269_v52 = vand.u32 2147483647, %v9268_v50  ;;  %v5708_v11 = vmul.f32 %v9206_v15, %v1447_v49  ;;  %v9274_v3 = vld [vmem:[#allocation137_spill] sm:$0xff] }
 0x19b   :  { %v9255_v63 = vsel %vm5675_vm12, 4294967295, %v9254_v63  ;;  %9261 = vst [vmem:[#allocation15_spill] sm:$0xff] %v5690_v8  ;;  %2724 = vlog2.f32 %v9262_v13  ;;  %vm5696_vm0 = vcmp.lt.f32.partialorder %v9265_v53, 0.0004427343  ;;  %vm9275_vm9 = vnez %v9274_v3  ;;  %v9276_v7 = vld [vmem:[#allocation258_spill] sm:$0xff]  ;;  %v9277_v1 = vld [vmem:[#allocation161_spill] sm:$0xff] }
 0x19c   :  { %vm5702_vm15 = vcmp.lt.f32.partialorder %v9269_v52, 0.0004427343  ;;  %2726 = vlog2.f32 %v5421_v0  ;;  %9273 = vst [vmem:[#allocation192_spill] sm:$0xff] %v5708_v11  ;;  %v9278_v28 = vsel %vm9275_vm9, %v9276_v7, %v9277_v1  ;;  %v9279_v53 = vld [vmem:[#allocation31_spill] sm:$0xff]  ;;  %v2231_v45 = vadd.f32 %v2230_v18, %v2103_v37  ;;  %v2709_v52 = vpop.eup %2708 }
 0x19d   :  { %v9271_v35 = vsel %vm5702_vm15, 4294967295, %v9270_v35  ;;  %v9280_v13 = vmin.f32 %v9279_v53, 0.0  ;;  %v5717_v19 = vmul.f32 0.6931472, %v2701_v25  ;;  %v5719_v50 = vmul.f32 0.6931472, %v2703_v51  ;;  %v2711_v7 = vpop.eup %2710 }
 0x19e   :  { %9272 = vst [vmem:[#allocation148_spill] sm:$0xff] %v9271_v35  ;;  %2728 = vlog2.f32 %v5525_v62  ;;  %v1455_v0 = vmul.f32 -0.5, %v9263_v31  ;;  %v5723_v49 = vmul.f32 0.6931472, %v2705_v16  ;;  %v9285_v3 = vand.u32 2147483647, %v9284_v33 }
 0x19f   :  { %v2105_v57 = vsub.f32 %v9280_v13, %v9278_v28  ;;  %9281 = vst [vmem:[#allocation149_spill] sm:$0xff] %v5717_v19  ;;  %9282 = vst [vmem:[#allocation193_spill] sm:$0xff] %v5719_v50  ;;  %2730 = vlog2.f32 %v1443_v42  ;;  %v9288_v51 = vsel %vm5268_vm8, %v9126_v58, %v5360_v22  ;;  %v9289_v25 = vld [vmem:[#allocation32_spill] sm:$0xff]  ;;  %v2232_v18 = vadd.f32 %v2231_v45, %v2104_v14  ;;  %v2713_v58 = vpop.eup %2712  ;;  %v9298_v45 = vld [vmem:[#allocation203_spill] sm:$0xff] }
 0x1a0   :  { %9283 = vst [vmem:[#allocation16_spill] sm:$0xff] %v5723_v49  ;;  %vm5727_vm14 = vcmp.lt.f32.partialorder %v9285_v3, 0.0004427343  ;;  %v9290_v37 = vmin.f32 %v9289_v25, 0.0  ;;  %v9291_v16 = vld [vmem:[#allocation292_spill] sm:$0xff]  ;;  %v9295_v22 = vmov 0  ;;  %2732 = vlog2.f32 %v1452_v59  ;;  %v2715_v42 = vpop.eup %2714 }
 0x1a1   :  { %v5746_v28 = vmul.f32 0.6931472, %v2707_v40  ;;  %v9294_v53 = vand.u32 2147483647, %v9293_v30  ;;  %v9299_v14 = vand.u32 2147483647, %v9298_v45  ;;  %v9303_v40 = vsel %vm5291_vm10, %v9136_v12, %v5391_v26 }
 0x1a2   :  { %v2106_v62 = vsub.f32 %v9290_v37, %v9288_v51  ;;  %v9302_v3 = vld [vmem:[#allocation185_spill] sm:$0xff]  ;;  %v2233_v59 = vadd.f32 %v2232_v18, %v2105_v57  ;;  %v5773_v33 = vmul.f32 0.6931472, %v2709_v52  ;;  %v1456_v8 = vadd.f32 1.0, %v1455_v0  ;;  %v9314_v52 = vld [vmem:[#allocation155_spill] sm:$0xff]  ;;  %v9326_v50 = vld [vmem:[#allocation186_spill] sm:$0xff] }
 0x1a3   :  { %vm5750_vm8 = vcmp.lt.f32.partialorder %v9294_v53, 0.0004427343  ;;  %vm5756_vm9 = vcmp.lt.f32.partialorder %v9299_v14, 0.0004427343  ;;  %v1461_v51 = vadd.f32 1.0, %v9302_v3  ;;  %v1464_v25 = vmul.f32 -0.5, %v9302_v3 }
 0x1a4   :  { %v9296_v22 = vsel %vm5750_vm8, 4294967295, %v9295_v22  ;;  %v9304_v37 = vld [vmem:[#allocation33_spill] sm:$0xff]  ;;  %9307 = vst [vmem:[#allocation150_spill] sm:$0xff] %v5773_v33  ;;  %v1458_v1 = vand.u32 2147483647, %v9263_v31  ;;  %v9320_v26 = vsel %vm9319_vm2, %v9137_v54, %v5393_v23  ;;  %v9321_v14 = vld [vmem:[#allocation34_spill] sm:$0xff]  ;;  %v2234_v49 = vadd.f32 %v2233_v59, %v2106_v62 }
 0x1a5   :  { %9297 = vst [vmem:[#allocation239_spill] sm:$0xff] %v9296_v22  ;;  %v9305_v30 = vmin.f32 %v9304_v37, 0.0  ;;  %v9306_v45 = vld [vmem:[#allocation297_spill] sm:$0xff]  ;;  %v9315_v0 = vand.u32 2147483647, %v9314_v52  ;;  %v9322_v48 = vmin.f32 %v9321_v14, 0.0  ;;  %2734 = vlog2.f32 %v1461_v51 }
 0x1a6   :  { %v9310_v18 = vld [vmem:[#allocation205_spill] sm:$0xff]  ;;  %v5807_v52 = vmul.f32 0.6931472, %v2711_v7  ;;  %v1473_v44 = vmul.f32 -0.5, %v9326_v50  ;;  %v9327_v20 = vld [vmem:[#allocation207_spill] sm:$0xff]  ;;  %v9329_v23 = vmov 0  ;;  %vm9332_vm7 = vnez %v9073_v43 }
 0x1a7   :  { %v2107_v53 = vsub.f32 %v9305_v30, %v9303_v40  ;;  %v9311_v40 = vand.u32 2147483647, %v9310_v18  ;;  %vm5792_vm3 = vcmp.lt.f32.partialorder %v9315_v0, 0.0004427343  ;;  %v9316_v30 = vmov 0  ;;  %v2717_v18 = vpop.eup %2716  ;;  %v9334_v62 = vld [vmem:[#allocation35_spill] sm:$0xff] }
 0x1a8   :  { %v9317_v30 = vsel %vm5792_vm3, 4294967295, %v9316_v30  ;;  %v2108_v57 = vsub.f32 %v9322_v48, %v9320_v26  ;;  %9324 = vst [vmem:[#allocation153_spill] sm:$0xff] %v5807_v52  ;;  %v5809_v0 = vmul.f32 0.6931472, %v2713_v58  ;;  %v2719_v60 = vpop.eup %2718  ;;  %v9328_v19 = vand.u32 2147483647, %v9327_v20 }
 0x1a9   :  { %vm5786_vm10 = vcmp.lt.f32.partialorder %v9311_v40, 0.0004427343  ;;  %9318 = vst [vmem:[#allocation151_spill] sm:$0xff] %v9317_v30  ;;  %v9323_v40 = vld [vmem:[#allocation181_spill] sm:$0xff]  ;;  %v1465_v54 = vadd.f32 1.0, %v1464_v25  ;;  %v9333_v48 = vsel %vm9332_vm7, %v9138_v27, %v5395_v32  ;;  %v9335_v7 = vmin.f32 %v9334_v62, 0.0  ;;  %v2721_v14 = vpop.eup %2720 }
 0x1aa   :  { %9325 = vst [vmem:[#allocation17_spill] sm:$0xff] %v5809_v0  ;;  %vm5814_vm2 = vcmp.lt.f32.partialorder %v9328_v19, 0.0004427343  ;;  %v2235_v59 = vadd.f32 %v2234_v49, %v2107_v53  ;;  %v9336_v26 = vld [vmem:[#allocation183_spill] sm:$0xff]  ;;  %v5829_v19 = vmul.f32 0.6931472, %v2715_v42  ;;  %v5838_v43 = vmul.f32 %v9263_v31, %v1456_v8  ;;  %v2723_v27 = vpop.eup %2722 }
 0x1ab   :  { %v9330_v23 = vsel %vm5814_vm2, 4294967295, %v9329_v23  ;;  %v2109_v58 = vsub.f32 %v9335_v7, %v9333_v48  ;;  %v9338_v51 = vand.u32 2147483647, %v9102_v55  ;;  %v9339_v25 = vmov 0  ;;  %v9344_v42 = vld [vmem:[#allocation190_spill] sm:$0xff]  ;;  %v9345_v48 = vld [vmem:[#allocation221_spill] sm:$0xff] }
 0x1ac   :  { %9331 = vst [vmem:[#allocation242_spill] sm:$0xff] %v9330_v23  ;;  %9337 = vst [vmem:[#allocation244_spill] sm:$0xff] %v5829_v19  ;;  %v1470_v32 = vadd.f32 1.0, %v9326_v50  ;;  %v5841_v49 = vmul.f32 0.6931472, %v2717_v18  ;;  %vm9343_vm7 = vnez %v9083_v5  ;;  %v9347_v55 = vld [vmem:[#allocation36_spill] sm:$0xff]  ;;  %v2236_v20 = vadd.f32 %v2235_v59, %v2108_v57  ;;  %v2725_v57 = vpop.eup %2724 }
 0x1ad   :  { %vm5833_vm13 = vcmp.lt.f32.partialorder %v9338_v51, 0.0004427343  ;;  %9341 = vst [vmem:[#allocation154_spill] sm:$0xff] %v5838_v43  ;;  %v1467_v53 = vand.u32 2147483647, %v9302_v3  ;;  %v9346_v62 = vsel %vm9343_vm7, %v9344_v42, %v9345_v48  ;;  %v9348_v7 = vmin.f32 %v9347_v55, 0.0  ;;  %v2727_v35 = vpop.eup %2726 }
 0x1ae   :  { %v9340_v25 = vsel %vm5833_vm13, 4294967295, %v9339_v25  ;;  %9342 = vst [vmem:[#allocation18_spill] sm:$0xff] %v5841_v49  ;;  %v9349_v12 = vld [vmem:[#allocation306_spill] sm:$0xff]  ;;  %v5859_v33 = vmul.f32 0.6931472, %v2719_v60  ;;  %v9352_v42 = vmov 0  ;;  %v5874_v55 = vmul.f32 %v9302_v3, %v1465_v54  ;;  %v2729_v54 = vpop.eup %2728 }
 0x1af   :  { %v2110_v51 = vsub.f32 %v9348_v7, %v9346_v62  ;;  %v9351_v5 = vand.u32 2147483647, %v9152_v9  ;;  %v1474_v48 = vadd.f32 1.0, %v1473_v44  ;;  %v9354_v59 = vand.u32 2147483647, %v9206_v15  ;;  %v9358_v7 = vld [vmem:[#allocation215_spill] sm:$0xff] }
 0x1b0   :  { %v9355_v62 = vmov 0  ;;  %9357 = vst [vmem:[#allocation247_spill] sm:$0xff] %v5874_v55  ;;  %v1479_v60 = vadd.f32 1.0, %v9358_v7  ;;  %v9359_v9 = vld [vmem:[#allocation191_spill] sm:$0xff]  ;;  %v9362_v31 = vld [vmem:[#allocation37_spill] sm:$0xff]  ;;  %v2237_v8 = vadd.f32 %v2236_v20, %v2109_v58  ;;  %v9364_v15 = vld [vmem:[#allocation310_spill] sm:$0xff]  ;;  %2736 = vlog2.f32 %v1470_v32 }
 0x1b1   :  { %vm5863_vm12 = vcmp.lt.f32.partialorder %v9351_v5, 0.0004427343  ;;  %vm5869_vm7 = vcmp.lt.f32.partialorder %v9354_v59, 0.0004427343  ;;  %v9360_v5 = vld [vmem:[#allocation11_spill] sm:$0xff]  ;;  %v9363_v0 = vmin.f32 %v9362_v31, 0.0  ;;  %v2731_v59 = vpop.eup %2730  ;;  %v5915_v49 = vmul.f32 %v9326_v50, %v1474_v48 }
 0x1b2   :  { %v9353_v42 = vsel %vm5863_vm12, 4294967295, %v9352_v42  ;;  %v9356_v62 = vsel %vm5869_vm7, 4294967295, %v9355_v62  ;;  %v9361_v18 = vsel %vm5364_vm4, %v9359_v9, %v9360_v5  ;;  %v5888_v52 = vmul.f32 0.6931472, %v2721_v14  ;;  %v9371_v20 = vld [vmem:[#allocation195_spill] sm:$0xff]  ;;  %v9372_v14 = vld [vmem:[#allocation226_spill] sm:$0xff]  ;;  %v2733_v6 = vpop.eup %2732 }
 0x1b3   :  { %v2111_v44 = vsub.f32 %v9363_v0, %v9361_v18  ;;  %v5890_v3 = vmul.f32 0.6931472, %v2723_v27  ;;  %vm5896_vm4 = vcmp.lt.f32.partialorder %v1458_v1, 0.0004427343  ;;  %v9368_v0 = vmov 0  ;;  %v9374_v27 = vld [vmem:[#allocation38_spill] sm:$0xff] }
 0x1b4   :  { %9365 = vst [vmem:[#allocation253_spill] sm:$0xff] %v5888_v52  ;;  %v9369_v0 = vsel %vm5896_vm4, 4294967295, %v9368_v0  ;;  %v1482_v58 = vmul.f32 -0.5, %v9358_v7  ;;  %v9373_v31 = vsel %vm5370_vm5, %v9371_v20, %v9372_v14  ;;  %v9375_v18 = vmin.f32 %v9374_v27, 0.0  ;;  %v9376_v19 = vld [vmem:[#allocation182_spill] sm:$0xff]  ;;  %v9405_v30 = vld [vmem:[#allocation189_spill] sm:$0xff] }
 0x1b5   :  { %9366 = vst [vmem:[#allocation19_spill] sm:$0xff] %v5890_v3  ;;  %9370 = vst [vmem:[#allocation156_spill] sm:$0xff] %v9369_v0  ;;  %v2238_v5 = vadd.f32 %v2237_v8, %v2110_v51  ;;  %v5912_v9 = vmul.f32 0.6931472, %v2725_v57  ;;  %v1476_v17 = vand.u32 2147483647, %v9326_v50  ;;  %2738 = vlog2.f32 %v1479_v60 }
 0x1b6   :  { %v2112_v32 = vsub.f32 %v9375_v18, %v9373_v31  ;;  %v5918_v22 = vmul.f32 0.6931472, %v2727_v35  ;;  %v9378_v51 = vsel %vm5399_vm11, %v9187_v29, %v5491_v36  ;;  %v9379_v8 = vld [vmem:[#allocation39_spill] sm:$0xff]  ;;  %v9381_v57 = vld [vmem:[#allocation214_spill] sm:$0xff]  ;;  %vm5935_vm5 = vcmp.lt.f32.partialorder %v1467_v53, 0.0004427343  ;;  %v2735_v53 = vpop.eup %2734 }
 0x1b7   :  { %9377 = vst [vmem:[#allocation157_spill] sm:$0xff] %v5912_v9  ;;  %v9380_v20 = vmin.f32 %v9379_v8, 0.0  ;;  %v2239_v31 = vadd.f32 %v2238_v5, %v2111_v44  ;;  %v9383_v60 = vmov 0  ;;  %v1488_v36 = vadd.f32 1.0, %v9386_v46  ;;  %v9389_v18 = vld [vmem:[#allocation13_spill] sm:$0xff]  ;;  %v9395_v3 = vld [vmem:[#allocation187_spill] sm:$0xff] }
 0x1b8   :  { %v9384_v60 = vsel %vm5935_vm5, 4294967295, %v9383_v60  ;;  %v1491_v29 = vmul.f32 -0.5, %v9386_v46  ;;  %v5941_v27 = vmul.f32 0.6931472, %v2729_v54  ;;  %v1483_v44 = vadd.f32 1.0, %v1482_v58  ;;  %v9443_v0 = vld [vmem:[#allocation222_spill] sm:$0xff] }
 0x1b9   :  { %v2113_v14 = vsub.f32 %v9380_v20, %v9378_v51  ;;  %9385 = vst [vmem:[#allocation209_spill] sm:$0xff] %v9384_v60  ;;  %vm9388_vm11 = vnez %v9117_v61  ;;  %v9391_v51 = vld [vmem:[#allocation40_spill] sm:$0xff]  ;;  %v2240_v35 = vadd.f32 %v2239_v31, %v2112_v32  ;;  %v5954_v1 = vmul.f32 0.6931472, %v2731_v59  ;;  %v9401_v31 = vld [vmem:[#allocation230_spill] sm:$0xff] }
 0x1ba   :  { %9387 = vst [vmem:[#allocation255_spill] sm:$0xff] %v5941_v27  ;;  %v9390_v5 = vsel %vm9388_vm11, %v9193_v34, %v9389_v18  ;;  %v9392_v8 = vmin.f32 %v9391_v51, 0.0  ;;  %v1485_v54 = vand.u32 2147483647, %v9358_v7  ;;  %v1497_v58 = vadd.f32 1.0, %v9395_v3  ;;  %v9396_v61 = vld [vmem:[#allocation12_spill] sm:$0xff] }
 0x1bb   :  { %9394 = vst [vmem:[#allocation284_spill] sm:$0xff] %v5954_v1  ;;  %v5962_v18 = vmul.f32 0.6931472, %v2733_v6  ;;  %v9400_v32 = vld [vmem:[#allocation200_spill] sm:$0xff]  ;;  %v2241_v9 = vadd.f32 %v2240_v35, %v2113_v14  ;;  %2740 = vlog2.f32 %v1488_v36  ;;  %v1492_v23 = vadd.f32 1.0, %v1491_v29  ;;  %v9410_v14 = vld [vmem:[#allocation223_spill] sm:$0xff] }
 0x1bc   :  { %v2114_v20 = vsub.f32 %v9392_v8, %v9390_v5  ;;  %v9398_v5 = vld [vmem:[#allocation10_spill] sm:$0xff]  ;;  %v9403_v8 = vld [vmem:[#allocation41_spill] sm:$0xff]  ;;  %v1500_v50 = vmul.f32 -0.5, %v9395_v3  ;;  %v1506_v52 = vadd.f32 1.0, %v9405_v30  ;;  %vm5977_vm13 = vcmp.lt.f32.partialorder %v1476_v17, 0.0004427343 }
 0x1bd   :  { %9397 = vst [vmem:[#allocation20_spill] sm:$0xff] %v5962_v18  ;;  %vm9399_vm11 = vnez %v9398_v5  ;;  %v9404_v48 = vmin.f32 %v9403_v8, 0.0  ;;  %v9413_v35 = vld [vmem:[#allocation175_spill] sm:$0xff]  ;;  %v9415_v29 = vld [vmem:[#allocation42_spill] sm:$0xff]  ;;  %v1494_v6 = vand.u32 2147483647, %v9386_v46  ;;  %2742 = vlog2.f32 %v1497_v58  ;;  %v2737_v1 = vpop.eup %2736 }
 0x1be   :  { %v9402_v51 = vsel %vm9399_vm11, %v9400_v32, %v9401_v31  ;;  %v5982_v32 = vmul.f32 %v9358_v7, %v1483_v44  ;;  %vm9411_vm11 = vnez %v9410_v14  ;;  %v9416_v31 = vmin.f32 %v9415_v29, 0.0  ;;  %v9418_v14 = vld [vmem:[#allocation218_spill] sm:$0xff]  ;;  %v9419_v34 = vld [vmem:[#allocation143_spill] sm:$0xff] }
 0x1bf   :  { %v2115_v59 = vsub.f32 %v9404_v48, %v9402_v51  ;;  %v9412_v48 = vld [vmem:[#allocation280_spill] sm:$0xff]  ;;  %v2242_v8 = vadd.f32 %v2241_v9, %v2114_v20  ;;  %v1509_v7 = vmul.f32 -0.5, %v9405_v30  ;;  %v5997_v44 = vmul.f32 0.6931472, %v2735_v53  ;;  %v9424_v9 = vld [vmem:[#allocation43_spill] sm:$0xff] }
 0x1c0   :  { %9409 = vst [vmem:[#allocation159_spill] sm:$0xff] %v5982_v32  ;;  %v9414_v36 = vsel %vm9411_vm11, %v9412_v48, %v9413_v35  ;;  %v1515_v27 = vadd.f32 1.0, %v9418_v14  ;;  %vm9420_vm11 = vnez %v9419_v34  ;;  %v9421_v48 = vld [vmem:[#allocation202_spill] sm:$0xff]  ;;  %v9425_v20 = vmin.f32 %v9424_v9, 0.0 }
 0x1c1   :  { %v2116_v51 = vsub.f32 %v9416_v31, %v9414_v36  ;;  %9417 = vst [vmem:[#allocation204_spill] sm:$0xff] %v5997_v44  ;;  %v9422_v35 = vld [vmem:[#allocation14_spill] sm:$0xff]  ;;  %v2243_v31 = vadd.f32 %v2242_v8, %v2115_v59  ;;  %vm6011_vm7 = vcmp.lt.f32.partialorder %v1485_v54, 0.0004427343  ;;  %v9426_v17 = vmov 0  ;;  %v9433_v8 = vld [vmem:[#allocation44_spill] sm:$0xff] }
 0x1c2   :  { %v9423_v36 = vsel %vm9420_vm11, %v9421_v48, %v9422_v35  ;;  %v9427_v17 = vsel %vm6011_vm7, 4294967295, %v9426_v17  ;;  %v6016_v53 = vmul.f32 %v9386_v46, %v1492_v23  ;;  %v1501_v34 = vadd.f32 1.0, %v1500_v50  ;;  %v9430_v35 = vld [vmem:[#allocation220_spill] sm:$0xff] }
 0x1c3   :  { %v2117_v29 = vsub.f32 %v9425_v20, %v9423_v36  ;;  %9428 = vst [vmem:[#allocation160_spill] sm:$0xff] %v9427_v17  ;;  %2744 = vlog2.f32 %v1506_v52  ;;  %v1518_v48 = vmul.f32 -0.5, %v9418_v14  ;;  %v1524_v36 = vadd.f32 1.0, %v9430_v35  ;;  %v9453_v44 = vld [vmem:[#allocation224_spill] sm:$0xff] }
 0x1c4   :  { %9429 = vst [vmem:[#allocation162_spill] sm:$0xff] %v6016_v53  ;;  %vm9431_vm11 = vnez %v9156_v10  ;;  %v9434_v54 = vmin.f32 %v9433_v8, 0.0  ;;  %v2244_v20 = vadd.f32 %v2243_v31, %v2116_v51  ;;  %v1503_v58 = vand.u32 2147483647, %v9395_v3  ;;  %v9435_v10 = vld [vmem:[#allocation228_spill] sm:$0xff] }
 0x1c5   :  { %v9432_v59 = vsel %vm9431_vm11, %v9248_v4, %v5600_v38  ;;  %v1510_v23 = vadd.f32 1.0, %v1509_v7  ;;  %v1512_v50 = vand.u32 2147483647, %v9405_v30  ;;  %v1527_v52 = vmul.f32 -0.5, %v9430_v35  ;;  %v9437_v4 = vld [vmem:[#allocation206_spill] sm:$0xff]  ;;  %v9438_v38 = vld [vmem:[#allocation233_spill] sm:$0xff]  ;;  %v2739_v7 = vpop.eup %2738 }
 0x1c6   :  { %v2118_v9 = vsub.f32 %v9434_v54, %v9432_v59  ;;  %2746 = vlog2.f32 %v1515_v27  ;;  %vm9436_vm4 = vnez %v9435_v10  ;;  %v9440_v59 = vld [vmem:[#allocation45_spill] sm:$0xff]  ;;  %v2245_v54 = vadd.f32 %v2244_v20, %v2117_v29  ;;  %v9449_v29 = vld [vmem:[#allocation147_spill] sm:$0xff] }
 0x1c7   :  { %v9439_v8 = vsel %vm9436_vm4, %v9437_v4, %v9438_v38  ;;  %v9441_v51 = vmin.f32 %v9440_v59, 0.0  ;;  %v6041_v18 = vmul.f32 0.6931472, %v2737_v1  ;;  %v6044_v43 = vmul.f32 %v9395_v3, %v1501_v34  ;;  %v9446_v4 = vld [vmem:[#allocation231_spill] sm:$0xff]  ;;  %v9448_v38 = vld [vmem:[#allocation208_spill] sm:$0xff]  ;;  %v9451_v1 = vld [vmem:[#allocation46_spill] sm:$0xff] }
 0x1c8   :  { %v1533_v11 = vadd.f32 1.0, %v9443_v0  ;;  %v1536_v46 = vmul.f32 -0.5, %v9443_v0  ;;  %vm6048_vm11 = vcmp.lt.f32.partialorder %v1494_v6, 0.0004427343  ;;  %v9444_v27 = vmov 0 }
 0x1c9   :  { %v2119_v31 = vsub.f32 %v9441_v51, %v9439_v8  ;;  %9442 = vst [vmem:[#allocation21_spill] sm:$0xff] %v6041_v18  ;;  %v9445_v27 = vsel %vm6048_vm11, 4294967295, %v9444_v27  ;;  %v1519_v10 = vadd.f32 1.0, %v1518_v48  ;;  %2748 = vlog2.f32 %v1524_v36 }
 0x1ca   :  { %vm9447_vm4 = vnez %v9446_v4  ;;  %v9452_v8 = vmin.f32 %v9451_v1, 0.0  ;;  %v2246_v3 = vadd.f32 %v2245_v54, %v2118_v9  ;;  %v6060_v34 = vmul.f32 %v9405_v30, %v1510_v23  ;;  %v9457_v4 = vld [vmem:[#allocation146_spill] sm:$0xff]  ;;  %v9460_v9 = vld [vmem:[#allocation177_spill] sm:$0xff]  ;;  %v9462_v30 = vld [vmem:[#allocation47_spill] sm:$0xff]  ;;  %v2741_v1 = vpop.eup %2740 }
 0x1cb   :  { %v9450_v20 = vsel %vm9447_vm4, %v9448_v38, %v9449_v29  ;;  %v1521_v51 = vand.u32 2147483647, %v9418_v14  ;;  %v1528_v6 = vadd.f32 1.0, %v1527_v52  ;;  %v1542_v55 = vadd.f32 1.0, %v9453_v44  ;;  %v9459_v38 = vld [vmem:[#allocation290_spill] sm:$0xff] }
 0x1cc   :  { %v2120_v59 = vsub.f32 %v9452_v8, %v9450_v20  ;;  %v6064_v60 = vmul.f32 0.6931472, %v2739_v7  ;;  %vm6066_vm5 = vcmp.lt.f32.partialorder %v1503_v58, 0.0004427343  ;;  %v1530_v36 = vand.u32 2147483647, %v9430_v35 }
 0x1cd   :  { %vm9458_vm4 = vnez %v9457_v4  ;;  %v9463_v23 = vmin.f32 %v9462_v30, 0.0  ;;  %v2247_v20 = vadd.f32 %v2246_v3, %v2119_v31  ;;  %2750 = vlog2.f32 %v1533_v11  ;;  %v9469_v3 = vld [vmem:[#allocation48_spill] sm:$0xff] }
 0x1ce   :  { %9454 = vst [vmem:[#allocation261_spill] sm:$0xff] %v6064_v60  ;;  %v9461_v54 = vsel %vm9458_vm4, %v9459_v38, %v9460_v9  ;;  %v1537_v58 = vadd.f32 1.0, %v1536_v46  ;;  %v1545_v7 = vmul.f32 -0.5, %v9453_v44  ;;  %vm6083_vm12 = vcmp.lt.f32.partialorder %v1512_v50, 0.0004427343  ;;  %v9467_v38 = vld [vmem:[#allocation138_spill] sm:$0xff] }
 0x1cf   :  { %v2121_v29 = vsub.f32 %v9463_v23, %v9461_v54  ;;  %v9464_v8 = vmov 0  ;;  %v6088_v4 = vmul.f32 %v9418_v14, %v1519_v10  ;;  %v1551_v9 = vadd.f32 1.0, %v9467_v38  ;;  %v2743_v10 = vpop.eup %2742  ;;  %v9471_v23 = vld [vmem:[#allocation225_spill] sm:$0xff] }
 0x1d0   :  { %v9465_v8 = vsel %vm6083_vm12, 4294967295, %v9464_v8  ;;  %v9468_v31 = vsel %vm5577_vm1, %v9291_v16, %v5671_v2  ;;  %v9470_v11 = vmin.f32 %v9469_v3, 0.0  ;;  %v2248_v54 = vadd.f32 %v2247_v20, %v2120_v59  ;;  %v9473_v16 = vld [vmem:[#allocation295_spill] sm:$0xff] }
 0x1d1   :  { %9466 = vst [vmem:[#allocation163_spill] sm:$0xff] %v6088_v4  ;;  %v6099_v30 = vmul.f32 %v9430_v35, %v1528_v6  ;;  %v1539_v50 = vand.u32 2147483647, %v9443_v0  ;;  %2752 = vlog2.f32 %v1542_v55  ;;  %v1554_v14 = vmul.f32 -0.5, %v9467_v38  ;;  %v9474_v59 = vld [vmem:[#allocation15_spill] sm:$0xff]  ;;  %v9476_v35 = vld [vmem:[#allocation49_spill] sm:$0xff] }
 0x1d2   :  { %v2122_v46 = vsub.f32 %v9470_v11, %v9468_v31  ;;  %v1560_v2 = vadd.f32 1.0, %v9471_v23  ;;  %vm9472_vm1 = vnez %v9204_v41  ;;  %v9477_v6 = vmin.f32 %v9476_v35, 0.0  ;;  %v2745_v41 = vpop.eup %2744 }
 0x1d3   :  { %v9475_v20 = vsel %vm9472_vm1, %v9473_v16, %v9474_v59  ;;  %v2249_v3 = vadd.f32 %v2248_v54, %v2121_v29  ;;  %v6115_v55 = vmul.f32 0.6931472, %v2741_v1  ;;  %vm6117_vm4 = vcmp.lt.f32.partialorder %v1521_v51, 0.0004427343  ;;  %v9483_v29 = vld [vmem:[#allocation149_spill] sm:$0xff]  ;;  %v9485_v54 = vld [vmem:[#allocation50_spill] sm:$0xff] }
 0x1d4   :  { %v2123_v31 = vsub.f32 %v9477_v6, %v9475_v20  ;;  %v6122_v52 = vmul.f32 %v9443_v0, %v1537_v58  ;;  %v1546_v24 = vadd.f32 1.0, %v1545_v7  ;;  %v1548_v60 = vand.u32 2147483647, %v9453_v44  ;;  %v9489_v7 = vld [vmem:[#allocation227_spill] sm:$0xff] }
 0x1d5   :  { %9478 = vst [vmem:[#allocation22_spill] sm:$0xff] %v6115_v55  ;;  %2754 = vlog2.f32 %v1551_v9  ;;  %v1563_v16 = vmul.f32 -0.5, %v9471_v23  ;;  %vm9482_vm1 = vnez %v9217_v21  ;;  %v9486_v51 = vmin.f32 %v9485_v54, 0.0  ;;  %v2747_v54 = vpop.eup %2746  ;;  %v9687_v0 = vld [vmem:[#allocation251_spill] sm:$0xff] }
 0x1d6   :  { %9481 = vst [vmem:[#allocation263_spill] sm:$0xff] %v6122_v52  ;;  %v9484_v1 = vsel %vm9482_vm1, %v9306_v45, %v9483_v29  ;;  %v2250_v20 = vadd.f32 %v2249_v3, %v2122_v46  ;;  %v6133_v35 = vmul.f32 0.6931472, %v2743_v10  ;;  %vm6135_vm7 = vcmp.lt.f32.partialorder %v1530_v36, 0.0004427343  ;;  %v9491_v45 = vld [vmem:[#allocation301_spill] sm:$0xff] }
 0x1d7   :  { %v2124_v59 = vsub.f32 %v9486_v51, %v9484_v1  ;;  %v1555_v58 = vadd.f32 1.0, %v1554_v14  ;;  %v1569_v9 = vadd.f32 1.0, %v9489_v7  ;;  %v1572_v6 = vmul.f32 -0.5, %v9489_v7  ;;  %v9492_v29 = vld [vmem:[#allocation193_spill] sm:$0xff]  ;;  %v9494_v46 = vld [vmem:[#allocation51_spill] sm:$0xff] }
 0x1d8   :  { %v1557_v21 = vand.u32 2147483647, %v9467_v38  ;;  %2756 = vlog2.f32 %v1560_v2  ;;  %v9493_v1 = vsel %vm5631_vm6, %v9491_v45, %v9492_v29  ;;  %v9495_v10 = vmin.f32 %v9494_v46, 0.0  ;;  %v9496_v2 = vld [vmem:[#allocation229_spill] sm:$0xff]  ;;  %v9501_v29 = vld [vmem:[#allocation302_spill] sm:$0xff] }
 0x1d9   :  { %v2251_v36 = vadd.f32 %v2250_v20, %v2123_v31  ;;  %v6153_v51 = vmul.f32 0.6931472, %v2745_v41  ;;  %v6156_v17 = vmul.f32 %v9453_v44, %v1546_v24  ;;  %v1578_v32 = vadd.f32 1.0, %v9496_v2  ;;  %v9499_v20 = vld [vmem:[#allocation268_spill] sm:$0xff]  ;;  %v2749_v44 = vpop.eup %2748 }
 0x1da   :  { %v2125_v3 = vsub.f32 %v9495_v10, %v9493_v1  ;;  %vm6159_vm1 = vcmp.lt.f32.partialorder %v1539_v50, 0.0004427343  ;;  %v1564_v45 = vadd.f32 1.0, %v1563_v16  ;;  %v1566_v31 = vand.u32 2147483647, %v9471_v23  ;;  %v9502_v1 = vld [vmem:[#allocation16_spill] sm:$0xff] }
 0x1db   :  { %vm9500_vm6 = vnez %v9499_v20  ;;  %v9504_v10 = vld [vmem:[#allocation52_spill] sm:$0xff]  ;;  %v2252_v55 = vadd.f32 %v2251_v36, %v2124_v59  ;;  %v6176_v24 = vmul.f32 %v9467_v38, %v1555_v58  ;;  %2758 = vlog2.f32 %v1569_v9  ;;  %v9511_v36 = vld [vmem:[#allocation53_spill] sm:$0xff] }
 0x1dc   :  { %v9503_v46 = vsel %vm9500_vm6, %v9501_v29, %v9502_v1  ;;  %v9505_v41 = vmin.f32 %v9504_v10, 0.0  ;;  %v1573_v16 = vadd.f32 1.0, %v1572_v6  ;;  %v6178_v53 = vmul.f32 0.6931472, %v2747_v54  ;;  %v9513_v9 = vld [vmem:[#allocation140_spill] sm:$0xff]  ;;  %v2751_v54 = vpop.eup %2750  ;;  %v9703_v20 = vld [vmem:[#allocation77_spill] sm:$0xff] }
 0x1dd   :  { %vm6180_vm11 = vcmp.lt.f32.partialorder %v1548_v60, 0.0004427343  ;;  %v1581_v29 = vmul.f32 -0.5, %v9496_v2  ;;  %vm9509_vm6 = vnez %v9241_v47  ;;  %v9512_v1 = vmin.f32 %v9511_v36, 0.0 }
 0x1de   :  { %v2126_v14 = vsub.f32 %v9505_v41, %v9503_v46  ;;  %9506 = vst [vmem:[#allocation264_spill] sm:$0xff] %v6178_v53  ;;  %v9510_v59 = vsel %vm9509_vm6, %v9323_v40, %v5746_v28  ;;  %v2253_v38 = vadd.f32 %v2252_v55, %v2125_v3  ;;  %v1575_v60 = vand.u32 2147483647, %v9489_v7  ;;  %v9517_v28 = vld [vmem:[#allocation150_spill] sm:$0xff] }
 0x1df   :  { %v2127_v46 = vsub.f32 %v9512_v1, %v9510_v59  ;;  %2760 = vlog2.f32 %v1578_v32  ;;  %v1587_v6 = vadd.f32 1.0, %v9513_v9  ;;  %v6198_v10 = vmul.f32 0.6931472, %v2749_v44  ;;  %v9519_v55 = vld [vmem:[#allocation54_spill] sm:$0xff]  ;;  %v2753_v1 = vpop.eup %2752 }
 0x1e0   :  { %v6201_v47 = vmul.f32 %v9471_v23, %v1564_v45  ;;  %vm9516_vm6 = vnez %v9255_v63  ;;  %v9520_v3 = vmin.f32 %v9519_v55, 0.0  ;;  %v2254_v59 = vadd.f32 %v2253_v38, %v2126_v14  ;;  %v9523_v45 = vld [vmem:[#allocation141_spill] sm:$0xff] }
 0x1e1   :  { %9514 = vst [vmem:[#allocation188_spill] sm:$0xff] %v6198_v10  ;;  %v9518_v40 = vsel %vm9516_vm6, %v9336_v26, %v9517_v28  ;;  %vm6210_vm12 = vcmp.lt.f32.partialorder %v1557_v21, 0.0004427343  ;;  %v6215_v32 = vmul.f32 %v9489_v7, %v1573_v16  ;;  %v1584_v44 = vand.u32 2147483647, %v9496_v2  ;;  %v9524_v21 = vld [vmem:[#allocation153_spill] sm:$0xff] }
 0x1e2   :  { %9515 = vst [vmem:[#allocation164_spill] sm:$0xff] %v6201_v47  ;;  %v2128_v41 = vsub.f32 %v9520_v3, %v9518_v40  ;;  %v1590_v23 = vmul.f32 -0.5, %v9513_v9  ;;  %v1596_v63 = vadd.f32 1.0, %v9523_v45  ;;  %v1582_v14 = vadd.f32 1.0, %v1581_v29  ;;  %v9526_v7 = vld [vmem:[#allocation55_spill] sm:$0xff]  ;;  %v9532_v26 = vld [vmem:[#allocation232_spill] sm:$0xff] }
 0x1e3   :  { %v9525_v38 = vsel %vm5696_vm0, %v9349_v12, %v9524_v21  ;;  %v9527_v16 = vmin.f32 %v9526_v7, 0.0  ;;  %v2255_v40 = vadd.f32 %v2254_v59, %v2127_v46  ;;  %v6231_v55 = vmul.f32 0.6931472, %v2751_v54  ;;  %v9534_v46 = vld [vmem:[#allocation309_spill] sm:$0xff]  ;;  %v9537_v59 = vld [vmem:[#allocation56_spill] sm:$0xff] }
 0x1e4   :  { %vm6233_vm6 = vcmp.lt.f32.partialorder %v1566_v31, 0.0004427343  ;;  %v9529_v3 = vmov 0  ;;  %2762 = vlog2.f32 %v1587_v6  ;;  %v1599_v58 = vmul.f32 -0.5, %v9523_v45  ;;  %v9535_v54 = vld [vmem:[#allocation17_spill] sm:$0xff]  ;;  %v9539_v21 = vld [vmem:[#allocation244_spill] sm:$0xff] }
 0x1e5   :  { %v2129_v28 = vsub.f32 %v9527_v16, %v9525_v38  ;;  %9528 = vst [vmem:[#allocation23_spill] sm:$0xff] %v6231_v55  ;;  %v9530_v3 = vsel %vm6233_vm6, 4294967295, %v9529_v3  ;;  %v1605_v29 = vadd.f32 1.0, %v9532_v26  ;;  %v1593_v12 = vand.u32 2147483647, %v9513_v9  ;;  %v2755_v16 = vpop.eup %2754 }
 0x1e6   :  { %9531 = vst [vmem:[#allocation211_spill] sm:$0xff] %v9530_v3  ;;  %v9536_v31 = vsel %vm5702_vm15, %v9534_v46, %v9535_v54  ;;  %v9538_v38 = vmin.f32 %v9537_v59, 0.0  ;;  %v2256_v6 = vadd.f32 %v2255_v40, %v2128_v41  ;;  %v6251_v50 = vmul.f32 0.6931472, %v2753_v1  ;;  %v9541_v54 = vld [vmem:[#allocation57_spill] sm:$0xff]  ;;  %v2757_v1 = vpop.eup %2756 }
 0x1e7   :  { %v1591_v53 = vadd.f32 1.0, %v1590_v23  ;;  %2764 = vlog2.f32 %v1596_v63  ;;  %v1608_v4 = vmul.f32 -0.5, %v9532_v26  ;;  %v6255_v56 = vmul.f32 %v9496_v2, %v1582_v14  ;;  %v9556_v23 = vld [vmem:[#allocation234_spill] sm:$0xff] }
 0x1e8   :  { %v2130_v7 = vsub.f32 %v9538_v38, %v9536_v31  ;;  %v1602_v10 = vand.u32 2147483647, %v9523_v45  ;;  %v9540_v46 = vsel %vm5727_vm14, %v9364_v15, %v9539_v21  ;;  %v9542_v31 = vmin.f32 %v9541_v54, 0.0  ;;  %v9551_v21 = vld [vmem:[#allocation18_spill] sm:$0xff]  ;;  %v2759_v52 = vpop.eup %2758 }
 0x1e9   :  { %v2257_v40 = vadd.f32 %v2256_v6, %v2129_v28  ;;  %vm6269_vm15 = vcmp.lt.f32.partialorder %v1575_v60, 0.0004427343  ;;  %v1600_v63 = vadd.f32 1.0, %v1599_v58  ;;  %2766 = vlog2.f32 %v1605_v29  ;;  %v9550_v6 = vld [vmem:[#allocation311_spill] sm:$0xff] }
 0x1ea   :  { %v2131_v41 = vsub.f32 %v9542_v31, %v9540_v46  ;;  %v1614_v14 = vadd.f32 1.0, %v9545_v39  ;;  %v6274_v59 = vmul.f32 0.6931472, %v2755_v16  ;;  %vm6276_vm14 = vcmp.lt.f32.partialorder %v1584_v44, 0.0004427343  ;;  %v9553_v46 = vld [vmem:[#allocation58_spill] sm:$0xff] }
 0x1eb   :  { %v1617_v28 = vmul.f32 -0.5, %v9545_v39  ;;  %v9552_v60 = vsel %vm5750_vm8, %v9550_v6, %v9551_v21  ;;  %v9554_v54 = vmin.f32 %v9553_v46, 0.0  ;;  %v2258_v58 = vadd.f32 %v2257_v40, %v2130_v7  ;;  %v9559_v40 = vld [vmem:[#allocation59_spill] sm:$0xff] }
 0x1ec   :  { %9546 = vst [vmem:[#allocation165_spill] sm:$0xff] %v6274_v59  ;;  %v6293_v44 = vmul.f32 %v9513_v9, %v1591_v53  ;;  %v1609_v16 = vadd.f32 1.0, %v1608_v4  ;;  %v1623_v55 = vadd.f32 1.0, %v9556_v23  ;;  %v6296_v38 = vmul.f32 0.6931472, %v2757_v1  ;;  %v2761_v1 = vpop.eup %2760 }
 0x1ed   :  { %v2132_v31 = vsub.f32 %v9554_v54, %v9552_v60  ;;  %v1611_v6 = vand.u32 2147483647, %v9532_v26  ;;  %v9558_v7 = vsel %vm5756_vm9, %v9376_v19, %v5859_v33  ;;  %v9560_v21 = vmin.f32 %v9559_v40, 0.0  ;;  %v9570_v40 = vld [vmem:[#allocation236_spill] sm:$0xff] }
 0x1ee   :  { %9555 = vst [vmem:[#allocation166_spill] sm:$0xff] %v6293_v44  ;;  %9557 = vst [vmem:[#allocation298_spill] sm:$0xff] %v6296_v38  ;;  %v2259_v46 = vadd.f32 %v2258_v58, %v2131_v41  ;;  %v6307_v53 = vmul.f32 %v9523_v45, %v1600_v63  ;;  %2768 = vlog2.f32 %v1614_v14  ;;  %v1620_v4 = vand.u32 2147483647, %v9545_v39  ;;  %v9565_v45 = vld [vmem:[#allocation253_spill] sm:$0xff]  ;;  %v9567_v63 = vld [vmem:[#allocation60_spill] sm:$0xff] }
 0x1ef   :  { %v2133_v60 = vsub.f32 %v9560_v21, %v9558_v7  ;;  %v1626_v9 = vmul.f32 -0.5, %v9556_v23  ;;  %vm6315_vm0 = vcmp.lt.f32.partialorder %v1593_v12, 0.0004427343  ;;  %v9562_v33 = vmov 0 }
 0x1f0   :  { %9561 = vst [vmem:[#allocation24_spill] sm:$0xff] %v6307_v53  ;;  %v9563_v33 = vsel %vm6315_vm0, 4294967295, %v9562_v33  ;;  %v1618_v19 = vadd.f32 1.0, %v1617_v28  ;;  %v9566_v41 = vsel %vm5786_vm10, %v9381_v57, %v9565_v45  ;;  %v9568_v14 = vmin.f32 %v9567_v63, 0.0 }
 0x1f1   :  { %9564 = vst [vmem:[#allocation167_spill] sm:$0xff] %v9563_v33  ;;  %v2260_v58 = vadd.f32 %v2259_v46, %v2132_v31  ;;  %v6327_v7 = vmul.f32 %v9532_v26, %v1609_v16  ;;  %2770 = vlog2.f32 %v1623_v55  ;;  %v1632_v21 = vadd.f32 1.0, %v9570_v40  ;;  %v9574_v26 = vld [vmem:[#allocation139_spill] sm:$0xff]  ;;  %v9577_v46 = vld [vmem:[#allocation61_spill] sm:$0xff] }
 0x1f2   :  { %v2134_v54 = vsub.f32 %v9568_v14, %v9566_v41  ;;  %v1635_v12 = vmul.f32 -0.5, %v9570_v40  ;;  %v6335_v28 = vmul.f32 0.6931472, %v2759_v52  ;;  %vm6337_vm8 = vcmp.lt.f32.partialorder %v1602_v10, 0.0004427343  ;;  %v9575_v16 = vld [vmem:[#allocation19_spill] sm:$0xff]  ;;  %v2763_v10 = vpop.eup %2762 }
 0x1f3   :  { %9569 = vst [vmem:[#allocation178_spill] sm:$0xff] %v6327_v7  ;;  %v9571_v57 = vmov 0  ;;  %v9576_v55 = vsel %vm5792_vm3, %v9574_v26, %v9575_v16  ;;  %v9578_v45 = vmin.f32 %v9577_v46, 0.0  ;;  %v2261_v63 = vadd.f32 %v2260_v58, %v2133_v60  ;;  %v9580_v52 = vld [vmem:[#allocation144_spill] sm:$0xff]  ;;  %v9582_v26 = vld [vmem:[#allocation219_spill] sm:$0xff]  ;;  %v9583_v16 = vld [vmem:[#allocation157_spill] sm:$0xff] }
 0x1f4   :  { %v9572_v57 = vsel %vm6337_vm8, 4294967295, %v9571_v57  ;;  %v6348_v14 = vmul.f32 0.6931472, %v2761_v1  ;;  %v1627_v13 = vadd.f32 1.0, %v1626_v9  ;;  %v1629_v37 = vand.u32 2147483647, %v9556_v23  ;;  %v2765_v59 = vpop.eup %2764 }
 0x1f5   :  { %v2135_v41 = vsub.f32 %v9578_v45, %v9576_v55  ;;  %v1641_v29 = vadd.f32 1.0, %v9580_v52  ;;  %v6353_v38 = vmul.f32 %v9545_v39, %v1618_v19  ;;  %v1638_v31 = vand.u32 2147483647, %v9570_v40  ;;  %v9585_v55 = vld [vmem:[#allocation62_spill] sm:$0xff]  ;;  %v9589_v19 = vld [vmem:[#allocation145_spill] sm:$0xff] }
 0x1f6   :  { %9579 = vst [vmem:[#allocation168_spill] sm:$0xff] %v6348_v14  ;;  %v9584_v46 = vsel %vm5814_vm2, %v9582_v26, %v9583_v16  ;;  %v9586_v60 = vmin.f32 %v9585_v55, 0.0  ;;  %v2262_v58 = vadd.f32 %v2261_v63, %v2134_v54  ;;  %vm6363_vm3 = vcmp.lt.f32.partialorder %v1611_v6, 0.0004427343  ;;  %v9592_v54 = vld [vmem:[#allocation63_spill] sm:$0xff] }
 0x1f7   :  { %2772 = vlog2.f32 %v1632_v21  ;;  %v1636_v45 = vadd.f32 1.0, %v1635_v12  ;;  %v1644_v39 = vmul.f32 -0.5, %v9580_v52  ;;  %v1650_v3 = vadd.f32 1.0, %v9589_v19 }
 0x1f8   :  { %v2136_v1 = vsub.f32 %v9586_v60, %v9584_v46  ;;  %v1653_v26 = vmul.f32 -0.5, %v9589_v19  ;;  %vm9590_vm9 = vnez %v9340_v25  ;;  %v9593_v21 = vmin.f32 %v9592_v54, 0.0  ;;  %v2767_v60 = vpop.eup %2766 }
 0x1f9   :  { %v9591_v6 = vsel %vm9590_vm9, %v9396_v61, %v5918_v22  ;;  %v2263_v63 = vadd.f32 %v2262_v58, %v2135_v41  ;;  %v6385_v46 = vmul.f32 0.6931472, %v2763_v10  ;;  %v6388_v55 = vmul.f32 %v9556_v23, %v1627_v13  ;;  %v9597_v61 = vld [vmem:[#allocation238_spill] sm:$0xff]  ;;  %v9599_v58 = vld [vmem:[#allocation235_spill] sm:$0xff]  ;;  %v9602_v10 = vld [vmem:[#allocation64_spill] sm:$0xff] }
 0x1fa   :  { %v2137_v12 = vsub.f32 %v9593_v21, %v9591_v6  ;;  %2774 = vlog2.f32 %v1641_v29  ;;  %vm6390_vm10 = vcmp.lt.f32.partialorder %v1620_v4, 0.0004427343  ;;  %v9595_v25 = vmov 0  ;;  %v9600_v6 = vld [vmem:[#allocation255_spill] sm:$0xff] }
 0x1fb   :  { %9594 = vst [vmem:[#allocation25_spill] sm:$0xff] %v6385_v46  ;;  %v9596_v25 = vsel %vm6390_vm10, 4294967295, %v9595_v25  ;;  %v1647_v22 = vand.u32 2147483647, %v9580_v52  ;;  %v1659_v41 = vadd.f32 1.0, %v9597_v61  ;;  %vm9598_vm2 = vnez %v9353_v42 }
 0x1fc   :  { %v9601_v54 = vsel %vm9598_vm2, %v9599_v58, %v9600_v6  ;;  %v9603_v21 = vmin.f32 %v9602_v10, 0.0  ;;  %v2264_v23 = vadd.f32 %v2263_v63, %v2136_v1  ;;  %v6403_v13 = vmul.f32 0.6931472, %v2765_v59  ;;  %v9608_v58 = vld [vmem:[#allocation192_spill] sm:$0xff]  ;;  %v9611_v1 = vld [vmem:[#allocation65_spill] sm:$0xff] }
 0x1fd   :  { %v6406_v29 = vmul.f32 %v9570_v40, %v1636_v45  ;;  %v1645_v4 = vadd.f32 1.0, %v1644_v39  ;;  %2776 = vlog2.f32 %v1650_v3  ;;  %vm6408_vm9 = vcmp.lt.f32.partialorder %v1629_v37, 0.0004427343  ;;  %v9609_v6 = vld [vmem:[#allocation284_spill] sm:$0xff] }
 0x1fe   :  { %v2138_v16 = vsub.f32 %v9603_v21, %v9601_v54  ;;  %9604 = vst [vmem:[#allocation180_spill] sm:$0xff] %v6403_v13  ;;  %v1654_v14 = vadd.f32 1.0, %v1653_v26  ;;  %v1662_v42 = vmul.f32 -0.5, %v9597_v61  ;;  %vm9607_vm2 = vnez %v9356_v62  ;;  %v9613_v37 = vld [vmem:[#allocation240_spill] sm:$0xff]  ;;  %v2769_v26 = vpop.eup %2768 }
 0x1ff   :  { %v9610_v54 = vsel %vm9607_vm2, %v9608_v58, %v9609_v6  ;;  %v9612_v59 = vmin.f32 %v9611_v1, 0.0  ;;  %v2265_v10 = vadd.f32 %v2264_v23, %v2137_v12  ;;  %v1656_v40 = vand.u32 2147483647, %v9589_v19  ;;  %v9615_v21 = vld [vmem:[#allocation156_spill] sm:$0xff]  ;;  %v9617_v58 = vld [vmem:[#allocation154_spill] sm:$0xff] }
 0x200   :  { %v1668_v45 = vadd.f32 1.0, %v9613_v37  ;;  %v1671_v39 = vmul.f32 -0.5, %v9613_v37  ;;  %v6427_v62 = vmul.f32 0.6931472, %v2767_v60  ;;  %2778 = vlog2.f32 %v1659_v41  ;;  %v9618_v6 = vld [vmem:[#allocation20_spill] sm:$0xff]  ;;  %v9620_v23 = vld [vmem:[#allocation66_spill] sm:$0xff] }
 0x201   :  { %v2139_v63 = vsub.f32 %v9612_v59, %v9610_v54  ;;  %vm9616_vm2 = vnez %v9615_v21  ;;  %v9621_v54 = vmin.f32 %v9620_v23, 0.0  ;;  %v2266_v59 = vadd.f32 %v2265_v10, %v2138_v16  ;;  %v9622_v41 = vld [vmem:[#allocation241_spill] sm:$0xff]  ;;  %v2771_v21 = vpop.eup %2770 }
 0x202   :  { %9614 = vst [vmem:[#allocation196_spill] sm:$0xff] %v6427_v62  ;;  %v9619_v12 = vsel %vm9616_vm2, %v9617_v58, %v9618_v6  ;;  %v6441_v46 = vmul.f32 %v9580_v52, %v1645_v4  ;;  %v1665_v60 = vand.u32 2147483647, %v9597_v61  ;;  %v1677_v44 = vadd.f32 1.0, %v9622_v41  ;;  %v9625_v10 = vld [vmem:[#allocation209_spill] sm:$0xff]  ;;  %v9627_v6 = vld [vmem:[#allocation247_spill] sm:$0xff] }
 0x203   :  { %v2140_v1 = vsub.f32 %v9621_v54, %v9619_v12  ;;  %vm6445_vm0 = vcmp.lt.f32.partialorder %v1638_v31, 0.0004427343  ;;  %v6450_v58 = vmul.f32 %v9589_v19, %v1654_v14  ;;  %v1663_v16 = vadd.f32 1.0, %v1662_v42  ;;  %v9628_v12 = vld [vmem:[#allocation204_spill] sm:$0xff]  ;;  %v9630_v52 = vld [vmem:[#allocation67_spill] sm:$0xff] }
 0x204   :  { %vm9626_vm2 = vnez %v9625_v10  ;;  %v9631_v4 = vmin.f32 %v9630_v52, 0.0  ;;  %v2267_v3 = vadd.f32 %v2266_v59, %v2139_v63  ;;  %v6459_v13 = vmul.f32 0.6931472, %v2769_v26  ;;  %v9634_v42 = vld [vmem:[#allocation243_spill] sm:$0xff]  ;;  %v9635_v63 = vld [vmem:[#allocation21_spill] sm:$0xff] }
 0x205   :  { %v9629_v23 = vsel %vm9626_vm2, %v9627_v6, %v9628_v12  ;;  %2780 = vlog2.f32 %v1668_v45  ;;  %v1672_v31 = vadd.f32 1.0, %v1671_v39  ;;  %v1680_v53 = vmul.f32 -0.5, %v9622_v41  ;;  %v9637_v45 = vld [vmem:[#allocation68_spill] sm:$0xff] }
 0x206   :  { %v2141_v54 = vsub.f32 %v9631_v4, %v9629_v23  ;;  %vm6466_vm8 = vcmp.lt.f32.partialorder %v1647_v22, 0.0004427343  ;;  %v1686_v10 = vadd.f32 1.0, %v9634_v42  ;;  %v9636_v26 = vsel %vm5977_vm13, %v5915_v49, %v9635_v63  ;;  %v9640_v22 = vld [vmem:[#allocation245_spill] sm:$0xff]  ;;  %v2773_v4 = vpop.eup %2772  ;;  %v9644_v63 = vld [vmem:[#allocation160_spill] sm:$0xff] }
 0x207   :  { %v9638_v39 = vmin.f32 %v9637_v45, 0.0  ;;  %v2268_v6 = vadd.f32 %v2267_v3, %v2140_v1  ;;  %v6478_v12 = vmul.f32 0.6931472, %v2771_v21  ;;  %2782 = vlog2.f32 %v1677_v44  ;;  %v9646_v3 = vld [vmem:[#allocation159_spill] sm:$0xff]  ;;  %v9647_v1 = vld [vmem:[#allocation261_spill] sm:$0xff]  ;;  %v2775_v7 = vpop.eup %2774 }
 0x208   :  { %v1689_v23 = vmul.f32 -0.5, %v9634_v42  ;;  %v1695_v52 = vadd.f32 1.0, %v9640_v22  ;;  %vm6482_vm2 = vcmp.lt.f32.partialorder %v1656_v40, 0.0004427343  ;;  %v6487_v5 = vmul.f32 %v9597_v61, %v1663_v16  ;;  %v9649_v44 = vld [vmem:[#allocation69_spill] sm:$0xff]  ;;  %v9659_v40 = vld [vmem:[#allocation246_spill] sm:$0xff] }
 0x209   :  { %v2142_v59 = vsub.f32 %v9638_v39, %v9636_v26  ;;  %9639 = vst [vmem:[#allocation304_spill] sm:$0xff] %v6478_v12  ;;  %v1674_v49 = vand.u32 2147483647, %v9613_v37  ;;  %vm9645_vm13 = vnez %v9644_v63  ;;  %v9650_v26 = vmin.f32 %v9649_v44, 0.0  ;;  %v9665_v12 = vld [vmem:[#allocation249_spill] sm:$0xff] }
 0x20a   :  { %9643 = vst [vmem:[#allocation212_spill] sm:$0xff] %v6487_v5  ;;  %v9648_v21 = vsel %vm9645_vm13, %v9646_v3, %v9647_v1  ;;  %v2269_v39 = vadd.f32 %v2268_v6, %v2141_v54  ;;  %v6502_v62 = vmul.f32 %v9613_v37, %v1672_v31  ;;  %v1681_v61 = vadd.f32 1.0, %v1680_v53  ;;  %v9652_v3 = vld [vmem:[#allocation162_spill] sm:$0xff] }
 0x20b   :  { %v2143_v45 = vsub.f32 %v9650_v26, %v9648_v21  ;;  %v1698_v16 = vmul.f32 -0.5, %v9640_v22  ;;  %v1683_v63 = vand.u32 2147483647, %v9622_v41  ;;  %2784 = vlog2.f32 %v1686_v10  ;;  %v9653_v1 = vld [vmem:[#allocation22_spill] sm:$0xff] }
 0x20c   :  { %vm9651_vm13 = vnez %v9445_v27  ;;  %v9655_v6 = vld [vmem:[#allocation70_spill] sm:$0xff]  ;;  %v2270_v26 = vadd.f32 %v2269_v39, %v2142_v59  ;;  %v6517_v37 = vmul.f32 0.6931472, %v2773_v4  ;;  %vm6519_vm10 = vcmp.lt.f32.partialorder %v1665_v60, 0.0004427343  ;;  %v2777_v27 = vpop.eup %2776  ;;  %v9661_v39 = vld [vmem:[#allocation71_spill] sm:$0xff] }
 0x20d   :  { %v9654_v54 = vsel %vm9651_vm13, %v9652_v3, %v9653_v1  ;;  %v9656_v21 = vmin.f32 %v9655_v6, 0.0  ;;  %v1690_v10 = vadd.f32 1.0, %v1689_v23  ;;  %2786 = vlog2.f32 %v1695_v52 }
 0x20e   :  { %v1704_v3 = vadd.f32 1.0, %v9659_v40  ;;  %v1707_v1 = vmul.f32 -0.5, %v9659_v40  ;;  %v9660_v59 = vsel %vm6066_vm5, %v6044_v43, %v6133_v35  ;;  %v2271_v6 = vadd.f32 %v2270_v26, %v2143_v45  ;;  %v2779_v26 = vpop.eup %2778 }
 0x20f   :  { %v2144_v44 = vsub.f32 %v9656_v21, %v9654_v54  ;;  %v9662_v54 = vmin.f32 %v9661_v39, 0.0  ;;  %v6532_v60 = vmul.f32 0.6931472, %v2775_v7  ;;  %v6535_v21 = vmul.f32 %v9622_v41, %v1681_v61  ;;  %v9668_v7 = vld [vmem:[#allocation72_spill] sm:$0xff] }
 0x210   :  { %v1692_v23 = vand.u32 2147483647, %v9634_v42  ;;  %v1699_v52 = vadd.f32 1.0, %v1698_v16  ;;  %vm6538_vm13 = vcmp.lt.f32.partialorder %v1674_v49, 0.0004427343  ;;  %v1713_v43 = vadd.f32 1.0, %v9665_v12 }
 0x211   :  { %v2145_v4 = vsub.f32 %v9662_v54, %v9660_v59  ;;  %v1701_v48 = vand.u32 2147483647, %v9640_v22  ;;  %vm9666_vm5 = vnez %v9465_v8  ;;  %v9669_v45 = vmin.f32 %v9668_v7, 0.0  ;;  %v9674_v54 = vld [vmem:[#allocation73_spill] sm:$0xff]  ;;  %v9783_v14 = vld [vmem:[#allocation212_spill] sm:$0xff] }
 0x212   :  { %v9667_v35 = vsel %vm9666_vm5, %v6060_v34, %v6153_v51  ;;  %v2272_v61 = vadd.f32 %v2271_v6, %v2144_v44  ;;  %v6555_v16 = vmul.f32 0.6931472, %v2777_v27  ;;  %v6558_v59 = vmul.f32 %v9634_v42, %v1690_v10  ;;  %v9671_v34 = vld [vmem:[#allocation163_spill] sm:$0xff]  ;;  %v9672_v51 = vld [vmem:[#allocation264_spill] sm:$0xff]  ;;  %v2781_v11 = vpop.eup %2780 }
 0x213   :  { %v2146_v41 = vsub.f32 %v9669_v45, %v9667_v35  ;;  %v1716_v8 = vmul.f32 -0.5, %v9665_v12  ;;  %2788 = vlog2.f32 %v1704_v3  ;;  %v1708_v39 = vadd.f32 1.0, %v1707_v1  ;;  %v9677_v3 = vld [vmem:[#allocation250_spill] sm:$0xff] }
 0x214   :  { %9670 = vst [vmem:[#allocation26_spill] sm:$0xff] %v6555_v16  ;;  %v9673_v44 = vsel %vm6117_vm4, %v9671_v34, %v9672_v51  ;;  %v9675_v6 = vmin.f32 %v9674_v54, 0.0  ;;  %v2273_v7 = vadd.f32 %v2272_v61, %v2145_v4  ;;  %v6573_v42 = vmul.f32 %v9640_v22, %v1699_v52  ;;  %v9681_v4 = vld [vmem:[#allocation188_spill] sm:$0xff]  ;;  %v9683_v51 = vld [vmem:[#allocation74_spill] sm:$0xff]  ;;  %v2783_v27 = vpop.eup %2782 }
 0x215   :  { %v1710_v10 = vand.u32 2147483647, %v9659_v40  ;;  %v1722_v1 = vadd.f32 1.0, %v9677_v3  ;;  %v6577_v45 = vmul.f32 0.6931472, %v2779_v26  ;;  %2790 = vlog2.f32 %v1713_v43 }
 0x216   :  { %v2147_v35 = vsub.f32 %v9675_v6, %v9673_v44  ;;  %9676 = vst [vmem:[#allocation198_spill] sm:$0xff] %v6573_v42  ;;  %vm6579_vm4 = vcmp.lt.f32.partialorder %v1683_v63, 0.0004427343  ;;  %v9682_v61 = vsel %vm6135_vm7, %v6099_v30, %v9681_v4  ;;  %v9684_v22 = vmin.f32 %v9683_v51, 0.0  ;;  %v9689_v4 = vld [vmem:[#allocation23_spill] sm:$0xff] }
 0x217   :  { %9678 = vst [vmem:[#allocation305_spill] sm:$0xff] %v6577_v45  ;;  %v2274_v44 = vadd.f32 %v2273_v7, %v2146_v41  ;;  %vm6594_vm5 = vcmp.lt.f32.partialorder %v1692_v23, 0.0004427343  ;;  %v1717_v54 = vadd.f32 1.0, %v1716_v8  ;;  %v1725_v43 = vmul.f32 -0.5, %v9677_v3  ;;  %v9688_v7 = vld [vmem:[#allocation263_spill] sm:$0xff] }
 0x218   :  { %v2148_v52 = vsub.f32 %v9684_v22, %v9682_v61  ;;  %v1731_v6 = vadd.f32 1.0, %v9687_v0  ;;  %v6601_v30 = vmul.f32 %v9659_v40, %v1708_v39  ;;  %v1734_v41 = vmul.f32 -0.5, %v9687_v0  ;;  %v9691_v23 = vld [vmem:[#allocation75_spill] sm:$0xff]  ;;  %v9697_v39 = vld [vmem:[#allocation252_spill] sm:$0xff] }
 0x219   :  { %v9690_v61 = vsel %vm6159_vm1, %v9688_v7, %v9689_v4  ;;  %v9692_v51 = vmin.f32 %v9691_v23, 0.0  ;;  %v2275_v26 = vadd.f32 %v2274_v44, %v2147_v35  ;;  %v6611_v8 = vmul.f32 0.6931472, %v2781_v11  ;;  %v9699_v35 = vld [vmem:[#allocation76_spill] sm:$0xff] }
 0x21a   :  { %vm6613_vm7 = vcmp.lt.f32.partialorder %v1701_v48, 0.0004427343  ;;  %v9694_v49 = vmov 0  ;;  %v1719_v40 = vand.u32 2147483647, %v9665_v12  ;;  %2792 = vlog2.f32 %v1722_v1 }
 0x21b   :  { %v2149_v22 = vsub.f32 %v9692_v51, %v9690_v61  ;;  %9693 = vst [vmem:[#allocation169_spill] sm:$0xff] %v6611_v8  ;;  %v9695_v49 = vsel %vm6613_vm7, 4294967295, %v9694_v49  ;;  %v1740_v16 = vadd.f32 1.0, %v9697_v39  ;;  %v1728_v7 = vand.u32 2147483647, %v9677_v3  ;;  %v2785_v61 = vpop.eup %2784 }
 0x21c   :  { %9696 = vst [vmem:[#allocation170_spill] sm:$0xff] %v9695_v49  ;;  %v9698_v48 = vsel %vm6180_vm11, %v6156_v17, %v6251_v50  ;;  %v9700_v11 = vmin.f32 %v9699_v35, 0.0  ;;  %v2276_v4 = vadd.f32 %v2275_v26, %v2148_v52  ;;  %v6631_v1 = vmul.f32 0.6931472, %v2783_v27  ;;  %v2787_v18 = vpop.eup %2786  ;;  %v9701_v17 = vld [vmem:[#allocation165_spill] sm:$0xff]  ;;  %v9710_v35 = vld [vmem:[#allocation298_spill] sm:$0xff] }
 0x21d   :  { %v6634_v23 = vmul.f32 %v9665_v12, %v1717_v54  ;;  %v1726_v51 = vadd.f32 1.0, %v1725_v43  ;;  %2794 = vlog2.f32 %v1731_v6  ;;  %v1735_v45 = vadd.f32 1.0, %v1734_v41  ;;  %v9705_v54 = vld [vmem:[#allocation254_spill] sm:$0xff] }
 0x21e   :  { %v2150_v44 = vsub.f32 %v9700_v11, %v9698_v48  ;;  %v1743_v5 = vmul.f32 -0.5, %v9697_v39  ;;  %v9702_v50 = vsel %vm6210_vm12, %v6176_v24, %v9701_v17  ;;  %v9704_v48 = vmin.f32 %v9703_v20, 0.0 }
 0x21f   :  { %v2277_v26 = vadd.f32 %v2276_v4, %v2149_v22  ;;  %v1737_v27 = vand.u32 2147483647, %v9687_v0  ;;  %2796 = vlog2.f32 %v1740_v16  ;;  %v1749_v43 = vadd.f32 1.0, %v9705_v54  ;;  %v9709_v22 = vld [vmem:[#allocation164_spill] sm:$0xff]  ;;  %v9712_v4 = vld [vmem:[#allocation78_spill] sm:$0xff] }
 0x220   :  { %v2151_v52 = vsub.f32 %v9704_v48, %v9702_v50  ;;  %v6650_v6 = vmul.f32 0.6931472, %v2785_v61  ;;  %vm6652_vm11 = vcmp.lt.f32.partialorder %v1710_v10, 0.0004427343  ;;  %v1752_v24 = vmul.f32 -0.5, %v9705_v54  ;;  %v9716_v48 = vld [vmem:[#allocation256_spill] sm:$0xff] }
 0x221   :  { %v9711_v11 = vsel %vm6233_vm6, %v9709_v22, %v9710_v35  ;;  %v9713_v17 = vmin.f32 %v9712_v4, 0.0  ;;  %v2278_v20 = vadd.f32 %v2277_v26, %v2150_v44  ;;  %vm6664_vm12 = vcmp.lt.f32.partialorder %v1719_v40, 0.0004427343  ;;  %v9719_v44 = vld [vmem:[#allocation79_spill] sm:$0xff] }
 0x222   :  { %v9714_v16 = vmov 0  ;;  %v6669_v10 = vmul.f32 %v9677_v3, %v1726_v51  ;;  %v1746_v61 = vand.u32 2147483647, %v9697_v39  ;;  %v1758_v12 = vadd.f32 1.0, %v9716_v48  ;;  %v2789_v3 = vpop.eup %2788 }
 0x223   :  { %v2152_v50 = vsub.f32 %v9713_v17, %v9711_v11  ;;  %v9715_v16 = vsel %vm6664_vm12, 4294967295, %v9714_v16  ;;  %v1761_v41 = vmul.f32 -0.5, %v9716_v48  ;;  %v6674_v8 = vmul.f32 0.6931472, %v2787_v18  ;;  %v9723_v18 = vld [vmem:[#allocation168_spill] sm:$0xff] }
 0x224   :  { %v1744_v22 = vadd.f32 1.0, %v1743_v5  ;;  %v9718_v40 = vsel %vm6269_vm15, %v6215_v32, %v6335_v28  ;;  %v9720_v26 = vmin.f32 %v9719_v44, 0.0  ;;  %v2279_v11 = vadd.f32 %v2278_v20, %v2151_v52  ;;  %v2791_v20 = vpop.eup %2790  ;;  %v9727_v44 = vld [vmem:[#allocation257_spill] sm:$0xff] }
 0x225   :  { %9717 = vst [vmem:[#allocation307_spill] sm:$0xff] %v6674_v8  ;;  %v6688_v4 = vmul.f32 %v9687_v0, %v1735_v45  ;;  %2798 = vlog2.f32 %v1749_v43  ;;  %v1755_v5 = vand.u32 2147483647, %v9705_v54  ;;  %vm6695_vm1 = vcmp.lt.f32.partialorder %v1728_v7, 0.0004427343  ;;  %v9725_v45 = vld [vmem:[#allocation80_spill] sm:$0xff] }
 0x226   :  { %v2153_v35 = vsub.f32 %v9720_v26, %v9718_v40  ;;  %v1753_v28 = vadd.f32 1.0, %v1752_v24  ;;  %v9724_v52 = vsel %vm6276_vm14, %v6255_v56, %v9723_v18  ;;  %v9726_v0 = vmin.f32 %v9725_v45, 0.0  ;;  %v9735_v18 = vld [vmem:[#allocation81_spill] sm:$0xff] }
 0x227   :  { %v2280_v17 = vadd.f32 %v2279_v11, %v2152_v50  ;;  %2800 = vlog2.f32 %v1758_v12  ;;  %v1762_v40 = vadd.f32 1.0, %v1761_v41  ;;  %v1767_v26 = vadd.f32 1.0, %v9727_v44  ;;  %v9730_v50 = vld [vmem:[#allocation167_spill] sm:$0xff]  ;;  %v9732_v12 = vld [vmem:[#allocation166_spill] sm:$0xff]  ;;  %v9733_v41 = vld [vmem:[#allocation25_spill] sm:$0xff]  ;;  %v2793_v42 = vpop.eup %2792 }
 0x228   :  { %v2154_v43 = vsub.f32 %v9726_v0, %v9724_v52  ;;  %v1770_v7 = vmul.f32 -0.5, %v9727_v44  ;;  %vm6712_vm6 = vcmp.lt.f32.partialorder %v1737_v27, 0.0004427343  ;;  %v6717_v56 = vmul.f32 %v9697_v39, %v1744_v22  ;;  %v9737_v27 = vld [vmem:[#allocation259_spill] sm:$0xff] }
 0x229   :  { %vm9731_vm15 = vnez %v9730_v50  ;;  %v9736_v52 = vmin.f32 %v9735_v18, 0.0  ;;  %v2281_v0 = vadd.f32 %v2280_v17, %v2153_v35  ;;  %v6726_v32 = vmul.f32 0.6931472, %v2789_v3  ;;  %v9739_v50 = vld [vmem:[#allocation24_spill] sm:$0xff]  ;;  %v9742_v35 = vld [vmem:[#allocation82_spill] sm:$0xff] }
 0x22a   :  { %v9734_v11 = vsel %vm9731_vm15, %v9732_v12, %v9733_v41  ;;  %v1764_v24 = vand.u32 2147483647, %v9716_v48  ;;  %v1776_v51 = vadd.f32 1.0, %v9737_v27  ;;  %v1779_v8 = vmul.f32 -0.5, %v9737_v27  ;;  %v9740_v12 = vld [vmem:[#allocation180_spill] sm:$0xff]  ;;  %v2795_v49 = vpop.eup %2794 }
 0x22b   :  { %v2155_v45 = vsub.f32 %v9736_v52, %v9734_v11  ;;  %v6731_v39 = vmul.f32 0.6931472, %v2791_v20  ;;  %v6734_v22 = vmul.f32 %v9705_v54, %v1753_v28  ;;  %vm9738_vm14 = vnez %v9572_v57  ;;  %v9746_v54 = vld [vmem:[#allocation260_spill] sm:$0xff] }
 0x22c   :  { %v9741_v41 = vsel %vm9738_vm14, %v9739_v50, %v9740_v12  ;;  %v9743_v3 = vmin.f32 %v9742_v35, 0.0  ;;  %v2282_v11 = vadd.f32 %v2281_v0, %v2154_v43  ;;  %vm6743_vm15 = vcmp.lt.f32.partialorder %v1746_v61, 0.0004427343  ;;  %v9747_v12 = vld [vmem:[#allocation178_spill] sm:$0xff]  ;;  %v9748_v43 = vld [vmem:[#allocation196_spill] sm:$0xff]  ;;  %v9750_v0 = vld [vmem:[#allocation83_spill] sm:$0xff] }
 0x22d   :  { %v6748_v52 = vmul.f32 %v9716_v48, %v1762_v40  ;;  %2802 = vlog2.f32 %v1767_v26  ;;  %v1771_v20 = vadd.f32 1.0, %v1770_v7  ;;  %v1788_v28 = vmul.f32 -0.5, %v9746_v54  ;;  %v2797_v7 = vpop.eup %2796 }
 0x22e   :  { %v2156_v17 = vsub.f32 %v9743_v3, %v9741_v41  ;;  %v1773_v57 = vand.u32 2147483647, %v9727_v44  ;;  %v1785_v50 = vadd.f32 1.0, %v9746_v54  ;;  %v9749_v61 = vsel %vm6363_vm3, %v9747_v12, %v9748_v43  ;;  %v9852_v12 = vld [vmem:[#allocation100_spill] sm:$0xff] }
 0x22f   :  { %v9751_v41 = vmin.f32 %v9750_v0, 0.0  ;;  %v2283_v3 = vadd.f32 %v2282_v11, %v2155_v45  ;;  %v6764_v40 = vmul.f32 0.6931472, %v2793_v42  ;;  %2804 = vlog2.f32 %v1776_v51  ;;  %v9756_v11 = vld [vmem:[#allocation84_spill] sm:$0xff] }
 0x230   :  { %v1780_v26 = vadd.f32 1.0, %v1779_v8  ;;  %vm6770_vm3 = vcmp.lt.f32.partialorder %v1755_v5, 0.0004427343  ;;  %v1782_v45 = vand.u32 2147483647, %v9737_v27  ;;  %vm9754_vm14 = vnez %v9596_v25 }
 0x231   :  { %v2157_v35 = vsub.f32 %v9751_v41, %v9749_v61  ;;  %v9755_v42 = vsel %vm9754_vm14, %v6353_v38, %v6459_v13  ;;  %v9757_v51 = vmin.f32 %v9756_v11, 0.0  ;;  %v2284_v43 = vadd.f32 %v2283_v3, %v2156_v17  ;;  %v9758_v41 = vld [vmem:[#allocation262_spill] sm:$0xff]  ;;  %v9761_v38 = vld [vmem:[#allocation304_spill] sm:$0xff] }
 0x232   :  { %v6782_v61 = vmul.f32 0.6931472, %v2795_v49  ;;  %v6785_v0 = vmul.f32 %v9727_v44, %v1771_v20  ;;  %v1789_v5 = vadd.f32 1.0, %v1788_v28  ;;  %v1794_v9 = vadd.f32 1.0, %v9758_v41  ;;  %v9763_v49 = vld [vmem:[#allocation85_spill] sm:$0xff]  ;;  %v2799_v47 = vpop.eup %2798 }
 0x233   :  { %v2158_v8 = vsub.f32 %v9757_v51, %v9755_v42  ;;  %vm6788_vm12 = vcmp.lt.f32.partialorder %v1764_v24, 0.0004427343  ;;  %2806 = vlog2.f32 %v1785_v50  ;;  %v1797_v25 = vmul.f32 -0.5, %v9758_v41  ;;  %v9765_v50 = vld [vmem:[#allocation265_spill] sm:$0xff]  ;;  %v9767_v51 = vld [vmem:[#allocation86_spill] sm:$0xff] }
 0x234   :  { %v9762_v13 = vsel %vm6408_vm9, %v6388_v55, %v9761_v38  ;;  %v9764_v17 = vmin.f32 %v9763_v49, 0.0  ;;  %v2285_v44 = vadd.f32 %v2284_v43, %v2157_v35  ;;  %v6805_v20 = vmul.f32 %v9737_v27, %v1780_v26 }
 0x235   :  { %v1791_v28 = vand.u32 2147483647, %v9746_v54  ;;  %v1803_v42 = vadd.f32 1.0, %v9765_v50  ;;  %v6809_v11 = vmul.f32 0.6931472, %v2797_v7  ;;  %v1806_v55 = vmul.f32 -0.5, %v9765_v50 }
 0x236   :  { %v2159_v3 = vsub.f32 %v9764_v17, %v9762_v13  ;;  %v9766_v35 = vsel %vm6445_vm0, %v6406_v29, %v6517_v37  ;;  %v9768_v43 = vmin.f32 %v9767_v51, 0.0  ;;  %v2286_v13 = vadd.f32 %v2285_v44, %v2158_v8  ;;  %v9769_v7 = vld [vmem:[#allocation174_spill] sm:$0xff]  ;;  %v2801_v17 = vpop.eup %2800  ;;  %v9773_v44 = vld [vmem:[#allocation87_spill] sm:$0xff] }
 0x237   :  { %v6824_v26 = vmul.f32 %v9746_v54, %v1789_v5  ;;  %2808 = vlog2.f32 %v1794_v9  ;;  %v1812_v49 = vadd.f32 1.0, %v9769_v7  ;;  %vm6827_vm9 = vcmp.lt.f32.partialorder %v1773_v57, 0.0004427343 }
 0x238   :  { %v2160_v38 = vsub.f32 %v9768_v43, %v9766_v35  ;;  %v1798_v29 = vadd.f32 1.0, %v1797_v25  ;;  %v1815_v37 = vmul.f32 -0.5, %v9769_v7  ;;  %v9772_v8 = vsel %vm6466_vm8, %v6441_v46, %v6532_v60  ;;  %v9778_v60 = vld [vmem:[#allocation26_spill] sm:$0xff] }
 0x239   :  { %v9774_v35 = vmin.f32 %v9773_v44, 0.0  ;;  %v2287_v5 = vadd.f32 %v2286_v13, %v2159_v3  ;;  %v6839_v9 = vmul.f32 0.6931472, %v2799_v47  ;;  %v1800_v51 = vand.u32 2147483647, %v9758_v41  ;;  %v9780_v47 = vld [vmem:[#allocation88_spill] sm:$0xff] }
 0x23a   :  { %2810 = vlog2.f32 %v1803_v42  ;;  %v1809_v57 = vand.u32 2147483647, %v9765_v50  ;;  %vm6847_vm0 = vcmp.lt.f32.partialorder %v1782_v45, 0.0004427343  ;;  %v1807_v46 = vadd.f32 1.0, %v1806_v55  ;;  %v9782_v44 = vld [vmem:[#allocation266_spill] sm:$0xff]  ;;  %v2803_v25 = vpop.eup %2802 }
 0x23b   :  { %v2161_v54 = vsub.f32 %v9774_v35, %v9772_v8  ;;  %9775 = vst [vmem:[#allocation213_spill] sm:$0xff] %v6839_v9  ;;  %v9779_v3 = vsel %vm6482_vm2, %v6450_v58, %v9778_v60  ;;  %v9781_v43 = vmin.f32 %v9780_v47, 0.0  ;;  %v2288_v13 = vadd.f32 %v2287_v5, %v2160_v38  ;;  %v9784_v58 = vld [vmem:[#allocation305_spill] sm:$0xff] }
 0x23c   :  { %v6858_v8 = vmul.f32 0.6931472, %v2801_v17  ;;  %2812 = vlog2.f32 %v1812_v49  ;;  %v1821_v35 = vadd.f32 1.0, %v9782_v44  ;;  %v1824_v45 = vmul.f32 -0.5, %v9782_v44  ;;  %v9786_v47 = vld [vmem:[#allocation89_spill] sm:$0xff] }
 0x23d   :  { %v2162_v42 = vsub.f32 %v9781_v43, %v9779_v3  ;;  %v6863_v27 = vmul.f32 %v9758_v41, %v1798_v29  ;;  %v1816_v55 = vadd.f32 1.0, %v1815_v37  ;;  %v9785_v60 = vsel %vm6519_vm10, %v9783_v14, %v9784_v58  ;;  %v9790_v29 = vld [vmem:[#allocation267_spill] sm:$0xff]  ;;  %v2805_v43 = vpop.eup %2804  ;;  %v9792_v58 = vld [vmem:[#allocation169_spill] sm:$0xff] }
 0x23e   :  { %v9787_v3 = vmin.f32 %v9786_v47, 0.0  ;;  %v2289_v17 = vadd.f32 %v2288_v13, %v2161_v54  ;;  %vm6876_vm8 = vcmp.lt.f32.partialorder %v1791_v28, 0.0004427343  ;;  %v1818_v41 = vand.u32 2147483647, %v9769_v7  ;;  %v9791_v54 = vld [vmem:[#allocation269_spill] sm:$0xff] }
 0x23f   :  { %v1830_v31 = vadd.f32 1.0, %v9790_v29  ;;  %v1833_v37 = vmul.f32 -0.5, %v9790_v29  ;;  %v6884_v14 = vmul.f32 %v9765_v50, %v1807_v46  ;;  %v1839_v13 = vadd.f32 1.0, %v9791_v54 }
 0x240   :  { %v2163_v38 = vsub.f32 %v9787_v3, %v9785_v60  ;;  %v9793_v28 = vsel %vm6538_vm13, %v6502_v62, %v9792_v58  ;;  %v9794_v60 = vld [vmem:[#allocation90_spill] sm:$0xff]  ;;  %v2290_v49 = vadd.f32 %v2289_v17, %v2162_v42  ;;  %v6898_v9 = vmul.f32 0.6931472, %v2803_v25  ;;  %v9800_v17 = vld [vmem:[#allocation91_spill] sm:$0xff] }
 0x241   :  { %v9795_v47 = vmin.f32 %v9794_v60, 0.0  ;;  %2814 = vlog2.f32 %v1821_v35  ;;  %v1825_v50 = vadd.f32 1.0, %v1824_v45  ;;  %vm6900_vm10 = vcmp.lt.f32.partialorder %v1800_v51, 0.0004427343  ;;  %v2807_v35 = vpop.eup %2806 }
 0x242   :  { %9796 = vst [vmem:[#allocation27_spill] sm:$0xff] %v6898_v9  ;;  %v6905_v53 = vmul.f32 %v9769_v7, %v1816_v55  ;;  %v1827_v62 = vand.u32 2147483647, %v9782_v44  ;;  %v9799_v42 = vsel %vm6579_vm4, %v6535_v21, %v6631_v1  ;;  %v9801_v58 = vmin.f32 %v9800_v17, 0.0  ;;  %v9805_v1 = vld [vmem:[#allocation92_spill] sm:$0xff]  ;;  %v9812_v17 = vld [vmem:[#allocation198_spill] sm:$0xff] }
 0x243   :  { %v2164_v3 = vsub.f32 %v9795_v47, %v9793_v28  ;;  %v2291_v28 = vadd.f32 %v2290_v49, %v2163_v38  ;;  %v6915_v45 = vmul.f32 0.6931472, %v2805_v43  ;;  %2816 = vlog2.f32 %v1830_v31  ;;  %v9817_v9 = vld [vmem:[#allocation272_spill] sm:$0xff] }
 0x244   :  { %v2165_v25 = vsub.f32 %v9801_v58, %v9799_v42  ;;  %v1834_v51 = vadd.f32 1.0, %v1833_v37  ;;  %v1842_v60 = vmul.f32 -0.5, %v9791_v54  ;;  %vm6918_vm2 = vcmp.lt.f32.partialorder %v1809_v57, 0.0004427343  ;;  %v9807_v37 = vld [vmem:[#allocation270_spill] sm:$0xff]  ;;  %v2809_v63 = vpop.eup %2808  ;;  %v9813_v58 = vld [vmem:[#allocation307_spill] sm:$0xff] }
 0x245   :  { %v1836_v34 = vand.u32 2147483647, %v9790_v29  ;;  %2818 = vlog2.f32 %v1839_v13  ;;  %v9804_v21 = vsel %vm6594_vm5, %v6558_v59, %v6650_v6  ;;  %v9806_v55 = vmin.f32 %v9805_v1, 0.0  ;;  %v9810_v6 = vld [vmem:[#allocation271_spill] sm:$0xff]  ;;  %v9885_v59 = vld [vmem:[#allocation282_spill] sm:$0xff] }
 0x246   :  { %v2292_v49 = vadd.f32 %v2291_v28, %v2164_v3  ;;  %v6935_v31 = vmul.f32 %v9782_v44, %v1825_v50  ;;  %v1848_v43 = vadd.f32 1.0, %v9807_v37  ;;  %v1851_v13 = vmul.f32 -0.5, %v9807_v37  ;;  %v9815_v44 = vld [vmem:[#allocation93_spill] sm:$0xff] }
 0x247   :  { %v2166_v38 = vsub.f32 %v9806_v55, %v9804_v21  ;;  %v6939_v47 = vmul.f32 0.6931472, %v2807_v35  ;;  %vm6941_vm13 = vcmp.lt.f32.partialorder %v1818_v41, 0.0004427343  ;;  %v1857_v3 = vadd.f32 1.0, %v9810_v6  ;;  %v2811_v24 = vpop.eup %2810 }
 0x248   :  { %v9814_v28 = vsel %vm6613_vm7, %v9812_v17, %v9813_v58  ;;  %v9816_v50 = vmin.f32 %v9815_v44, 0.0  ;;  %v2293_v1 = vadd.f32 %v2292_v49, %v2165_v25  ;;  %v6958_v41 = vmul.f32 %v9790_v29, %v1834_v51  ;;  %v9819_v49 = vld [vmem:[#allocation94_spill] sm:$0xff] }
 0x249   :  { %v1843_v55 = vadd.f32 1.0, %v1842_v60  ;;  %v1845_v57 = vand.u32 2147483647, %v9791_v54  ;;  %v1860_v42 = vmul.f32 -0.5, %v9810_v6  ;;  %v1866_v17 = vadd.f32 1.0, %v9817_v9  ;;  %v2813_v60 = vpop.eup %2812 }
 0x24a   :  { %v2167_v21 = vsub.f32 %v9816_v50, %v9814_v28  ;;  %v9818_v25 = vsel %vm6652_vm11, %v6601_v30, %v6726_v32  ;;  %v9820_v58 = vmin.f32 %v9819_v49, 0.0  ;;  %v2294_v44 = vadd.f32 %v2293_v1, %v2166_v38  ;;  %v9825_v32 = vld [vmem:[#allocation95_spill] sm:$0xff] }
 0x24b   :  { %v6970_v50 = vmul.f32 0.6931472, %v2809_v63  ;;  %2820 = vlog2.f32 %v1848_v43  ;;  %v1852_v29 = vadd.f32 1.0, %v1851_v13  ;;  %v1854_v51 = vand.u32 2147483647, %v9807_v37 }
 0x24c   :  { %v2168_v28 = vsub.f32 %v9820_v58, %v9818_v25  ;;  %v1793_v35 = vsel %vm6876_vm8, %v6824_v26, %v6939_v47  ;;  %vm6977_vm4 = vcmp.lt.f32.partialorder %v1827_v62, 0.0004427343  ;;  %2822 = vlog2.f32 %v1857_v3  ;;  %v9872_v26 = vld [vmem:[#allocation104_spill] sm:$0xff] }
 0x24d   :  { %vm9823_vm5 = vnez %v9715_v16  ;;  %v9826_v38 = vmin.f32 %v9825_v32, 0.0  ;;  %v2295_v13 = vadd.f32 %v2294_v44, %v2167_v21  ;;  %v6988_v63 = vmul.f32 0.6931472, %v2811_v24  ;;  %v9836_v44 = vld [vmem:[#allocation97_spill] sm:$0xff]  ;;  %v9838_v32 = vld [vmem:[#allocation274_spill] sm:$0xff] }
 0x24e   :  { %v9824_v30 = vsel %vm9823_vm5, %v6634_v23, %v6731_v39  ;;  %v6991_v1 = vmul.f32 %v9791_v54, %v1843_v55  ;;  %v1863_v62 = vand.u32 2147483647, %v9810_v6  ;;  %v1869_v25 = vmul.f32 -0.5, %v9817_v9  ;;  %v9830_v39 = vld [vmem:[#allocation96_spill] sm:$0xff] }
 0x24f   :  { %v2169_v43 = vsub.f32 %v9826_v38, %v9824_v30  ;;  %vm6995_vm7 = vcmp.lt.f32.partialorder %v1836_v34, 0.0004427343  ;;  %v1861_v16 = vadd.f32 1.0, %v1860_v42  ;;  %2824 = vlog2.f32 %v1866_v17  ;;  %v9834_v42 = vld [vmem:[#allocation273_spill] sm:$0xff] }
 0x250   :  { %v9829_v23 = vsel %vm6695_vm1, %v6669_v10, %v6764_v40  ;;  %v9831_v24 = vmin.f32 %v9830_v39, 0.0  ;;  %v2296_v54 = vadd.f32 %v2295_v13, %v2168_v28  ;;  %v1802_v55 = vsel %vm6900_vm10, %v6863_v27, %v6970_v50  ;;  %v2815_v40 = vpop.eup %2814  ;;  %v9839_v39 = vld [vmem:[#allocation275_spill] sm:$0xff] }
 0x251   :  { %v7010_v34 = vmul.f32 0.6931472, %v2813_v60  ;;  %vm7012_vm11 = vcmp.lt.f32.partialorder %v1845_v57, 0.0004427343  ;;  %v7017_v2 = vmul.f32 %v9807_v37, %v1852_v29  ;;  %v1875_v10 = vadd.f32 1.0, %v9834_v42 }
 0x252   :  { %v2170_v21 = vsub.f32 %v9831_v24, %v9829_v23  ;;  %v1872_v17 = vand.u32 2147483647, %v9817_v9  ;;  %v1878_v58 = vmul.f32 -0.5, %v9834_v42  ;;  %v9835_v28 = vsel %vm6712_vm6, %v6688_v4, %v6782_v61  ;;  %v2817_v23 = vpop.eup %2816 }
 0x253   :  { %v9837_v57 = vmin.f32 %v9836_v44, 0.0  ;;  %v2297_v30 = vadd.f32 %v2296_v54, %v2169_v43  ;;  %v1811_v37 = vsel %vm6918_vm2, %v6884_v14, %v6988_v63  ;;  %v1870_v29 = vadd.f32 1.0, %v1869_v25  ;;  %v9841_v43 = vld [vmem:[#allocation98_spill] sm:$0xff]  ;;  %v2819_v25 = vpop.eup %2818 }
 0x254   :  { %v1884_v38 = vadd.f32 1.0, %v9838_v32  ;;  %v1887_v13 = vmul.f32 -0.5, %v9838_v32  ;;  %v7036_v15 = vmul.f32 %v9810_v6, %v1861_v16  ;;  %v1893_v4 = vadd.f32 1.0, %v9839_v39  ;;  %v9845_v16 = vld [vmem:[#allocation213_spill] sm:$0xff]  ;;  %v9881_v63 = vld [vmem:[#allocation106_spill] sm:$0xff] }
 0x255   :  { %v2171_v60 = vsub.f32 %v9837_v57, %v9835_v28  ;;  %v9840_v61 = vsel %vm6743_vm15, %v6717_v56, %v6809_v11  ;;  %v9842_v24 = vmin.f32 %v9841_v43, 0.0  ;;  %v2298_v28 = vadd.f32 %v2297_v30, %v2170_v21  ;;  %v9847_v30 = vld [vmem:[#allocation99_spill] sm:$0xff] }
 0x256   :  { %v7050_v57 = vmul.f32 0.6931472, %v2815_v40  ;;  %2826 = vlog2.f32 %v1875_v10  ;;  %v1881_v6 = vand.u32 2147483647, %v9834_v42  ;;  %vm7053_vm1 = vcmp.lt.f32.partialorder %v1854_v51, 0.0004427343 }
 0x257   :  { %v2172_v54 = vsub.f32 %v9842_v24, %v9840_v61  ;;  %v1879_v56 = vadd.f32 1.0, %v1878_v58  ;;  %v1896_v11 = vmul.f32 -0.5, %v9839_v39  ;;  %v9846_v21 = vsel %vm6770_vm3, %v6734_v22, %v9845_v16 }
 0x258   :  { %v9848_v61 = vmin.f32 %v9847_v30, 0.0  ;;  %v2299_v40 = vadd.f32 %v2298_v28, %v2171_v60  ;;  %v7065_v24 = vmul.f32 0.6931472, %v2817_v23  ;;  %vm7067_vm6 = vcmp.lt.f32.partialorder %v1863_v62, 0.0004427343  ;;  %v9857_v28 = vld [vmem:[#allocation27_spill] sm:$0xff] }
 0x259   :  { %v7072_v51 = vmul.f32 %v9817_v9, %v1870_v29  ;;  %2828 = vlog2.f32 %v1884_v38  ;;  %v1888_v58 = vadd.f32 1.0, %v1887_v13  ;;  %v7074_v44 = vmul.f32 0.6931472, %v2819_v25  ;;  %v9856_v13 = vld [vmem:[#allocation276_spill] sm:$0xff] }
 0x25a   :  { %v2173_v43 = vsub.f32 %v9848_v61, %v9846_v21  ;;  %2830 = vlog2.f32 %v1893_v4  ;;  %v9851_v22 = vsel %vm6788_vm12, %v6748_v52, %v6858_v8  ;;  %v9853_v60 = vmin.f32 %v9852_v12, 0.0  ;;  %v2821_v52 = vpop.eup %2820  ;;  %v9863_v12 = vld [vmem:[#allocation102_spill] sm:$0xff] }
 0x25b   :  { %v2300_v62 = vadd.f32 %v2299_v40, %v2172_v54  ;;  %v1829_v9 = vsel %vm6977_vm4, %v6935_v31, %v7050_v57  ;;  %vm7087_vm15 = vcmp.lt.f32.partialorder %v1872_v17, 0.0004427343  ;;  %v1890_v38 = vand.u32 2147483647, %v9838_v32  ;;  %v9859_v17 = vld [vmem:[#allocation101_spill] sm:$0xff]  ;;  %v2823_v61 = vpop.eup %2822  ;;  %v9891_v57 = vld [vmem:[#allocation108_spill] sm:$0xff] }
 0x25c   :  { %v2174_v23 = vsub.f32 %v9853_v60, %v9851_v22  ;;  %v1902_v48 = vadd.f32 1.0, %v9856_v13  ;;  %v1905_v4 = vmul.f32 -0.5, %v9856_v13  ;;  %v7095_v8 = vmul.f32 %v9834_v42, %v1879_v56  ;;  %v9861_v56 = vld [vmem:[#allocation277_spill] sm:$0xff] }
 0x25d   :  { %v1897_v54 = vadd.f32 1.0, %v1896_v11  ;;  %v9858_v25 = vsel %vm6827_vm9, %v6785_v0, %v9857_v28  ;;  %v9860_v16 = vmin.f32 %v9859_v17, 0.0  ;;  %v2301_v30 = vadd.f32 %v2300_v62, %v2173_v43  ;;  %v2825_v62 = vpop.eup %2824  ;;  %v9865_v17 = vld [vmem:[#allocation278_spill] sm:$0xff] }
 0x25e   :  { %v7109_v22 = vmul.f32 %v9838_v32, %v1888_v58  ;;  %v1899_v42 = vand.u32 2147483647, %v9839_v39  ;;  %v1911_v33 = vadd.f32 1.0, %v9861_v56  ;;  %v1914_v11 = vmul.f32 -0.5, %v9861_v56 }
 0x25f   :  { %v2175_v21 = vsub.f32 %v9860_v16, %v9858_v25  ;;  %v9862_v43 = vsel %vm6847_vm0, %v6805_v20, %v6915_v45  ;;  %v9864_v60 = vmin.f32 %v9863_v12, 0.0  ;;  %v2302_v58 = vadd.f32 %v2301_v30, %v2174_v23  ;;  %v9868_v20 = vld [vmem:[#allocation103_spill] sm:$0xff]  ;;  %v9879_v12 = vld [vmem:[#allocation281_spill] sm:$0xff] }
 0x260   :  { %v7125_v28 = vmul.f32 0.6931472, %v2821_v52  ;;  %2832 = vlog2.f32 %v1902_v48  ;;  %v1906_v25 = vadd.f32 1.0, %v1905_v4  ;;  %v1923_v16 = vmul.f32 -0.5, %v9865_v17 }
 0x261   :  { %v2176_v32 = vsub.f32 %v9864_v60, %v9862_v43  ;;  %v7128_v40 = vmul.f32 0.6931472, %v2823_v61  ;;  %vm7130_vm12 = vcmp.lt.f32.partialorder %v1881_v6, 0.0004427343  ;;  %v7135_v19 = vmul.f32 %v9839_v39, %v1897_v54  ;;  %v9900_v39 = vld [vmem:[#allocation110_spill] sm:$0xff] }
 0x262   :  { %v9869_v45 = vmin.f32 %v9868_v20, 0.0  ;;  %v2303_v48 = vadd.f32 %v2302_v58, %v2175_v21  ;;  %v1908_v4 = vand.u32 2147483647, %v9856_v13  ;;  %2834 = vlog2.f32 %v1911_v33  ;;  %v9876_v33 = vld [vmem:[#allocation279_spill] sm:$0xff] }
 0x263   :  { %v1917_v6 = vand.u32 2147483647, %v9861_v56  ;;  %v1920_v52 = vadd.f32 1.0, %v9865_v17  ;;  %v7147_v30 = vmul.f32 0.6931472, %v2825_v62  ;;  %v1915_v5 = vadd.f32 1.0, %v1914_v11  ;;  %v2827_v27 = vpop.eup %2826 }
 0x264   :  { %v2177_v23 = vsub.f32 %v9869_v45, %v1793_v35  ;;  %vm7149_vm3 = vcmp.lt.f32.partialorder %v1890_v38, 0.0004427343  ;;  %v9873_v47 = vmin.f32 %v9872_v26, 0.0  ;;  %v2304_v54 = vadd.f32 %v2303_v48, %v2176_v32  ;;  %v9903_v38 = vld [vmem:[#allocation111_spill] sm:$0xff] }
 0x265   :  { %v1856_v21 = vsel %vm7053_vm1, %v7017_v2, %v7125_v28  ;;  %vm7164_vm14 = vcmp.lt.f32.partialorder %v1899_v42, 0.0004427343  ;;  %v7169_v61 = vmul.f32 %v9856_v13, %v1906_v25  ;;  %v1924_v46 = vadd.f32 1.0, %v1923_v16  ;;  %v9877_v2 = vld [vmem:[#allocation105_spill] sm:$0xff] }
 0x266   :  { %v2178_v35 = vsub.f32 %v9873_v47, %v1802_v55  ;;  %v1932_v11 = vmul.f32 -0.5, %v9876_v33  ;;  %v1865_v50 = vsel %vm7067_vm6, %v7036_v15, %v7128_v40  ;;  %v1929_v55 = vadd.f32 1.0, %v9876_v33  ;;  %v2829_v10 = vpop.eup %2828  ;;  %v9893_v47 = vld [vmem:[#allocation179_spill] sm:$0xff] }
 0x267   :  { %v9878_v18 = vmin.f32 %v9877_v2, 0.0  ;;  %v2305_v42 = vadd.f32 %v2304_v54, %v2177_v23  ;;  %2836 = vlog2.f32 %v1920_v52  ;;  %v1926_v43 = vand.u32 2147483647, %v9865_v17  ;;  %v2831_v62 = vpop.eup %2830  ;;  %v9897_v2 = vld [vmem:[#allocation285_spill] sm:$0xff] }
 0x268   :  { %v1938_v60 = vadd.f32 1.0, %v9879_v12  ;;  %v1941_v32 = vmul.f32 -0.5, %v9879_v12  ;;  %v1874_v7 = vsel %vm7087_vm15, %v7072_v51, %v7147_v30  ;;  %v7192_v15 = vmul.f32 %v9861_v56, %v1915_v5 }
 0x269   :  { %v2179_v13 = vsub.f32 %v9878_v18, %v1811_v37  ;;  %v9880_v14 = vsel %vm6941_vm13, %v6905_v53, %v7010_v34  ;;  %v9882_v37 = vmin.f32 %v9881_v63, 0.0  ;;  %v2306_v58 = vadd.f32 %v2305_v42, %v2178_v35  ;;  %v9886_v34 = vld [vmem:[#allocation107_spill] sm:$0xff] }
 0x26a   :  { %v7201_v28 = vmul.f32 0.6931472, %v2827_v27  ;;  %v7204_v25 = vmul.f32 %v9865_v17, %v1924_v46  ;;  %v1933_v29 = vadd.f32 1.0, %v1932_v11  ;;  %v1935_v51 = vand.u32 2147483647, %v9876_v33  ;;  %v9895_v11 = vld [vmem:[#allocation109_spill] sm:$0xff] }
 0x26b   :  { %v2180_v40 = vsub.f32 %v9882_v37, %v9880_v14  ;;  %vm7207_vm9 = vcmp.lt.f32.partialorder %v1908_v4, 0.0004427343  ;;  %2838 = vlog2.f32 %v1929_v55  ;;  %v1950_v53 = vmul.f32 -0.5, %v9885_v59 }
 0x26c   :  { %v9887_v16 = vmin.f32 %v9886_v34, 0.0  ;;  %v2307_v17 = vadd.f32 %v2306_v58, %v2179_v13  ;;  %v7219_v45 = vmul.f32 0.6931472, %v2829_v10  ;;  %2840 = vlog2.f32 %v1938_v60  ;;  %v9902_v10 = vld [vmem:[#allocation286_spill] sm:$0xff] }
 0x26d   :  { %v1942_v23 = vadd.f32 1.0, %v1941_v32  ;;  %v1947_v48 = vadd.f32 1.0, %v9885_v59  ;;  %v7222_v4 = vmul.f32 0.6931472, %v2831_v62  ;;  %vm7224_vm0 = vcmp.lt.f32.partialorder %v1917_v6, 0.0004427343  ;;  %v2833_v3 = vpop.eup %2832 }
 0x26e   :  { %v2181_v20 = vsub.f32 %v9887_v16, %v1829_v9  ;;  %v1944_v36 = vand.u32 2147483647, %v9879_v12  ;;  %v9890_v31 = vsel %vm6995_vm7, %v6958_v41, %v7065_v24  ;;  %v9892_v9 = vmin.f32 %v9891_v57, 0.0  ;;  %v9913_v57 = vld [vmem:[#allocation113_spill] sm:$0xff] }
 0x26f   :  { %v2308_v5 = vadd.f32 %v2307_v17, %v2180_v40  ;;  %v1883_v26 = vsel %vm7130_vm12, %v7095_v8, %v7201_v28  ;;  %v7241_v6 = vmul.f32 %v9876_v33, %v1933_v29  ;;  %v1956_v35 = vadd.f32 1.0, %v9893_v47  ;;  %v2835_v13 = vpop.eup %2834  ;;  %v9907_v28 = vld [vmem:[#allocation287_spill] sm:$0xff] }
 0x270   :  { %v2182_v30 = vsub.f32 %v9892_v9, %v9890_v31  ;;  %v1959_v54 = vmul.f32 -0.5, %v9893_v47  ;;  %v1951_v46 = vadd.f32 1.0, %v1950_v53  ;;  %v1953_v41 = vand.u32 2147483647, %v9885_v59 }
 0x271   :  { %v9894_v24 = vsel %vm7012_vm11, %v6991_v1, %v7074_v44  ;;  %v9896_v27 = vmin.f32 %v9895_v11, 0.0  ;;  %v2309_v8 = vadd.f32 %v2308_v5, %v2181_v20  ;;  %v1892_v33 = vsel %vm7149_vm3, %v7109_v22, %v7219_v45 }
 0x272   :  { %v7258_v55 = vmul.f32 %v9879_v12, %v1942_v23  ;;  %2842 = vlog2.f32 %v1947_v48  ;;  %v1965_v18 = vadd.f32 1.0, %v9897_v2  ;;  %v1901_v1 = vsel %vm7164_vm14, %v7135_v19, %v7222_v4  ;;  %v9912_v48 = vld [vmem:[#allocation288_spill] sm:$0xff] }
 0x273   :  { %v2183_v0 = vsub.f32 %v9896_v27, %v9894_v24  ;;  %vm7265_vm8 = vcmp.lt.f32.partialorder %v1926_v43, 0.0004427343  ;;  %v1968_v44 = vmul.f32 -0.5, %v9897_v2  ;;  %v9901_v22 = vmin.f32 %v9900_v39, 0.0 }
 0x274   :  { %v2310_v12 = vadd.f32 %v2309_v8, %v2182_v30  ;;  %v1904_v60 = vmul.f32 0.6931472, %v2833_v3  ;;  %2844 = vlog2.f32 %v1956_v35  ;;  %v1960_v32 = vadd.f32 1.0, %v1959_v54  ;;  %v2837_v53 = vpop.eup %2836  ;;  %v9920_v8 = vld [vmem:[#allocation289_spill] sm:$0xff] }
 0x275   :  { %v2184_v42 = vsub.f32 %v9901_v22, %v1856_v21  ;;  %v1974_v14 = vadd.f32 1.0, %v9902_v10  ;;  %v7274_v63 = vmul.f32 %v9885_v59, %v1951_v46  ;;  %v1962_v19 = vand.u32 2147483647, %v9893_v47 }
 0x276   :  { %v9904_v43 = vmin.f32 %v9903_v38, 0.0  ;;  %v2311_v40 = vadd.f32 %v2310_v12, %v2183_v0  ;;  %v1913_v58 = vmul.f32 0.6931472, %v2835_v13  ;;  %vm7279_vm10 = vcmp.lt.f32.partialorder %v1935_v51, 0.0004427343 }
 0x277   :  { %2846 = vlog2.f32 %v1965_v18  ;;  %v1971_v21 = vand.u32 2147483647, %v9897_v2  ;;  %v1983_v29 = vadd.f32 1.0, %v9907_v28  ;;  %vm7285_vm2 = vcmp.lt.f32.partialorder %v1944_v36, 0.0004427343 }
 0x278   :  { %v2185_v37 = vsub.f32 %v9904_v43, %v1865_v50  ;;  %v1969_v34 = vadd.f32 1.0, %v1968_v44  ;;  %v1977_v16 = vmul.f32 -0.5, %v9902_v10  ;;  %v9910_v50 = vld [vmem:[#allocation112_spill] sm:$0xff]  ;;  %v2312_v51 = vadd.f32 %v2311_v40, %v2184_v42 }
 0x279   :  { %v9911_v20 = vmin.f32 %v9910_v50, 0.0  ;;  %v1910_v45 = vsel %vm7207_vm9, %v7169_v61, %v1904_v60  ;;  %v7296_v23 = vmul.f32 %v9893_v47, %v1960_v32  ;;  %2848 = vlog2.f32 %v1974_v14  ;;  %v9915_v47 = vld [vmem:[#allocation210_spill] sm:$0xff]  ;;  %v9925_v60 = vld [vmem:[#allocation291_spill] sm:$0xff]  ;;  %v9933_v50 = vld [vmem:[#allocation117_spill] sm:$0xff] }
 0x27a   :  { %v1992_v4 = vadd.f32 1.0, %v9912_v48  ;;  %v1980_v36 = vand.u32 2147483647, %v9902_v10  ;;  %v1986_v31 = vmul.f32 -0.5, %v9907_v28  ;;  %v9914_v9 = vmin.f32 %v9913_v57, 0.0 }
 0x27b   :  { %v2186_v17 = vsub.f32 %v9911_v20, %v1874_v7  ;;  %v2313_v5 = vadd.f32 %v2312_v51, %v2185_v37  ;;  %v2839_v7 = vpop.eup %2838  ;;  %v1919_v56 = vsel %vm7224_vm0, %v7192_v15, %v1913_v58  ;;  %v1922_v61 = vmul.f32 0.6931472, %v2837_v53 }
 0x27c   :  { %v2187_v30 = vsub.f32 %v9914_v9, %v1883_v26  ;;  %2850 = vlog2.f32 %v1983_v29  ;;  %v2001_v35 = vadd.f32 1.0, %v9915_v47  ;;  %v2841_v54 = vpop.eup %2840  ;;  %vm7307_vm13 = vcmp.lt.f32.partialorder %v1953_v41, 0.0004427343  ;;  %v9918_v26 = vld [vmem:[#allocation114_spill] sm:$0xff]  ;;  %v9930_v29 = vld [vmem:[#allocation293_spill] sm:$0xff]  ;;  %v9953_v41 = vld [vmem:[#allocation303_spill] sm:$0xff] }
 0x27d   :  { %v7312_v46 = vmul.f32 %v9897_v2, %v1969_v34  ;;  %v1978_v24 = vadd.f32 1.0, %v1977_v16  ;;  %v9919_v11 = vmin.f32 %v9918_v26, 0.0  ;;  %v2314_v0 = vadd.f32 %v2313_v5, %v2186_v17  ;;  %v9923_v2 = vld [vmem:[#allocation115_spill] sm:$0xff]  ;;  %v9938_v9 = vld [vmem:[#allocation118_spill] sm:$0xff] }
 0x27e   :  { %v1989_v52 = vand.u32 2147483647, %v9907_v28  ;;  %2852 = vlog2.f32 %v1992_v4  ;;  %v1995_v15 = vmul.f32 -0.5, %v9912_v48  ;;  %v2010_v18 = vadd.f32 1.0, %v9920_v8  ;;  %v9943_v26 = vld [vmem:[#allocation119_spill] sm:$0xff] }
 0x27f   :  { %v2188_v27 = vsub.f32 %v9919_v11, %v1892_v33  ;;  %v1931_v13 = vmul.f32 0.6931472, %v2839_v7  ;;  %vm7319_vm4 = vcmp.lt.f32.partialorder %v1962_v19, 0.0004427343  ;;  %v1987_v44 = vadd.f32 1.0, %v1986_v31  ;;  %v2843_v14 = vpop.eup %2842  ;;  %v9935_v31 = vld [vmem:[#allocation294_spill] sm:$0xff] }
 0x280   :  { %v9924_v39 = vmin.f32 %v9923_v2, 0.0  ;;  %v2315_v42 = vadd.f32 %v2314_v0, %v2187_v30  ;;  %v1928_v33 = vsel %vm7265_vm8, %v7204_v25, %v1922_v61  ;;  %v1940_v12 = vmul.f32 0.6931472, %v2841_v54 }
 0x281   :  { %2854 = vlog2.f32 %v2001_v35  ;;  %v2019_v32 = vadd.f32 1.0, %v9925_v60  ;;  %vm7329_vm5 = vcmp.lt.f32.partialorder %v1971_v21, 0.0004427343  ;;  %v7334_v19 = vmul.f32 %v9902_v10, %v1978_v24  ;;  %v2845_v34 = vpop.eup %2844 }
 0x282   :  { %v2189_v22 = vsub.f32 %v9924_v39, %v1901_v1  ;;  %v2004_v43 = vmul.f32 -0.5, %v9915_v47  ;;  %v9928_v1 = vld [vmem:[#allocation116_spill] sm:$0xff]  ;;  %v2316_v58 = vadd.f32 %v2315_v42, %v2188_v27  ;;  %v1996_v49 = vadd.f32 1.0, %v1995_v15  ;;  %v9945_v15 = vld [vmem:[#allocation299_spill] sm:$0xff] }
 0x283   :  { %v9929_v37 = vmin.f32 %v9928_v1, 0.0  ;;  %v1998_v25 = vand.u32 2147483647, %v9912_v48  ;;  %2856 = vlog2.f32 %v2010_v18  ;;  %v2028_v53 = vadd.f32 1.0, %v9930_v29 }
 0x284   :  { %v1937_v21 = vsel %vm7279_vm10, %v7241_v6, %v1931_v13  ;;  %vm7344_vm7 = vcmp.lt.f32.partialorder %v1980_v36, 0.0004427343  ;;  %v7349_v16 = vmul.f32 %v9907_v28, %v1987_v44  ;;  %v9934_v20 = vmin.f32 %v9933_v50, 0.0  ;;  %v2847_v6 = vpop.eup %2846 }
 0x285   :  { %v2190_v40 = vsub.f32 %v9929_v37, %v1910_v45  ;;  %v2317_v51 = vadd.f32 %v2316_v58, %v2189_v22  ;;  %v1946_v45 = vsel %vm7285_vm2, %v7258_v55, %v1940_v12  ;;  %v1949_v4 = vmul.f32 0.6931472, %v2843_v14  ;;  %v9940_v55 = vld [vmem:[#allocation296_spill] sm:$0xff]  ;;  %v9951_v37 = vld [vmem:[#allocation121_spill] sm:$0xff] }
 0x286   :  { %v2191_v17 = vsub.f32 %v9934_v20, %v1919_v56  ;;  %2858 = vlog2.f32 %v2019_v32  ;;  %v2037_v62 = vadd.f32 1.0, %v9935_v31  ;;  %vm7357_vm11 = vcmp.lt.f32.partialorder %v1989_v52, 0.0004427343  ;;  %v2849_v35 = vpop.eup %2848  ;;  %v9948_v22 = vld [vmem:[#allocation120_spill] sm:$0xff]  ;;  %v9956_v20 = vld [vmem:[#allocation122_spill] sm:$0xff] }
 0x287   :  { %v2005_v57 = vadd.f32 1.0, %v2004_v43  ;;  %v2007_v28 = vand.u32 2147483647, %v9915_v47  ;;  %v9939_v30 = vmin.f32 %v9938_v9, 0.0  ;;  %v2318_v7 = vadd.f32 %v2317_v51, %v2190_v40  ;;  %v9950_v32 = vld [vmem:[#allocation300_spill] sm:$0xff] }
 0x288   :  { %v1958_v56 = vmul.f32 0.6931472, %v2845_v34  ;;  %v7365_v59 = vmul.f32 %v9912_v48, %v1996_v49  ;;  %2860 = vlog2.f32 %v2028_v53  ;;  %v2046_v61 = vadd.f32 1.0, %v9940_v55 }
 0x289   :  { %v2192_v5 = vsub.f32 %v9939_v30, %v1928_v33  ;;  %vm7368_vm1 = vcmp.lt.f32.partialorder %v1998_v25, 0.0004427343  ;;  %v2013_v24 = vmul.f32 -0.5, %v9920_v8  ;;  %v9944_v11 = vmin.f32 %v9943_v26, 0.0  ;;  %v2851_v13 = vpop.eup %2850 }
 0x28a   :  { %v2319_v0 = vadd.f32 %v2318_v7, %v2191_v17  ;;  %v1955_v52 = vsel %vm7307_vm13, %v7274_v63, %v1949_v4  ;;  %v1967_v48 = vmul.f32 0.6931472, %v2847_v6  ;;  %2862 = vlog2.f32 %v2037_v62 }
 0x28b   :  { %v2193_v27 = vsub.f32 %v9944_v11, %v1937_v21  ;;  %v2055_v18 = vadd.f32 1.0, %v9945_v15  ;;  %v7380_v44 = vmul.f32 %v9915_v47, %v2005_v57  ;;  %vm7382_vm6 = vcmp.lt.f32.partialorder %v2007_v28, 0.0004427343  ;;  %v2853_v47 = vpop.eup %2852  ;;  %v9958_v28 = vld [vmem:[#allocation123_spill] sm:$0xff] }
 0x28c   :  { %v2016_v39 = vand.u32 2147483647, %v9920_v8  ;;  %v9949_v42 = vmin.f32 %v9948_v22, 0.0  ;;  %v2320_v12 = vadd.f32 %v2319_v0, %v2192_v5  ;;  %v1964_v63 = vsel %vm7319_vm4, %v7296_v23, %v1958_v56 }
 0x28d   :  { %v1976_v3 = vmul.f32 0.6931472, %v2849_v35  ;;  %2864 = vlog2.f32 %v2046_v61  ;;  %v2064_v14 = vadd.f32 1.0, %v9950_v32  ;;  %v2014_v43 = vadd.f32 1.0, %v2013_v24  ;;  %v9960_v24 = vld [vmem:[#allocation124_spill] sm:$0xff] }
 0x28e   :  { %v2194_v33 = vsub.f32 %v9949_v42, %v1946_v45  ;;  %v2022_v1 = vmul.f32 -0.5, %v9925_v60  ;;  %v9952_v40 = vmin.f32 %v9951_v37, 0.0  ;;  %v2321_v49 = vadd.f32 %v2320_v12, %v2193_v27  ;;  %v2855_v34 = vpop.eup %2854 }
 0x28f   :  { %v1973_v25 = vsel %vm7329_vm5, %v7312_v46, %v1967_v48  ;;  %v1985_v53 = vmul.f32 0.6931472, %v2851_v13  ;;  %2866 = vlog2.f32 %v2055_v18  ;;  %v2073_v23 = vadd.f32 1.0, %v9953_v41  ;;  %v9964_v13 = vld [vmem:[#allocation125_spill] sm:$0xff] }
 0x290   :  { %v2195_v58 = vsub.f32 %v9952_v40, %v1955_v52  ;;  %vm7400_vm15 = vcmp.lt.f32.partialorder %v2016_v39, 0.0004427343  ;;  %v2031_v50 = vmul.f32 -0.5, %v9930_v29  ;;  %v9957_v17 = vmin.f32 %v9956_v20, 0.0  ;;  %v2857_v62 = vpop.eup %2856 }
 0x291   :  { %v2322_v45 = vadd.f32 %v2321_v49, %v2194_v33  ;;  %v1982_v38 = vsel %vm7344_vm7, %v7334_v19, %v1976_v3  ;;  %v1994_v46 = vmul.f32 0.6931472, %v2853_v47  ;;  %v2025_v4 = vand.u32 2147483647, %v9925_v60 }
 0x292   :  { %v2196_v51 = vsub.f32 %v9957_v17, %v1964_v63  ;;  %2868 = vlog2.f32 %v2064_v14  ;;  %v2023_v6 = vadd.f32 1.0, %v2022_v1  ;;  %v2040_v57 = vmul.f32 -0.5, %v9935_v31  ;;  %v9968_v14 = vld [vmem:[#allocation126_spill] sm:$0xff] }
 0x293   :  { %v9959_v9 = vmin.f32 %v9958_v28, 0.0  ;;  %v2323_v5 = vadd.f32 %v2322_v45, %v2195_v58  ;;  %v1991_v7 = vsel %vm7357_vm11, %v7349_v16, %v1985_v53  ;;  %v2003_v56 = vmul.f32 0.6931472, %v2855_v34  ;;  %v2859_v19 = vpop.eup %2858  ;;  %v9970_v53 = vld [vmem:[#allocation127_spill] sm:$0xff] }
 0x294   :  { %v2034_v10 = vand.u32 2147483647, %v9930_v29  ;;  %2870 = vlog2.f32 %v2073_v23  ;;  %v2015_v61 = vmul.f32 %v9920_v8, %v2014_v43  ;;  %v2032_v35 = vadd.f32 1.0, %v2031_v50 }
 0x295   :  { %v2197_v30 = vsub.f32 %v9959_v9, %v1973_v25  ;;  %v9961_v26 = vmin.f32 %v9960_v24, 0.0  ;;  %v2324_v27 = vadd.f32 %v2323_v5, %v2196_v51  ;;  %v2000_v0 = vsel %vm7368_vm1, %v7365_v59, %v1994_v46  ;;  %v2861_v48 = vpop.eup %2860 }
 0x296   :  { %v2012_v52 = vmul.f32 0.6931472, %v2857_v62  ;;  %vm7424_vm12 = vcmp.lt.f32.partialorder %v2025_v4, 0.0004427343  ;;  %v2049_v16 = vmul.f32 -0.5, %v9940_v55  ;;  %v2024_v18 = vmul.f32 %v9925_v60, %v2023_v6 }
 0x297   :  { %v2198_v11 = vsub.f32 %v9961_v26, %v1982_v38  ;;  %v2041_v8 = vadd.f32 1.0, %v2040_v57  ;;  %v9965_v39 = vmin.f32 %v9964_v13, 0.0  ;;  %v2325_v42 = vadd.f32 %v2324_v27, %v2197_v30  ;;  %v2863_v63 = vpop.eup %2862  ;;  %v9974_v38 = vld [vmem:[#allocation128_spill] sm:$0xff] }
 0x298   :  { %v2009_v54 = vsel %vm7382_vm6, %v7380_v44, %v2003_v56  ;;  %v2021_v59 = vmul.f32 0.6931472, %v2859_v19  ;;  %vm7435_vm3 = vcmp.lt.f32.partialorder %v2034_v10, 0.0004427343  ;;  %v2058_v12 = vmul.f32 -0.5, %v9945_v15  ;;  %v9978_v56 = vld [vmem:[#allocation129_spill] sm:$0xff] }
 0x299   :  { %v2199_v22 = vsub.f32 %v9965_v39, %v1991_v7  ;;  %v2033_v3 = vmul.f32 %v9930_v29, %v2032_v35  ;;  %v2043_v60 = vand.u32 2147483647, %v9935_v31  ;;  %v9969_v47 = vmin.f32 %v9968_v14, 0.0  ;;  %v9984_v39 = vld [vmem:[#allocation133_spill] sm:$0xff]  ;;  %v9988_v14 = vld [vmem:[#allocation132_spill] sm:$0xff] }
 0x29a   :  { %v2326_v1 = vadd.f32 %v2325_v42, %v2198_v11  ;;  %v2018_v2 = vsel %vm7400_vm15, %v2015_v61, %v2012_v52  ;;  %v2030_v44 = vmul.f32 0.6931472, %v2861_v48  ;;  %v2050_v37 = vadd.f32 1.0, %v2049_v16  ;;  %v2865_v58 = vpop.eup %2864  ;;  %v9982_v52 = vld [vmem:[#allocation130_spill] sm:$0xff] }
 0x29b   :  { %v2200_v43 = vsub.f32 %v9969_v47, %v2000_v0  ;;  %v2067_v40 = vmul.f32 -0.5, %v9950_v32  ;;  %v2042_v49 = vmul.f32 %v9935_v31, %v2041_v8  ;;  %v2052_v25 = vand.u32 2147483647, %v9940_v55 }
 0x29c   :  { %v9971_v29 = vmin.f32 %v9970_v53, 0.0  ;;  %v2327_v34 = vadd.f32 %v2326_v1, %v2199_v22  ;;  %v2027_v50 = vsel %vm7424_vm12, %v2024_v18, %v2021_v59  ;;  %v2039_v20 = vmul.f32 0.6931472, %v2863_v63  ;;  %v2867_v51 = vpop.eup %2866  ;;  %v9985_v22 = vld [vmem:[#allocation131_spill] sm:$0xff] }
 0x29d   :  { %v2059_v17 = vadd.f32 1.0, %v2058_v12  ;;  %v2076_v21 = vmul.f32 -0.5, %v9953_v41  ;;  %vm7454_vm14 = vcmp.lt.f32.partialorder %v2043_v60, 0.0004427343  ;;  %v2061_v31 = vand.u32 2147483647, %v9945_v15 }
 0x29e   :  { %v2201_v23 = vsub.f32 %v9971_v29, %v2009_v54  ;;  %v9975_v46 = vmin.f32 %v9974_v38, 0.0  ;;  %v2328_v62 = vadd.f32 %v2327_v34, %v2200_v43  ;;  %v2036_v6 = vsel %vm7435_vm3, %v2033_v3, %v2030_v44  ;;  %v9987_v3 = vld [vmem:[#allocation134_spill] sm:$0xff] }
 0x29f   :  { %v2048_v57 = vmul.f32 0.6931472, %v2865_v58  ;;  %v2051_v28 = vmul.f32 %v9940_v55, %v2050_v37  ;;  %v2068_v9 = vadd.f32 1.0, %v2067_v40  ;;  %v2869_v30 = vpop.eup %2868  ;;  %vm7464_vm9 = vcmp.lt.f32.partialorder %v2052_v25, 0.0004427343 }
 0x2a0   :  { %v2202_v4 = vsub.f32 %v9975_v46, %v2018_v2  ;;  %v2070_v7 = vand.u32 2147483647, %v9950_v32  ;;  %v9979_v10 = vmin.f32 %v9978_v56, 0.0  ;;  %v2329_v61 = vadd.f32 %v2328_v62, %v2201_v23  ;;  %v9990_v2 = vld [vmem:[#allocation135_spill] sm:$0xff] }
 0x2a1   :  { %v2045_v35 = vsel %vm7454_vm14, %v2042_v49, %v2039_v20  ;;  %v2057_v24 = vmul.f32 0.6931472, %v2867_v51  ;;  %v2060_v26 = vmul.f32 %v9945_v15, %v2059_v17  ;;  %v2077_v11 = vadd.f32 1.0, %v2076_v21  ;;  %v2871_v55 = vpop.eup %2870 }
 0x2a2   :  { %v2203_v19 = vsub.f32 %v9979_v10, %v2027_v50  ;;  %vm7474_vm0 = vcmp.lt.f32.partialorder %v2061_v31, 0.0004427343  ;;  %v2079_v0 = vand.u32 2147483647, %v9953_v41  ;;  %v9983_v36 = vmin.f32 %v9982_v52, 0.0 }
 0x2a3   :  { %v2330_v48 = vadd.f32 %v2329_v61, %v2202_v4  ;;  %v2054_v18 = vsel %vm7464_vm9, %v2051_v28, %v2048_v57  ;;  %v2066_v8 = vmul.f32 0.6931472, %v2869_v30  ;;  %v2069_v13 = vmul.f32 %v9950_v32, %v2068_v9 }
 0x2a4   :  { %v2204_v16 = vsub.f32 %v9983_v36, %v2036_v6  ;;  %v415_v15 = vmin.f32 %v9984_v39, 0.0  ;;  %vm2071_vm8 = vcmp.lt.f32.partialorder %v2070_v7, 0.0004427343  ;;  %v9986_v42 = vmin.f32 %v9985_v22, 0.0 }
 0x2a5   :  { %v2331_v59 = vadd.f32 %v2330_v48, %v2203_v19  ;;  %v2063_v33 = vsel %vm7474_vm0, %v2060_v26, %v2057_v24  ;;  %v2075_v12 = vmul.f32 0.6931472, %v2871_v55  ;;  %v2078_v63 = vmul.f32 %v9953_v41, %v2077_v11 }
 0x2a6   :  { %v2205_v54 = vsub.f32 %v9986_v42, %v2045_v35  ;;  %v416_v60 = vmin.f32 %v9987_v3, 0.0  ;;  %vm2080_vm10 = vcmp.lt.f32.partialorder %v2079_v0, 0.0004427343  ;;  %v9989_v47 = vmin.f32 %v9988_v14, 0.0 }
 0x2a7   :  { %v2332_v32 = vadd.f32 %v2331_v59, %v2204_v16  ;;  %v2072_v1 = vsel %vm2071_vm8, %v2069_v13, %v2066_v8  ;;  %v417_v44 = vmin.f32 %v9990_v2, 0.0  ;;  %v2207_v37 = vsub.f32 %v415_v15, %v2063_v33 }
 0x2a8   :  { %v2206_v43 = vsub.f32 %v9989_v47, %v2054_v18  ;;  %v2081_v58 = vsel %vm2080_vm10, %v2078_v63, %v2075_v12  ;;  %v2208_v49 = vsub.f32 %v416_v60, %v2072_v1 }
 0x2a9   :  { %v2333_v40 = vadd.f32 %v2332_v32, %v2205_v54  ;;  %v2209_v53 = vsub.f32 %v417_v44, %v2081_v58 }
 0x2ab   :  { %v2334_v25 = vadd.f32 %v2333_v40, %v2206_v43 }
 0x2ad   :  { %v2335_v29 = vadd.f32 %v2334_v25, %v2207_v37 }
 0x2af   :  { %v2336_v23 = vadd.f32 %v2335_v29, %v2208_v49 }
 0x2b1   :  { %v2337_v41 = vadd.f32 %v2336_v23, %v2209_v53 }
 0x2b3   :  { %2339 = vst [vmem:[#allocation5] sm:$0xff] %v2337_v41 }
 0x2b4   :  { %2903 = shalt.err (!%p2900_p9)
}
 0x2b5   :  { %2349 = dma.vmem_to_hbm [thread:$0]  %s2347_s13, 128, %s7498_s1, [#allocation4]  }
 0x2b6   :  { %2914 = dma.done.wait [#allocation4], 128  }
 0x2b7   :  { %2915 = vsyncadd [#allocation4], 4294967168 }
 0x2b8   :  { %2353 = vsyncpa [#allocation3], 1 }
 0x2b9   :  { %2354 = vsyncpa [#allocation4], 1 }

</bundles_post_ra>
